<compile_context>
chip_gen: v7x
topology: tpu7x:2x2x1
jax: 0.10.0
libtpu: 0.0.40
codegen_flags: <defaults>
</compile_context>

<pallas_src>
import functools

import jax
import jax.numpy as jnp
from jax.experimental import pallas as pl
from jax.experimental.pallas import tpu as pltpu


_K_SINGLE_BUFFER_SUPPORTED = True  # flips off if this jax build rejects pl.Buffered(1)


def _wbi_kernel(lam_ref, kt_ref, v_ref, m_ref, bary_ref, u1_ref, v1_ref,
                *, exp_p, bary_exp, S):
    """One grid step = one tile of Bt batches, all S marginals.

    lam_ref:  (S,)        SMEM   lamdas
    kt_ref:   (N, N)      VMEM   K transposed (so (K @ x)^T == x^T @ K^T), f32/bf16
    v_ref:    (S, Bt, N)  VMEM   scaling v, s-major slabs, f32
    m_ref:    (S, Bt, N)  VMEM   input marginals, f32
    bary_ref: (Bt, N)            barycenter (wrapper transposes to the module's (N, B))
    u1_ref:   (S, Bt, N)
    v1_ref:   (S, Bt, N)
    """
    eps = 1e-19
    kt = kt_ref[...]
    acc = None
    for s in range(S):                       # static unroll; S is small
        vs = v_ref[s]                        # (Bt, N) lane-dense slab
        ms = m_ref[s]
        # Kv[b] = v[b] @ K^T   (== K @ v per batch column in the reference)
        kv = jnp.dot(vs.astype(kt.dtype), kt, preferred_element_type=jnp.float32)
        # u1 = (marginals / (Kv + eps)) ** exp_p    (log form, no divide)
        u1s = jnp.exp(exp_p * (jnp.log(ms) - jnp.log(kv + eps)))
        u1_ref[s] = u1s.astype(u1_ref.dtype)
        # Ku1 = K @ u1
        ku1 = jnp.dot(u1s.astype(kt.dtype), kt, preferred_element_type=jnp.float32)
        log_ku1 = jnp.log(ku1 + eps)         # shared by temp2 and v1
        # temp2_s = (v_s * Ku1_s) ** bary_exp, weighted by lamdas[s] and reduced
        # over s as a lane-dense VALU accumulation (no block-diagonal MXU matmul).
        term = lam_ref[s] * jnp.exp(bary_exp * (jnp.log(vs) + log_ku1))
        acc = term if acc is None else acc + term
        # Stash (Ku1 + eps) ** (-exp_p) in the v1 output block; it is completed
        # with bary ** exp_p once bary is known (after the s-reduction).
        v1_ref[s] = jnp.exp(-exp_p * log_ku1).astype(v1_ref.dtype)

    # bary = (sum_s lamdas[s] * temp2_s) ** (1 / bary_exp)
    log_bary = jnp.log(acc) * (1.0 / bary_exp)          # (Bt, N)
    bary_ref[...] = jnp.exp(log_bary).astype(bary_ref.dtype)

    # v1 = (bary / (Ku1 + eps)) ** exp_p = bary**exp_p * (Ku1 + eps)**(-exp_p)
    bary_pow = jnp.exp(exp_p * log_bary)
    for s in range(S):
        v1_ref[s] = (bary_pow * v1_ref[s].astype(jnp.float32)).astype(v1_ref.dtype)


def _choose_batch_tile(B):
    """Largest multiple-of-8 divisor of B (<= 128) that still yields >= 2 grid tiles."""
    if B >= 16:
        for bt in range(min(128, B // 2), 7, -1):
            if bt % 8 == 0 and B % bt == 0:
                return bt
    return B


def wasserstein_barycenter_iteration_fused(K, epsilon, rho, lamdas, v_f, marginals_f,
                                           *, batches_per_tile=None,
                                           k_dtype=jnp.float32,
                                           out_dtype=jnp.float32):
    """Fused-layout Wasserstein barycenter iteration.

    v_f / marginals_f are (S, B, N) (s-major, N on the lane axis).  Returns
    (bary (B, N) f32, u1 (S, B, N) out_dtype, v1 (S, B, N) out_dtype).  Sinkhorn
    loops should stay in this layout across iterations (v <- v1) and only convert
    at the very end, to avoid extra HBM relayout passes.
    """
    S, B, N = v_f.shape
    if marginals_f.shape != (S, B, N):
        raise ValueError("marginals must have the same (S, B, N) shape as v")

    exp_p = float(rho) / (float(rho) + float(epsilon))
    bary_exp = float(epsilon) / (float(rho) + float(epsilon))

    Bt = _choose_batch_tile(B) if batches_per_tile is None else int(batches_per_tile)
    if B % Bt != 0:
        raise ValueError("batches_per_tile must divide the batch size")
    if Bt != B and Bt % 8 != 0:
        raise ValueError("tiled mode needs batches_per_tile to be a multiple of 8")
    num_tiles = B // Bt
    # NOTE: unmasked lane-dense stores need N % 128 == 0; smaller N still runs
    # correctly but uses masked partial stores (fine for toy shapes).
    # TODO(synk): for N large enough that K plus the per-s slabs no longer fit VMEM
    # (~3-4k on v7x, ~5-6k on v6e with bf16 K), add a K-tiled contraction grid axis
    # ('arbitrary') with resident f32 accumulators instead of whole-K blocks.

    kt = jnp.transpose(K).astype(k_dtype)          # (N, N); kernel computes x @ K^T
    lam = lamdas.astype(jnp.float32).reshape(S)
    v32 = v_f.astype(jnp.float32)
    m32 = marginals_f.astype(jnp.float32)

    kernel = functools.partial(_wbi_kernel, exp_p=exp_p, bary_exp=bary_exp, S=S)

    k_bytes = N * N * jnp.dtype(k_dtype).itemsize
    in_blk = S * Bt * N * 4
    out_blk = S * Bt * N * jnp.dtype(out_dtype).itemsize
    # K (<= 2 bufs) + double-buffered v/m/u1/v1/bary blocks + live per-s slabs.
    vmem_need = (2 * k_bytes + 2 * 2 * in_blk + 2 * 2 * out_blk
                 + 2 * Bt * N * 4 + 8 * Bt * N * 4)
    vmem_limit = max(16 << 20, min(int(1.25 * vmem_need) + (4 << 20), 100 << 20))
    try:  # cap at the chip's physical VMEM when the query is available
        cap = int(pltpu.get_tpu_info().vmem_capacity_bytes)
        vmem_limit = min(vmem_limit, cap - (4 << 20))
    except Exception:
        pass

    cost = pl.CostEstimate(
        flops=4 * B * S * N * N,                    # two (Bt,N)@(N,N) matmuls per s
        transcendentals=7 * B * S * N + 3 * B * N,  # log/exp per element + per-(B,N)
        bytes_accessed=(k_bytes + 2 * B * S * N * 4
                        + 2 * B * S * N * jnp.dtype(out_dtype).itemsize + B * N * 4),
    )

    def run(single_buffer_k):
        if single_buffer_k:
            # K never changes across tiles: keep one resident copy instead of the
            # default double buffer (halves its VMEM footprint for large N).
            kt_spec = pl.BlockSpec((N, N), lambda t: (0, 0),
                                   pipeline_mode=pl.Buffered(1))
        else:
            kt_spec = pl.BlockSpec((N, N), lambda t: (0, 0))
        return pl.pallas_call(
            kernel,
            grid=(num_tiles,),
            in_specs=[
                pl.BlockSpec(memory_space=pltpu.MemorySpace.SMEM),   # lamdas (S,)
                kt_spec,                                             # K^T (constant)
                pl.BlockSpec((S, Bt, N), lambda t: (0, t, 0)),       # v
                pl.BlockSpec((S, Bt, N), lambda t: (0, t, 0)),       # marginals
            ],
            out_specs=[
                pl.BlockSpec((Bt, N), lambda t: (t, 0)),             # bary (B, N)
                pl.BlockSpec((S, Bt, N), lambda t: (0, t, 0)),       # u1
                pl.BlockSpec((S, Bt, N), lambda t: (0, t, 0)),       # v1
            ],
            out_shape=(
                jax.ShapeDtypeStruct((B, N), jnp.float32),
                jax.ShapeDtypeStruct((S, B, N), out_dtype),
                jax.ShapeDtypeStruct((S, B, N), out_dtype),
            ),
            compiler_params=pltpu.CompilerParams(
                dimension_semantics=("parallel",),
                vmem_limit_bytes=vmem_limit,
            ),
            cost_estimate=cost,
        )(lam, kt, v32, m32)

    global _K_SINGLE_BUFFER_SUPPORTED
    if _K_SINGLE_BUFFER_SUPPORTED:
        try:
            return run(True)
        except Exception:
            # This jax build rejects single-buffered constants; fall back cleanly.
            _K_SINGLE_BUFFER_SUPPORTED = False
    return run(False)


def wasserstein_barycenter_iteration(K, epsilon, rho, u, v, lamdas, marginals,
                                     *, batches_per_tile=None, k_dtype=jnp.float32,
                                     out_dtype=jnp.float32):
    """Pallas implementation of WassersteinBarycenterIteration.forward.

    Returns (bary_1 (N, B), u1 (B, N, S), v1 (B, N, S)), matching the PyTorch module.
    `u` is accepted but unused, exactly like the reference forward.  k_dtype=bf16
    runs the two Gibbs matmuls on the MXU in bf16 (f32 accumulation) at a documented
    accuracy cost; out_dtype=bf16 halves u1/v1 store / HBM traffic.
    """
    del u  # unused in the reference forward pass
    B, N, S = v.shape
    del B, N, S
    # Boundary relayout to the kernel-native fused (S, B, N) layout; iterative
    # callers should use wasserstein_barycenter_iteration_fused directly and keep
    # v/u1/v1 fused across Sinkhorn iterations to skip these HBM passes.
    v_f = jnp.transpose(v, (2, 0, 1))
    m_f = jnp.transpose(marginals, (2, 0, 1))
    bary_bn, u1_f, v1_f = wasserstein_barycenter_iteration_fused(
        K, epsilon, rho, lamdas, v_f, m_f,
        batches_per_tile=batches_per_tile, k_dtype=k_dtype, out_dtype=out_dtype)
    bary_1 = bary_bn.T                                 # (N, B) as in the module
    u1 = jnp.transpose(u1_f, (1, 2, 0))                # (B, N, S)
    v1 = jnp.transpose(v1_f, (1, 2, 0))
    return bary_1, u1, v1


def _reference(K, epsilon, rho, u, v, lamdas, marginals):
    """Pure-JAX mirror of the PyTorch forward (including the permutes)."""
    del u
    exp = rho / (rho + epsilon)
    bary_exp = epsilon / (rho + epsilon)
    Kv = jnp.einsum("nm,bms->bns", K, v)
    u1 = jnp.power(marginals / (Kv + 1e-19), exp)
    Ku1 = jnp.einsum("nm,bms->bns", K, u1)
    temp2 = jnp.power(v * Ku1, bary_exp)
    temp3 = jnp.transpose(temp2, (1, 0, 2))                 # (N, B, S)
    temp4 = jnp.sum(lamdas[None, :] * temp3, axis=2)        # (N, B)
    bary_1 = jnp.power(temp4, 1.0 / bary_exp)
    Ku1_temp = jnp.transpose(Ku1, (2, 1, 0))                # (S, N, B)
    v1_temp = bary_1 / (Ku1_temp + 1e-19)
    v1 = jnp.power(jnp.transpose(v1_temp, (2, 1, 0)), exp)  # (B, N, S)
    return bary_1, u1, v1


if __name__ == "__main__":
    epsilon, rho = 0.1, 1.0

    def make_inputs(key, B, N, S):
        k1, k2 = jax.random.split(key)
        x = jnp.arange(N, dtype=jnp.float32) / N
        cost = (x[:, None] - x[None, :]) ** 2
        K = jnp.exp(-cost / epsilon)                       # Gibbs kernel parameter
        u = jnp.ones((B, N, S), jnp.float32)               # unused by forward
        v = jnp.ones((B, N, S), jnp.float32)               # standard Sinkhorn init
        marginals = jax.nn.softmax(jax.random.normal(k1, (B, N, S)), axis=1)
        lamdas = jax.nn.softmax(jax.random.normal(k2, (S,)))
        return K, u, v, lamdas, marginals

    key = jax.random.PRNGKey(0)
    key1, key2 = jax.random.split(key)

    # --- Test 1: small shapes, single batch tile (grid=(1,)) ---------------------
    B, N, S = 2, 16, 8
    K, u, v, lamdas, marginals = make_inputs(key1, B, N, S)
    bary_1, u1, v1 = wasserstein_barycenter_iteration(
        K, epsilon, rho, u, v, lamdas, marginals)
    jax.block_until_ready((bary_1, u1, v1))
    rb, ru, rv = _reference(K, epsilon, rho, u, v, lamdas, marginals)
    assert bary_1.shape == (N, B) and u1.shape == (B, N, S) and v1.shape == (B, N, S)
    assert jnp.allclose(bary_1, rb, rtol=1e-3, atol=1e-6)
    assert jnp.allclose(u1, ru, rtol=1e-3, atol=1e-6)
    assert jnp.allclose(v1, rv, rtol=1e-3, atol=1e-6)

    # --- Test 2: auto-tiled batch axis (default Bt=128 -> 2 "parallel" tiles) ----
    B2, N2, S2 = 256, 16, 8
    K2, u2, v2, lamdas2, marginals2 = make_inputs(key2, B2, N2, S2)
    bary_2, u1_2, v1_2 = wasserstein_barycenter_iteration(
        K2, epsilon, rho, u2, v2, lamdas2, marginals2)
    jax.block_until_ready((bary_2, u1_2, v1_2))
    rb2, ru2, rv2 = _reference(K2, epsilon, rho, u2, v2, lamdas2, marginals2)
    assert bary_2.shape == (N2, B2)
    assert jnp.allclose(bary_2, rb2, rtol=1e-3, atol=1e-6)
    assert jnp.allclose(u1_2, ru2, rtol=1e-3, atol=1e-6)
    assert jnp.allclose(v1_2, rv2, rtol=1e-3, atol=1e-6)

    # --- Test 3: explicit multiple-of-8 batch tile (8 grid tiles) ----------------
    bary_2b, u1_2b, v1_2b = wasserstein_barycenter_iteration(
        K2, epsilon, rho, u2, v2, lamdas2, marginals2, batches_per_tile=32)
    jax.block_until_ready((bary_2b, u1_2b, v1_2b))
    assert jnp.allclose(bary_2b, rb2, rtol=1e-3, atol=1e-6)
    assert jnp.allclose(v1_2b, rv2, rtol=1e-3, atol=1e-6)

    # --- Test 4: bf16 Gibbs kernel on the MXU (opt-in), loose check --------------
    bary_3, u1_3, v1_3 = wasserstein_barycenter_iteration(
        K, epsilon, rho, u, v, lamdas, marginals, k_dtype=jnp.bfloat16)
    jax.block_until_ready((bary_3, u1_3, v1_3))
    assert jnp.allclose(bary_3, rb, rtol=1e-1, atol=1e-3)
    assert jnp.allclose(u1_3, ru, rtol=1e-1, atol=1e-3)
    assert jnp.allclose(v1_3, rv, rtol=1e-1, atol=1e-3)

    # --- Test 5: bf16 u1/v1 outputs (halved store traffic), loose check ----------
    bary_4, u1_4, v1_4 = wasserstein_barycenter_iteration(
        K, epsilon, rho, u, v, lamdas, marginals, out_dtype=jnp.bfloat16)
    jax.block_until_ready((bary_4, u1_4, v1_4))
    assert jnp.allclose(bary_4, rb, rtol=1e-3, atol=1e-6)
    assert jnp.allclose(u1_4.astype(jnp.float32), ru, rtol=5e-2, atol=1e-3)
    assert jnp.allclose(v1_4.astype(jnp.float32), rv, rtol=5e-2, atol=1e-3)

    print("KERNEL_OK")
</pallas_src>

<mosaic_0001>
module attributes {stable_mosaic.version = 11 : i64} {
  func.func @_wbi_kernel(%arg0: i32, %arg1: memref<8xf32, #tpu.memory_space<smem>>, %arg2: memref<16x16xf32, #tpu.memory_space<vmem>>, %arg3: memref<8x2x16xf32, #tpu.memory_space<vmem>>, %arg4: memref<8x2x16xf32, #tpu.memory_space<vmem>>, %arg5: memref<2x16xf32, #tpu.memory_space<vmem>>, %arg6: memref<8x2x16xf32, #tpu.memory_space<vmem>>, %arg7: memref<8x2x16xf32, #tpu.memory_space<vmem>>) attributes {dimension_semantics = [#tpu.dimension_semantics<parallel>], iteration_bounds = array<i64: 1>, scalar_prefetch = 0 : i64, scratch_operands = 0 : i64, tpu.core_type = #tpu.core_type<tc>, window_params = [{transform_indices = @transform_0, window_bounds = array<i64: 8>}, {pipeline_mode = #tpu.pipeline_mode<synchronous>, transform_indices = @transform_1, window_bounds = array<i64: 16, 16>}, {transform_indices = @transform_2, window_bounds = array<i64: 8, 2, 16>}, {transform_indices = @transform_3, window_bounds = array<i64: 8, 2, 16>}, {transform_indices = @transform_4, window_bounds = array<i64: 2, 16>}, {transform_indices = @transform_5, window_bounds = array<i64: 8, 2, 16>}, {transform_indices = @transform_6, window_bounds = array<i64: 8, 2, 16>}]} {
    %c0 = arith.constant 0 : index
    %c0_0 = arith.constant 0 : index
    %0 = vector.load %arg2[%c0, %c0_0] : memref<16x16xf32, #tpu.memory_space<vmem>>, vector<16x16xf32>
    %c0_1 = arith.constant 0 : index
    %c0_2 = arith.constant 0 : index
    %c0_3 = arith.constant 0 : index
    %1 = vector.load %arg3[%c0_1, %c0_2, %c0_3] : memref<8x2x16xf32, #tpu.memory_space<vmem>>, vector<1x2x16xf32>
    %2 = vector.shape_cast %1 : vector<1x2x16xf32> to vector<2x16xf32>
    %c0_4 = arith.constant 0 : index
    %c0_5 = arith.constant 0 : index
    %c0_6 = arith.constant 0 : index
    %3 = vector.load %arg4[%c0_4, %c0_5, %c0_6] : memref<8x2x16xf32, #tpu.memory_space<vmem>>, vector<1x2x16xf32>
    %4 = vector.shape_cast %3 : vector<1x2x16xf32> to vector<2x16xf32>
    %cst = arith.constant dense<0.000000e+00> : vector<2x16xf32>
    %5 = tpu.matmul %2, %0, %cst {dimension_numbers = #tpu.dot_dimension_numbers<[1], [0], [0], [1], [0, 0, 1, 1], [], []>} : vector<2x16xf32>, vector<16x16xf32>, vector<2x16xf32> -> vector<2x16xf32>
    %6 = math.log %4 : vector<2x16xf32>
    %cst_7 = arith.constant 9.99999968E-20 : f32
    %7 = vector.broadcast %cst_7 : f32 to vector<2x16xf32>
    %8 = arith.addf %5, %7 : vector<2x16xf32>
    %9 = math.log %8 : vector<2x16xf32>
    %10 = arith.subf %6, %9 : vector<2x16xf32>
    %cst_8 = arith.constant 0.909090936 : f32
    %11 = vector.broadcast %cst_8 : f32 to vector<2x16xf32>
    %12 = arith.mulf %11, %10 : vector<2x16xf32>
    %13 = math.exp %12 : vector<2x16xf32>
    %c0_9 = arith.constant 0 : index
    %c0_10 = arith.constant 0 : index
    %c0_11 = arith.constant 0 : index
    %14 = vector.load %arg6[%c0_9, %c0_10, %c0_11] : memref<8x2x16xf32, #tpu.memory_space<vmem>>, vector<1x2x16xf32>
    %15 = vector.shape_cast %14 : vector<1x2x16xf32> to vector<2x16xf32>
    %16 = vector.shape_cast %13 : vector<2x16xf32> to vector<1x2x16xf32>
    tpu.vector_store %arg6[%c0_9, %c0_10, %c0_11], %16 {strides = array<i32>} : memref<8x2x16xf32, #tpu.memory_space<vmem>>, vector<1x2x16xf32>,
    %cst_12 = arith.constant dense<0.000000e+00> : vector<2x16xf32>
    %17 = tpu.matmul %13, %0, %cst_12 {dimension_numbers = #tpu.dot_dimension_numbers<[1], [0], [0], [1], [0, 0, 1, 1], [], []>} : vector<2x16xf32>, vector<16x16xf32>, vector<2x16xf32> -> vector<2x16xf32>
    %cst_13 = arith.constant 9.99999968E-20 : f32
    %18 = vector.broadcast %cst_13 : f32 to vector<2x16xf32>
    %19 = arith.addf %17, %18 : vector<2x16xf32>
    %20 = math.log %19 : vector<2x16xf32>
    %c0_14 = arith.constant 0 : index
    %21 = memref.load %arg1[%c0_14] : memref<8xf32, #tpu.memory_space<smem>>
    %22 = math.log %2 : vector<2x16xf32>
    %23 = arith.addf %22, %20 : vector<2x16xf32>
    %cst_15 = arith.constant 0.0909090936 : f32
    %24 = vector.broadcast %cst_15 : f32 to vector<2x16xf32>
    %25 = arith.mulf %24, %23 : vector<2x16xf32>
    %26 = math.exp %25 : vector<2x16xf32>
    %27 = vector.broadcast %21 : f32 to vector<2x16xf32>
    %28 = arith.mulf %27, %26 : vector<2x16xf32>
    %cst_16 = arith.constant -0.909090936 : f32
    %29 = vector.broadcast %cst_16 : f32 to vector<2x16xf32>
    %30 = arith.mulf %29, %20 : vector<2x16xf32>
    %31 = math.exp %30 : vector<2x16xf32>
    %c0_17 = arith.constant 0 : index
    %c0_18 = arith.constant 0 : index
    %c0_19 = arith.constant 0 : index
    %32 = vector.load %arg7[%c0_17, %c0_18, %c0_19] : memref<8x2x16xf32, #tpu.memory_space<vmem>>, vector<1x2x16xf32>
    %33 = vector.shape_cast %32 : vector<1x2x16xf32> to vector<2x16xf32>
    %34 = vector.shape_cast %31 : vector<2x16xf32> to vector<1x2x16xf32>
    tpu.vector_store %arg7[%c0_17, %c0_18, %c0_19], %34 {strides = array<i32>} : memref<8x2x16xf32, #tpu.memory_space<vmem>>, vector<1x2x16xf32>,
    %c1 = arith.constant 1 : index
    %c0_20 = arith.constant 0 : index
    %c0_21 = arith.constant 0 : index
    %35 = vector.load %arg3[%c1, %c0_20, %c0_21] : memref<8x2x16xf32, #tpu.memory_space<vmem>>, vector<1x2x16xf32>
    %36 = vector.shape_cast %35 : vector<1x2x16xf32> to vector<2x16xf32>
    %c1_22 = arith.constant 1 : index
    %c0_23 = arith.constant 0 : index
    %c0_24 = arith.constant 0 : index
    %37 = vector.load %arg4[%c1_22, %c0_23, %c0_24] : memref<8x2x16xf32, #tpu.memory_space<vmem>>, vector<1x2x16xf32>
    %38 = vector.shape_cast %37 : vector<1x2x16xf32> to vector<2x16xf32>
    %cst_25 = arith.constant dense<0.000000e+00> : vector<2x16xf32>
    %39 = tpu.matmul %36, %0, %cst_25 {dimension_numbers = #tpu.dot_dimension_numbers<[1], [0], [0], [1], [0, 0, 1, 1], [], []>} : vector<2x16xf32>, vector<16x16xf32>, vector<2x16xf32> -> vector<2x16xf32>
    %40 = math.log %38 : vector<2x16xf32>
    %cst_26 = arith.constant 9.99999968E-20 : f32
    %41 = vector.broadcast %cst_26 : f32 to vector<2x16xf32>
    %42 = arith.addf %39, %41 : vector<2x16xf32>
    %43 = math.log %42 : vector<2x16xf32>
    %44 = arith.subf %40, %43 : vector<2x16xf32>
    %cst_27 = arith.constant 0.909090936 : f32
    %45 = vector.broadcast %cst_27 : f32 to vector<2x16xf32>
    %46 = arith.mulf %45, %44 : vector<2x16xf32>
    %47 = math.exp %46 : vector<2x16xf32>
    %c1_28 = arith.constant 1 : index
    %c0_29 = arith.constant 0 : index
    %c0_30 = arith.constant 0 : index
    %48 = vector.load %arg6[%c1_28, %c0_29, %c0_30] : memref<8x2x16xf32, #tpu.memory_space<vmem>>, vector<1x2x16xf32>
    %49 = vector.shape_cast %48 : vector<1x2x16xf32> to vector<2x16xf32>
    %50 = vector.shape_cast %47 : vector<2x16xf32> to vector<1x2x16xf32>
    tpu.vector_store %arg6[%c1_28, %c0_29, %c0_30], %50 {strides = array<i32>} : memref<8x2x16xf32, #tpu.memory_space<vmem>>, vector<1x2x16xf32>,
    %cst_31 = arith.constant dense<0.000000e+00> : vector<2x16xf32>
    %51 = tpu.matmul %47, %0, %cst_31 {dimension_numbers = #tpu.dot_dimension_numbers<[1], [0], [0], [1], [0, 0, 1, 1], [], []>} : vector<2x16xf32>, vector<16x16xf32>, vector<2x16xf32> -> vector<2x16xf32>
    %cst_32 = arith.constant 9.99999968E-20 : f32
    %52 = vector.broadcast %cst_32 : f32 to vector<2x16xf32>
    %53 = arith.addf %51, %52 : vector<2x16xf32>
    %54 = math.log %53 : vector<2x16xf32>
    %c1_33 = arith.constant 1 : index
    %55 = memref.load %arg1[%c1_33] : memref<8xf32, #tpu.memory_space<smem>>
    %56 = math.log %36 : vector<2x16xf32>
    %57 = arith.addf %56, %54 : vector<2x16xf32>
    %cst_34 = arith.constant 0.0909090936 : f32
    %58 = vector.broadcast %cst_34 : f32 to vector<2x16xf32>
    %59 = arith.mulf %58, %57 : vector<2x16xf32>
    %60 = math.exp %59 : vector<2x16xf32>
    %61 = vector.broadcast %55 : f32 to vector<2x16xf32>
    %62 = arith.mulf %61, %60 : vector<2x16xf32>
    %63 = arith.addf %28, %62 : vector<2x16xf32>
    %cst_35 = arith.constant -0.909090936 : f32
    %64 = vector.broadcast %cst_35 : f32 to vector<2x16xf32>
    %65 = arith.mulf %64, %54 : vector<2x16xf32>
    %66 = math.exp %65 : vector<2x16xf32>
    %c1_36 = arith.constant 1 : index
    %c0_37 = arith.constant 0 : index
    %c0_38 = arith.constant 0 : index
    %67 = vector.load %arg7[%c1_36, %c0_37, %c0_38] : memref<8x2x16xf32, #tpu.memory_space<vmem>>, vector<1x2x16xf32>
    %68 = vector.shape_cast %67 : vector<1x2x16xf32> to vector<2x16xf32>
    %69 = vector.shape_cast %66 : vector<2x16xf32> to vector<1x2x16xf32>
    tpu.vector_store %arg7[%c1_36, %c0_37, %c0_38], %69 {strides = array<i32>} : memref<8x2x16xf32, #tpu.memory_space<vmem>>, vector<1x2x16xf32>,
    %c2 = arith.constant 2 : index
    %c0_39 = arith.constant 0 : index
    %c0_40 = arith.constant 0 : index
    %70 = vector.load %arg3[%c2, %c0_39, %c0_40] : memref<8x2x16xf32, #tpu.memory_space<vmem>>, vector<1x2x16xf32>
    %71 = vector.shape_cast %70 : vector<1x2x16xf32> to vector<2x16xf32>
    %c2_41 = arith.constant 2 : index
    %c0_42 = arith.constant 0 : index
    %c0_43 = arith.constant 0 : index
    %72 = vector.load %arg4[%c2_41, %c0_42, %c0_43] : memref<8x2x16xf32, #tpu.memory_space<vmem>>, vector<1x2x16xf32>
    %73 = vector.shape_cast %72 : vector<1x2x16xf32> to vector<2x16xf32>
    %cst_44 = arith.constant dense<0.000000e+00> : vector<2x16xf32>
    %74 = tpu.matmul %71, %0, %cst_44 {dimension_numbers = #tpu.dot_dimension_numbers<[1], [0], [0], [1], [0, 0, 1, 1], [], []>} : vector<2x16xf32>, vector<16x16xf32>, vector<2x16xf32> -> vector<2x16xf32>
    %75 = math.log %73 : vector<2x16xf32>
    %cst_45 = arith.constant 9.99999968E-20 : f32
    %76 = vector.broadcast %cst_45 : f32 to vector<2x16xf32>
    %77 = arith.addf %74, %76 : vector<2x16xf32>
    %78 = math.log %77 : vector<2x16xf32>
    %79 = arith.subf %75, %78 : vector<2x16xf32>
    %cst_46 = arith.constant 0.909090936 : f32
    %80 = vector.broadcast %cst_46 : f32 to vector<2x16xf32>
    %81 = arith.mulf %80, %79 : vector<2x16xf32>
    %82 = math.exp %81 : vector<2x16xf32>
    %c2_47 = arith.constant 2 : index
    %c0_48 = arith.constant 0 : index
    %c0_49 = arith.constant 0 : index
    %83 = vector.load %arg6[%c2_47, %c0_48, %c0_49] : memref<8x2x16xf32, #tpu.memory_space<vmem>>, vector<1x2x16xf32>
    %84 = vector.shape_cast %83 : vector<1x2x16xf32> to vector<2x16xf32>
    %85 = vector.shape_cast %82 : vector<2x16xf32> to vector<1x2x16xf32>
    tpu.vector_store %arg6[%c2_47, %c0_48, %c0_49], %85 {strides = array<i32>} : memref<8x2x16xf32, #tpu.memory_space<vmem>>, vector<1x2x16xf32>,
    %cst_50 = arith.constant dense<0.000000e+00> : vector<2x16xf32>
    %86 = tpu.matmul %82, %0, %cst_50 {dimension_numbers = #tpu.dot_dimension_numbers<[1], [0], [0], [1], [0, 0, 1, 1], [], []>} : vector<2x16xf32>, vector<16x16xf32>, vector<2x16xf32> -> vector<2x16xf32>
    %cst_51 = arith.constant 9.99999968E-20 : f32
    %87 = vector.broadcast %cst_51 : f32 to vector<2x16xf32>
    %88 = arith.addf %86, %87 : vector<2x16xf32>
    %89 = math.log %88 : vector<2x16xf32>
    %c2_52 = arith.constant 2 : index
    %90 = memref.load %arg1[%c2_52] : memref<8xf32, #tpu.memory_space<smem>>
    %91 = math.log %71 : vector<2x16xf32>
    %92 = arith.addf %91, %89 : vector<2x16xf32>
    %cst_53 = arith.constant 0.0909090936 : f32
    %93 = vector.broadcast %cst_53 : f32 to vector<2x16xf32>
    %94 = arith.mulf %93, %92 : vector<2x16xf32>
    %95 = math.exp %94 : vector<2x16xf32>
    %96 = vector.broadcast %90 : f32 to vector<2x16xf32>
    %97 = arith.mulf %96, %95 : vector<2x16xf32>
    %98 = arith.addf %63, %97 : vector<2x16xf32>
    %cst_54 = arith.constant -0.909090936 : f32
    %99 = vector.broadcast %cst_54 : f32 to vector<2x16xf32>
    %100 = arith.mulf %99, %89 : vector<2x16xf32>
    %101 = math.exp %100 : vector<2x16xf32>
    %c2_55 = arith.constant 2 : index
    %c0_56 = arith.constant 0 : index
    %c0_57 = arith.constant 0 : index
    %102 = vector.load %arg7[%c2_55, %c0_56, %c0_57] : memref<8x2x16xf32, #tpu.memory_space<vmem>>, vector<1x2x16xf32>
    %103 = vector.shape_cast %102 : vector<1x2x16xf32> to vector<2x16xf32>
    %104 = vector.shape_cast %101 : vector<2x16xf32> to vector<1x2x16xf32>
    tpu.vector_store %arg7[%c2_55, %c0_56, %c0_57], %104 {strides = array<i32>} : memref<8x2x16xf32, #tpu.memory_space<vmem>>, vector<1x2x16xf32>,
    %c3 = arith.constant 3 : index
    %c0_58 = arith.constant 0 : index
    %c0_59 = arith.constant 0 : index
    %105 = vector.load %arg3[%c3, %c0_58, %c0_59] : memref<8x2x16xf32, #tpu.memory_space<vmem>>, vector<1x2x16xf32>
    %106 = vector.shape_cast %105 : vector<1x2x16xf32> to vector<2x16xf32>
    %c3_60 = arith.constant 3 : index
    %c0_61 = arith.constant 0 : index
    %c0_62 = arith.constant 0 : index
    %107 = vector.load %arg4[%c3_60, %c0_61, %c0_62] : memref<8x2x16xf32, #tpu.memory_space<vmem>>, vector<1x2x16xf32>
    %108 = vector.shape_cast %107 : vector<1x2x16xf32> to vector<2x16xf32>
    %cst_63 = arith.constant dense<0.000000e+00> : vector<2x16xf32>
    %109 = tpu.matmul %106, %0, %cst_63 {dimension_numbers = #tpu.dot_dimension_numbers<[1], [0], [0], [1], [0, 0, 1, 1], [], []>} : vector<2x16xf32>, vector<16x16xf32>, vector<2x16xf32> -> vector<2x16xf32>
    %110 = math.log %108 : vector<2x16xf32>
    %cst_64 = arith.constant 9.99999968E-20 : f32
    %111 = vector.broadcast %cst_64 : f32 to vector<2x16xf32>
    %112 = arith.addf %109, %111 : vector<2x16xf32>
    %113 = math.log %112 : vector<2x16xf32>
    %114 = arith.subf %110, %113 : vector<2x16xf32>
    %cst_65 = arith.constant 0.909090936 : f32
    %115 = vector.broadcast %cst_65 : f32 to vector<2x16xf32>
    %116 = arith.mulf %115, %114 : vector<2x16xf32>
    %117 = math.exp %116 : vector<2x16xf32>
    %c3_66 = arith.constant 3 : index
    %c0_67 = arith.constant 0 : index
    %c0_68 = arith.constant 0 : index
    %118 = vector.load %arg6[%c3_66, %c0_67, %c0_68] : memref<8x2x16xf32, #tpu.memory_space<vmem>>, vector<1x2x16xf32>
    %119 = vector.shape_cast %118 : vector<1x2x16xf32> to vector<2x16xf32>
    %120 = vector.shape_cast %117 : vector<2x16xf32> to vector<1x2x16xf32>
    tpu.vector_store %arg6[%c3_66, %c0_67, %c0_68], %120 {strides = array<i32>} : memref<8x2x16xf32, #tpu.memory_space<vmem>>, vector<1x2x16xf32>,
    %cst_69 = arith.constant dense<0.000000e+00> : vector<2x16xf32>
    %121 = tpu.matmul %117, %0, %cst_69 {dimension_numbers = #tpu.dot_dimension_numbers<[1], [0], [0], [1], [0, 0, 1, 1], [], []>} : vector<2x16xf32>, vector<16x16xf32>, vector<2x16xf32> -> vector<2x16xf32>
    %cst_70 = arith.constant 9.99999968E-20 : f32
    %122 = vector.broadcast %cst_70 : f32 to vector<2x16xf32>
    %123 = arith.addf %121, %122 : vector<2x16xf32>
    %124 = math.log %123 : vector<2x16xf32>
    %c3_71 = arith.constant 3 : index
    %125 = memref.load %arg1[%c3_71] : memref<8xf32, #tpu.memory_space<smem>>
    %126 = math.log %106 : vector<2x16xf32>
    %127 = arith.addf %126, %124 : vector<2x16xf32>
    %cst_72 = arith.constant 0.0909090936 : f32
    %128 = vector.broadcast %cst_72 : f32 to vector<2x16xf32>
    %129 = arith.mulf %128, %127 : vector<2x16xf32>
    %130 = math.exp %129 : vector<2x16xf32>
    %131 = vector.broadcast %125 : f32 to vector<2x16xf32>
    %132 = arith.mulf %131, %130 : vector<2x16xf32>
    %133 = arith.addf %98, %132 : vector<2x16xf32>
    %cst_73 = arith.constant -0.909090936 : f32
    %134 = vector.broadcast %cst_73 : f32 to vector<2x16xf32>
    %135 = arith.mulf %134, %124 : vector<2x16xf32>
    %136 = math.exp %135 : vector<2x16xf32>
    %c3_74 = arith.constant 3 : index
    %c0_75 = arith.constant 0 : index
    %c0_76 = arith.constant 0 : index
    %137 = vector.load %arg7[%c3_74, %c0_75, %c0_76] : memref<8x2x16xf32, #tpu.memory_space<vmem>>, vector<1x2x16xf32>
    %138 = vector.shape_cast %137 : vector<1x2x16xf32> to vector<2x16xf32>
    %139 = vector.shape_cast %136 : vector<2x16xf32> to vector<1x2x16xf32>
    tpu.vector_store %arg7[%c3_74, %c0_75, %c0_76], %139 {strides = array<i32>} : memref<8x2x16xf32, #tpu.memory_space<vmem>>, vector<1x2x16xf32>,
    %c4 = arith.constant 4 : index
    %c0_77 = arith.constant 0 : index
    %c0_78 = arith.constant 0 : index
    %140 = vector.load %arg3[%c4, %c0_77, %c0_78] : memref<8x2x16xf32, #tpu.memory_space<vmem>>, vector<1x2x16xf32>
    %141 = vector.shape_cast %140 : vector<1x2x16xf32> to vector<2x16xf32>
    %c4_79 = arith.constant 4 : index
    %c0_80 = arith.constant 0 : index
    %c0_81 = arith.constant 0 : index
    %142 = vector.load %arg4[%c4_79, %c0_80, %c0_81] : memref<8x2x16xf32, #tpu.memory_space<vmem>>, vector<1x2x16xf32>
    %143 = vector.shape_cast %142 : vector<1x2x16xf32> to vector<2x16xf32>
    %cst_82 = arith.constant dense<0.000000e+00> : vector<2x16xf32>
    %144 = tpu.matmul %141, %0, %cst_82 {dimension_numbers = #tpu.dot_dimension_numbers<[1], [0], [0], [1], [0, 0, 1, 1], [], []>} : vector<2x16xf32>, vector<16x16xf32>, vector<2x16xf32> -> vector<2x16xf32>
    %145 = math.log %143 : vector<2x16xf32>
    %cst_83 = arith.constant 9.99999968E-20 : f32
    %146 = vector.broadcast %cst_83 : f32 to vector<2x16xf32>
    %147 = arith.addf %144, %146 : vector<2x16xf32>
    %148 = math.log %147 : vector<2x16xf32>
    %149 = arith.subf %145, %148 : vector<2x16xf32>
    %cst_84 = arith.constant 0.909090936 : f32
    %150 = vector.broadcast %cst_84 : f32 to vector<2x16xf32>
    %151 = arith.mulf %150, %149 : vector<2x16xf32>
    %152 = math.exp %151 : vector<2x16xf32>
    %c4_85 = arith.constant 4 : index
    %c0_86 = arith.constant 0 : index
    %c0_87 = arith.constant 0 : index
    %153 = vector.load %arg6[%c4_85, %c0_86, %c0_87] : memref<8x2x16xf32, #tpu.memory_space<vmem>>, vector<1x2x16xf32>
    %154 = vector.shape_cast %153 : vector<1x2x16xf32> to vector<2x16xf32>
    %155 = vector.shape_cast %152 : vector<2x16xf32> to vector<1x2x16xf32>
    tpu.vector_store %arg6[%c4_85, %c0_86, %c0_87], %155 {strides = array<i32>} : memref<8x2x16xf32, #tpu.memory_space<vmem>>, vector<1x2x16xf32>,
    %cst_88 = arith.constant dense<0.000000e+00> : vector<2x16xf32>
    %156 = tpu.matmul %152, %0, %cst_88 {dimension_numbers = #tpu.dot_dimension_numbers<[1], [0], [0], [1], [0, 0, 1, 1], [], []>} : vector<2x16xf32>, vector<16x16xf32>, vector<2x16xf32> -> vector<2x16xf32>
    %cst_89 = arith.constant 9.99999968E-20 : f32
    %157 = vector.broadcast %cst_89 : f32 to vector<2x16xf32>
    %158 = arith.addf %156, %157 : vector<2x16xf32>
    %159 = math.log %158 : vector<2x16xf32>
    %c4_90 = arith.constant 4 : index
    %160 = memref.load %arg1[%c4_90] : memref<8xf32, #tpu.memory_space<smem>>
    %161 = math.log %141 : vector<2x16xf32>
    %162 = arith.addf %161, %159 : vector<2x16xf32>
    %cst_91 = arith.constant 0.0909090936 : f32
    %163 = vector.broadcast %cst_91 : f32 to vector<2x16xf32>
    %164 = arith.mulf %163, %162 : vector<2x16xf32>
    %165 = math.exp %164 : vector<2x16xf32>
    %166 = vector.broadcast %160 : f32 to vector<2x16xf32>
    %167 = arith.mulf %166, %165 : vector<2x16xf32>
    %168 = arith.addf %133, %167 : vector<2x16xf32>
    %cst_92 = arith.constant -0.909090936 : f32
    %169 = vector.broadcast %cst_92 : f32 to vector<2x16xf32>
    %170 = arith.mulf %169, %159 : vector<2x16xf32>
    %171 = math.exp %170 : vector<2x16xf32>
    %c4_93 = arith.constant 4 : index
    %c0_94 = arith.constant 0 : index
    %c0_95 = arith.constant 0 : index
    %172 = vector.load %arg7[%c4_93, %c0_94, %c0_95] : memref<8x2x16xf32, #tpu.memory_space<vmem>>, vector<1x2x16xf32>
    %173 = vector.shape_cast %172 : vector<1x2x16xf32> to vector<2x16xf32>
    %174 = vector.shape_cast %171 : vector<2x16xf32> to vector<1x2x16xf32>
    tpu.vector_store %arg7[%c4_93, %c0_94, %c0_95], %174 {strides = array<i32>} : memref<8x2x16xf32, #tpu.memory_space<vmem>>, vector<1x2x16xf32>,
    %c5 = arith.constant 5 : index
    %c0_96 = arith.constant 0 : index
    %c0_97 = arith.constant 0 : index
    %175 = vector.load %arg3[%c5, %c0_96, %c0_97] : memref<8x2x16xf32, #tpu.memory_space<vmem>>, vector<1x2x16xf32>
    %176 = vector.shape_cast %175 : vector<1x2x16xf32> to vector<2x16xf32>
    %c5_98 = arith.constant 5 : index
    %c0_99 = arith.constant 0 : index
    %c0_100 = arith.constant 0 : index
    %177 = vector.load %arg4[%c5_98, %c0_99, %c0_100] : memref<8x2x16xf32, #tpu.memory_space<vmem>>, vector<1x2x16xf32>
    %178 = vector.shape_cast %177 : vector<1x2x16xf32> to vector<2x16xf32>
    %cst_101 = arith.constant dense<0.000000e+00> : vector<2x16xf32>
    %179 = tpu.matmul %176, %0, %cst_101 {dimension_numbers = #tpu.dot_dimension_numbers<[1], [0], [0], [1], [0, 0, 1, 1], [], []>} : vector<2x16xf32>, vector<16x16xf32>, vector<2x16xf32> -> vector<2x16xf32>
    %180 = math.log %178 : vector<2x16xf32>
    %cst_102 = arith.constant 9.99999968E-20 : f32
    %181 = vector.broadcast %cst_102 : f32 to vector<2x16xf32>
    %182 = arith.addf %179, %181 : vector<2x16xf32>
    %183 = math.log %182 : vector<2x16xf32>
    %184 = arith.subf %180, %183 : vector<2x16xf32>
    %cst_103 = arith.constant 0.909090936 : f32
    %185 = vector.broadcast %cst_103 : f32 to vector<2x16xf32>
    %186 = arith.mulf %185, %184 : vector<2x16xf32>
    %187 = math.exp %186 : vector<2x16xf32>
    %c5_104 = arith.constant 5 : index
    %c0_105 = arith.constant 0 : index
    %c0_106 = arith.constant 0 : index
    %188 = vector.load %arg6[%c5_104, %c0_105, %c0_106] : memref<8x2x16xf32, #tpu.memory_space<vmem>>, vector<1x2x16xf32>
    %189 = vector.shape_cast %188 : vector<1x2x16xf32> to vector<2x16xf32>
    %190 = vector.shape_cast %187 : vector<2x16xf32> to vector<1x2x16xf32>
    tpu.vector_store %arg6[%c5_104, %c0_105, %c0_106], %190 {strides = array<i32>} : memref<8x2x16xf32, #tpu.memory_space<vmem>>, vector<1x2x16xf32>,
    %cst_107 = arith.constant dense<0.000000e+00> : vector<2x16xf32>
    %191 = tpu.matmul %187, %0, %cst_107 {dimension_numbers = #tpu.dot_dimension_numbers<[1], [0], [0], [1], [0, 0, 1, 1], [], []>} : vector<2x16xf32>, vector<16x16xf32>, vector<2x16xf32> -> vector<2x16xf32>
    %cst_108 = arith.constant 9.99999968E-20 : f32
    %192 = vector.broadcast %cst_108 : f32 to vector<2x16xf32>
    %193 = arith.addf %191, %192 : vector<2x16xf32>
    %194 = math.log %193 : vector<2x16xf32>
    %c5_109 = arith.constant 5 : index
    %195 = memref.load %arg1[%c5_109] : memref<8xf32, #tpu.memory_space<smem>>
    %196 = math.log %176 : vector<2x16xf32>
    %197 = arith.addf %196, %194 : vector<2x16xf32>
    %cst_110 = arith.constant 0.0909090936 : f32
    %198 = vector.broadcast %cst_110 : f32 to vector<2x16xf32>
    %199 = arith.mulf %198, %197 : vector<2x16xf32>
    %200 = math.exp %199 : vector<2x16xf32>
    %201 = vector.broadcast %195 : f32 to vector<2x16xf32>
    %202 = arith.mulf %201, %200 : vector<2x16xf32>
    %203 = arith.addf %168, %202 : vector<2x16xf32>
    %cst_111 = arith.constant -0.909090936 : f32
    %204 = vector.broadcast %cst_111 : f32 to vector<2x16xf32>
    %205 = arith.mulf %204, %194 : vector<2x16xf32>
    %206 = math.exp %205 : vector<2x16xf32>
    %c5_112 = arith.constant 5 : index
    %c0_113 = arith.constant 0 : index
    %c0_114 = arith.constant 0 : index
    %207 = vector.load %arg7[%c5_112, %c0_113, %c0_114] : memref<8x2x16xf32, #tpu.memory_space<vmem>>, vector<1x2x16xf32>
    %208 = vector.shape_cast %207 : vector<1x2x16xf32> to vector<2x16xf32>
    %209 = vector.shape_cast %206 : vector<2x16xf32> to vector<1x2x16xf32>
    tpu.vector_store %arg7[%c5_112, %c0_113, %c0_114], %209 {strides = array<i32>} : memref<8x2x16xf32, #tpu.memory_space<vmem>>, vector<1x2x16xf32>,
    %c6 = arith.constant 6 : index
    %c0_115 = arith.constant 0 : index
    %c0_116 = arith.constant 0 : index
    %210 = vector.load %arg3[%c6, %c0_115, %c0_116] : memref<8x2x16xf32, #tpu.memory_space<vmem>>, vector<1x2x16xf32>
    %211 = vector.shape_cast %210 : vector<1x2x16xf32> to vector<2x16xf32>
    %c6_117 = arith.constant 6 : index
    %c0_118 = arith.constant 0 : index
    %c0_119 = arith.constant 0 : index
    %212 = vector.load %arg4[%c6_117, %c0_118, %c0_119] : memref<8x2x16xf32, #tpu.memory_space<vmem>>, vector<1x2x16xf32>
    %213 = vector.shape_cast %212 : vector<1x2x16xf32> to vector<2x16xf32>
    %cst_120 = arith.constant dense<0.000000e+00> : vector<2x16xf32>
    %214 = tpu.matmul %211, %0, %cst_120 {dimension_numbers = #tpu.dot_dimension_numbers<[1], [0], [0], [1], [0, 0, 1, 1], [], []>} : vector<2x16xf32>, vector<16x16xf32>, vector<2x16xf32> -> vector<2x16xf32>
    %215 = math.log %213 : vector<2x16xf32>
    %cst_121 = arith.constant 9.99999968E-20 : f32
    %216 = vector.broadcast %cst_121 : f32 to vector<2x16xf32>
    %217 = arith.addf %214, %216 : vector<2x16xf32>
    %218 = math.log %217 : vector<2x16xf32>
    %219 = arith.subf %215, %218 : vector<2x16xf32>
    %cst_122 = arith.constant 0.909090936 : f32
    %220 = vector.broadcast %cst_122 : f32 to vector<2x16xf32>
    %221 = arith.mulf %220, %219 : vector<2x16xf32>
    %222 = math.exp %221 : vector<2x16xf32>
    %c6_123 = arith.constant 6 : index
    %c0_124 = arith.constant 0 : index
    %c0_125 = arith.constant 0 : index
    %223 = vector.load %arg6[%c6_123, %c0_124, %c0_125] : memref<8x2x16xf32, #tpu.memory_space<vmem>>, vector<1x2x16xf32>
    %224 = vector.shape_cast %223 : vector<1x2x16xf32> to vector<2x16xf32>
    %225 = vector.shape_cast %222 : vector<2x16xf32> to vector<1x2x16xf32>
    tpu.vector_store %arg6[%c6_123, %c0_124, %c0_125], %225 {strides = array<i32>} : memref<8x2x16xf32, #tpu.memory_space<vmem>>, vector<1x2x16xf32>,
    %cst_126 = arith.constant dense<0.000000e+00> : vector<2x16xf32>
    %226 = tpu.matmul %222, %0, %cst_126 {dimension_numbers = #tpu.dot_dimension_numbers<[1], [0], [0], [1], [0, 0, 1, 1], [], []>} : vector<2x16xf32>, vector<16x16xf32>, vector<2x16xf32> -> vector<2x16xf32>
    %cst_127 = arith.constant 9.99999968E-20 : f32
    %227 = vector.broadcast %cst_127 : f32 to vector<2x16xf32>
    %228 = arith.addf %226, %227 : vector<2x16xf32>
    %229 = math.log %228 : vector<2x16xf32>
    %c6_128 = arith.constant 6 : index
    %230 = memref.load %arg1[%c6_128] : memref<8xf32, #tpu.memory_space<smem>>
    %231 = math.log %211 : vector<2x16xf32>
    %232 = arith.addf %231, %229 : vector<2x16xf32>
    %cst_129 = arith.constant 0.0909090936 : f32
    %233 = vector.broadcast %cst_129 : f32 to vector<2x16xf32>
    %234 = arith.mulf %233, %232 : vector<2x16xf32>
    %235 = math.exp %234 : vector<2x16xf32>
    %236 = vector.broadcast %230 : f32 to vector<2x16xf32>
    %237 = arith.mulf %236, %235 : vector<2x16xf32>
    %238 = arith.addf %203, %237 : vector<2x16xf32>
    %cst_130 = arith.constant -0.909090936 : f32
    %239 = vector.broadcast %cst_130 : f32 to vector<2x16xf32>
    %240 = arith.mulf %239, %229 : vector<2x16xf32>
    %241 = math.exp %240 : vector<2x16xf32>
    %c6_131 = arith.constant 6 : index
    %c0_132 = arith.constant 0 : index
    %c0_133 = arith.constant 0 : index
    %242 = vector.load %arg7[%c6_131, %c0_132, %c0_133] : memref<8x2x16xf32, #tpu.memory_space<vmem>>, vector<1x2x16xf32>
    %243 = vector.shape_cast %242 : vector<1x2x16xf32> to vector<2x16xf32>
    %244 = vector.shape_cast %241 : vector<2x16xf32> to vector<1x2x16xf32>
    tpu.vector_store %arg7[%c6_131, %c0_132, %c0_133], %244 {strides = array<i32>} : memref<8x2x16xf32, #tpu.memory_space<vmem>>, vector<1x2x16xf32>,
    %c7 = arith.constant 7 : index
    %c0_134 = arith.constant 0 : index
    %c0_135 = arith.constant 0 : index
    %245 = vector.load %arg3[%c7, %c0_134, %c0_135] : memref<8x2x16xf32, #tpu.memory_space<vmem>>, vector<1x2x16xf32>
    %246 = vector.shape_cast %245 : vector<1x2x16xf32> to vector<2x16xf32>
    %c7_136 = arith.constant 7 : index
    %c0_137 = arith.constant 0 : index
    %c0_138 = arith.constant 0 : index
    %247 = vector.load %arg4[%c7_136, %c0_137, %c0_138] : memref<8x2x16xf32, #tpu.memory_space<vmem>>, vector<1x2x16xf32>
    %248 = vector.shape_cast %247 : vector<1x2x16xf32> to vector<2x16xf32>
    %cst_139 = arith.constant dense<0.000000e+00> : vector<2x16xf32>
    %249 = tpu.matmul %246, %0, %cst_139 {dimension_numbers = #tpu.dot_dimension_numbers<[1], [0], [0], [1], [0, 0, 1, 1], [], []>} : vector<2x16xf32>, vector<16x16xf32>, vector<2x16xf32> -> vector<2x16xf32>
    %250 = math.log %248 : vector<2x16xf32>
    %cst_140 = arith.constant 9.99999968E-20 : f32
    %251 = vector.broadcast %cst_140 : f32 to vector<2x16xf32>
    %252 = arith.addf %249, %251 : vector<2x16xf32>
    %253 = math.log %252 : vector<2x16xf32>
    %254 = arith.subf %250, %253 : vector<2x16xf32>
    %cst_141 = arith.constant 0.909090936 : f32
    %255 = vector.broadcast %cst_141 : f32 to vector<2x16xf32>
    %256 = arith.mulf %255, %254 : vector<2x16xf32>
    %257 = math.exp %256 : vector<2x16xf32>
    %c7_142 = arith.constant 7 : index
    %c0_143 = arith.constant 0 : index
    %c0_144 = arith.constant 0 : index
    %258 = vector.load %arg6[%c7_142, %c0_143, %c0_144] : memref<8x2x16xf32, #tpu.memory_space<vmem>>, vector<1x2x16xf32>
    %259 = vector.shape_cast %258 : vector<1x2x16xf32> to vector<2x16xf32>
    %260 = vector.shape_cast %257 : vector<2x16xf32> to vector<1x2x16xf32>
    tpu.vector_store %arg6[%c7_142, %c0_143, %c0_144], %260 {strides = array<i32>} : memref<8x2x16xf32, #tpu.memory_space<vmem>>, vector<1x2x16xf32>,
    %cst_145 = arith.constant dense<0.000000e+00> : vector<2x16xf32>
    %261 = tpu.matmul %257, %0, %cst_145 {dimension_numbers = #tpu.dot_dimension_numbers<[1], [0], [0], [1], [0, 0, 1, 1], [], []>} : vector<2x16xf32>, vector<16x16xf32>, vector<2x16xf32> -> vector<2x16xf32>
    %cst_146 = arith.constant 9.99999968E-20 : f32
    %262 = vector.broadcast %cst_146 : f32 to vector<2x16xf32>
    %263 = arith.addf %261, %262 : vector<2x16xf32>
    %264 = math.log %263 : vector<2x16xf32>
    %c7_147 = arith.constant 7 : index
    %265 = memref.load %arg1[%c7_147] : memref<8xf32, #tpu.memory_space<smem>>
    %266 = math.log %246 : vector<2x16xf32>
    %267 = arith.addf %266, %264 : vector<2x16xf32>
    %cst_148 = arith.constant 0.0909090936 : f32
    %268 = vector.broadcast %cst_148 : f32 to vector<2x16xf32>
    %269 = arith.mulf %268, %267 : vector<2x16xf32>
    %270 = math.exp %269 : vector<2x16xf32>
    %271 = vector.broadcast %265 : f32 to vector<2x16xf32>
    %272 = arith.mulf %271, %270 : vector<2x16xf32>
    %273 = arith.addf %238, %272 : vector<2x16xf32>
    %cst_149 = arith.constant -0.909090936 : f32
    %274 = vector.broadcast %cst_149 : f32 to vector<2x16xf32>
    %275 = arith.mulf %274, %264 : vector<2x16xf32>
    %276 = math.exp %275 : vector<2x16xf32>
    %c7_150 = arith.constant 7 : index
    %c0_151 = arith.constant 0 : index
    %c0_152 = arith.constant 0 : index
    %277 = vector.load %arg7[%c7_150, %c0_151, %c0_152] : memref<8x2x16xf32, #tpu.memory_space<vmem>>, vector<1x2x16xf32>
    %278 = vector.shape_cast %277 : vector<1x2x16xf32> to vector<2x16xf32>
    %279 = vector.shape_cast %276 : vector<2x16xf32> to vector<1x2x16xf32>
    tpu.vector_store %arg7[%c7_150, %c0_151, %c0_152], %279 {strides = array<i32>} : memref<8x2x16xf32, #tpu.memory_space<vmem>>, vector<1x2x16xf32>,
    %280 = math.log %273 : vector<2x16xf32>
    %cst_153 = arith.constant 1.100000e+01 : f32
    %281 = vector.broadcast %cst_153 : f32 to vector<2x16xf32>
    %282 = arith.mulf %280, %281 : vector<2x16xf32>
    %283 = math.exp %282 : vector<2x16xf32>
    %c0_154 = arith.constant 0 : index
    %c0_155 = arith.constant 0 : index
    %284 = vector.load %arg5[%c0_154, %c0_155] : memref<2x16xf32, #tpu.memory_space<vmem>>, vector<2x16xf32>
    tpu.vector_store %arg5[%c0_154, %c0_155], %283 {strides = array<i32>} : memref<2x16xf32, #tpu.memory_space<vmem>>, vector<2x16xf32>,
    %cst_156 = arith.constant 0.909090936 : f32
    %285 = vector.broadcast %cst_156 : f32 to vector<2x16xf32>
    %286 = arith.mulf %285, %282 : vector<2x16xf32>
    %287 = math.exp %286 : vector<2x16xf32>
    %c0_157 = arith.constant 0 : index
    %c0_158 = arith.constant 0 : index
    %c0_159 = arith.constant 0 : index
    %288 = vector.load %arg7[%c0_157, %c0_158, %c0_159] : memref<8x2x16xf32, #tpu.memory_space<vmem>>, vector<1x2x16xf32>
    %289 = vector.shape_cast %288 : vector<1x2x16xf32> to vector<2x16xf32>
    %290 = arith.mulf %287, %289 : vector<2x16xf32>
    %c0_160 = arith.constant 0 : index
    %c0_161 = arith.constant 0 : index
    %c0_162 = arith.constant 0 : index
    %291 = vector.load %arg7[%c0_160, %c0_161, %c0_162] : memref<8x2x16xf32, #tpu.memory_space<vmem>>, vector<1x2x16xf32>
    %292 = vector.shape_cast %291 : vector<1x2x16xf32> to vector<2x16xf32>
    %293 = vector.shape_cast %290 : vector<2x16xf32> to vector<1x2x16xf32>
    tpu.vector_store %arg7[%c0_160, %c0_161, %c0_162], %293 {strides = array<i32>} : memref<8x2x16xf32, #tpu.memory_space<vmem>>, vector<1x2x16xf32>,
    %c1_163 = arith.constant 1 : index
    %c0_164 = arith.constant 0 : index
    %c0_165 = arith.constant 0 : index
    %294 = vector.load %arg7[%c1_163, %c0_164, %c0_165] : memref<8x2x16xf32, #tpu.memory_space<vmem>>, vector<1x2x16xf32>
    %295 = vector.shape_cast %294 : vector<1x2x16xf32> to vector<2x16xf32>
    %296 = arith.mulf %287, %295 : vector<2x16xf32>
    %c1_166 = arith.constant 1 : index
    %c0_167 = arith.constant 0 : index
    %c0_168 = arith.constant 0 : index
    %297 = vector.load %arg7[%c1_166, %c0_167, %c0_168] : memref<8x2x16xf32, #tpu.memory_space<vmem>>, vector<1x2x16xf32>
    %298 = vector.shape_cast %297 : vector<1x2x16xf32> to vector<2x16xf32>
    %299 = vector.shape_cast %296 : vector<2x16xf32> to vector<1x2x16xf32>
    tpu.vector_store %arg7[%c1_166, %c0_167, %c0_168], %299 {strides = array<i32>} : memref<8x2x16xf32, #tpu.memory_space<vmem>>, vector<1x2x16xf32>,
    %c2_169 = arith.constant 2 : index
    %c0_170 = arith.constant 0 : index
    %c0_171 = arith.constant 0 : index
    %300 = vector.load %arg7[%c2_169, %c0_170, %c0_171] : memref<8x2x16xf32, #tpu.memory_space<vmem>>, vector<1x2x16xf32>
    %301 = vector.shape_cast %300 : vector<1x2x16xf32> to vector<2x16xf32>
    %302 = arith.mulf %287, %301 : vector<2x16xf32>
    %c2_172 = arith.constant 2 : index
    %c0_173 = arith.constant 0 : index
    %c0_174 = arith.constant 0 : index
    %303 = vector.load %arg7[%c2_172, %c0_173, %c0_174] : memref<8x2x16xf32, #tpu.memory_space<vmem>>, vector<1x2x16xf32>
    %304 = vector.shape_cast %303 : vector<1x2x16xf32> to vector<2x16xf32>
    %305 = vector.shape_cast %302 : vector<2x16xf32> to vector<1x2x16xf32>
    tpu.vector_store %arg7[%c2_172, %c0_173, %c0_174], %305 {strides = array<i32>} : memref<8x2x16xf32, #tpu.memory_space<vmem>>, vector<1x2x16xf32>,
    %c3_175 = arith.constant 3 : index
    %c0_176 = arith.constant 0 : index
    %c0_177 = arith.constant 0 : index
    %306 = vector.load %arg7[%c3_175, %c0_176, %c0_177] : memref<8x2x16xf32, #tpu.memory_space<vmem>>, vector<1x2x16xf32>
    %307 = vector.shape_cast %306 : vector<1x2x16xf32> to vector<2x16xf32>
    %308 = arith.mulf %287, %307 : vector<2x16xf32>
    %c3_178 = arith.constant 3 : index
    %c0_179 = arith.constant 0 : index
    %c0_180 = arith.constant 0 : index
    %309 = vector.load %arg7[%c3_178, %c0_179, %c0_180] : memref<8x2x16xf32, #tpu.memory_space<vmem>>, vector<1x2x16xf32>
    %310 = vector.shape_cast %309 : vector<1x2x16xf32> to vector<2x16xf32>
    %311 = vector.shape_cast %308 : vector<2x16xf32> to vector<1x2x16xf32>
    tpu.vector_store %arg7[%c3_178, %c0_179, %c0_180], %311 {strides = array<i32>} : memref<8x2x16xf32, #tpu.memory_space<vmem>>, vector<1x2x16xf32>,
    %c4_181 = arith.constant 4 : index
    %c0_182 = arith.constant 0 : index
    %c0_183 = arith.constant 0 : index
    %312 = vector.load %arg7[%c4_181, %c0_182, %c0_183] : memref<8x2x16xf32, #tpu.memory_space<vmem>>, vector<1x2x16xf32>
    %313 = vector.shape_cast %312 : vector<1x2x16xf32> to vector<2x16xf32>
    %314 = arith.mulf %287, %313 : vector<2x16xf32>
    %c4_184 = arith.constant 4 : index
    %c0_185 = arith.constant 0 : index
    %c0_186 = arith.constant 0 : index
    %315 = vector.load %arg7[%c4_184, %c0_185, %c0_186] : memref<8x2x16xf32, #tpu.memory_space<vmem>>, vector<1x2x16xf32>
    %316 = vector.shape_cast %315 : vector<1x2x16xf32> to vector<2x16xf32>
    %317 = vector.shape_cast %314 : vector<2x16xf32> to vector<1x2x16xf32>
    tpu.vector_store %arg7[%c4_184, %c0_185, %c0_186], %317 {strides = array<i32>} : memref<8x2x16xf32, #tpu.memory_space<vmem>>, vector<1x2x16xf32>,
    %c5_187 = arith.constant 5 : index
    %c0_188 = arith.constant 0 : index
    %c0_189 = arith.constant 0 : index
    %318 = vector.load %arg7[%c5_187, %c0_188, %c0_189] : memref<8x2x16xf32, #tpu.memory_space<vmem>>, vector<1x2x16xf32>
    %319 = vector.shape_cast %318 : vector<1x2x16xf32> to vector<2x16xf32>
    %320 = arith.mulf %287, %319 : vector<2x16xf32>
    %c5_190 = arith.constant 5 : index
    %c0_191 = arith.constant 0 : index
    %c0_192 = arith.constant 0 : index
    %321 = vector.load %arg7[%c5_190, %c0_191, %c0_192] : memref<8x2x16xf32, #tpu.memory_space<vmem>>, vector<1x2x16xf32>
    %322 = vector.shape_cast %321 : vector<1x2x16xf32> to vector<2x16xf32>
    %323 = vector.shape_cast %320 : vector<2x16xf32> to vector<1x2x16xf32>
    tpu.vector_store %arg7[%c5_190, %c0_191, %c0_192], %323 {strides = array<i32>} : memref<8x2x16xf32, #tpu.memory_space<vmem>>, vector<1x2x16xf32>,
    %c6_193 = arith.constant 6 : index
    %c0_194 = arith.constant 0 : index
    %c0_195 = arith.constant 0 : index
    %324 = vector.load %arg7[%c6_193, %c0_194, %c0_195] : memref<8x2x16xf32, #tpu.memory_space<vmem>>, vector<1x2x16xf32>
    %325 = vector.shape_cast %324 : vector<1x2x16xf32> to vector<2x16xf32>
    %326 = arith.mulf %287, %325 : vector<2x16xf32>
    %c6_196 = arith.constant 6 : index
    %c0_197 = arith.constant 0 : index
    %c0_198 = arith.constant 0 : index
    %327 = vector.load %arg7[%c6_196, %c0_197, %c0_198] : memref<8x2x16xf32, #tpu.memory_space<vmem>>, vector<1x2x16xf32>
    %328 = vector.shape_cast %327 : vector<1x2x16xf32> to vector<2x16xf32>
    %329 = vector.shape_cast %326 : vector<2x16xf32> to vector<1x2x16xf32>
    tpu.vector_store %arg7[%c6_196, %c0_197, %c0_198], %329 {strides = array<i32>} : memref<8x2x16xf32, #tpu.memory_space<vmem>>, vector<1x2x16xf32>,
    %c7_199 = arith.constant 7 : index
    %c0_200 = arith.constant 0 : index
    %c0_201 = arith.constant 0 : index
    %330 = vector.load %arg7[%c7_199, %c0_200, %c0_201] : memref<8x2x16xf32, #tpu.memory_space<vmem>>, vector<1x2x16xf32>
    %331 = vector.shape_cast %330 : vector<1x2x16xf32> to vector<2x16xf32>
    %332 = arith.mulf %287, %331 : vector<2x16xf32>
    %c7_202 = arith.constant 7 : index
    %c0_203 = arith.constant 0 : index
    %c0_204 = arith.constant 0 : index
    %333 = vector.load %arg7[%c7_202, %c0_203, %c0_204] : memref<8x2x16xf32, #tpu.memory_space<vmem>>, vector<1x2x16xf32>
    %334 = vector.shape_cast %333 : vector<1x2x16xf32> to vector<2x16xf32>
    %335 = vector.shape_cast %332 : vector<2x16xf32> to vector<1x2x16xf32>
    tpu.vector_store %arg7[%c7_202, %c0_203, %c0_204], %335 {strides = array<i32>} : memref<8x2x16xf32, #tpu.memory_space<vmem>>, vector<1x2x16xf32>,
    return
  }
  func.func @transform_0(%arg0: i32) -> i32 {
    %c0_i32 = arith.constant 0 : i32
    %c0_i32_0 = arith.constant 0 : i32
    return %c0_i32 : i32
  }
  func.func @transform_1(%arg0: i32) -> (i32, i32) {
    %c0_i32 = arith.constant 0 : i32
    %c0_i32_0 = arith.constant 0 : i32
    %c0_i32_1 = arith.constant 0 : i32
    return %c0_i32, %c0_i32_0 : i32, i32
  }
  func.func @transform_2(%arg0: i32) -> (i32, i32, i32) {
    %c0_i32 = arith.constant 0 : i32
    %c0_i32_0 = arith.constant 0 : i32
    %c0_i32_1 = arith.constant 0 : i32
    return %c0_i32, %arg0, %c0_i32_0 : i32, i32, i32
  }
  func.func @transform_3(%arg0: i32) -> (i32, i32, i32) {
    %c0_i32 = arith.constant 0 : i32
    %c0_i32_0 = arith.constant 0 : i32
    %c0_i32_1 = arith.constant 0 : i32
    return %c0_i32, %arg0, %c0_i32_0 : i32, i32, i32
  }
  func.func @transform_4(%arg0: i32) -> (i32, i32) {
    %c0_i32 = arith.constant 0 : i32
    %c0_i32_0 = arith.constant 0 : i32
    return %arg0, %c0_i32 : i32, i32
  }
  func.func @transform_5(%arg0: i32) -> (i32, i32, i32) {
    %c0_i32 = arith.constant 0 : i32
    %c0_i32_0 = arith.constant 0 : i32
    %c0_i32_1 = arith.constant 0 : i32
    return %c0_i32, %arg0, %c0_i32_0 : i32, i32, i32
  }
  func.func @transform_6(%arg0: i32) -> (i32, i32, i32) {
    %c0_i32 = arith.constant 0 : i32
    %c0_i32_0 = arith.constant 0 : i32
    %c0_i32_1 = arith.constant 0 : i32
    return %c0_i32, %arg0, %c0_i32_0 : i32, i32, i32
  }
}

module attributes {stable_mosaic.version = 11 : i64} {
  func.func @_wbi_kernel(%arg0: i32, %arg1: memref<8xf32, #tpu.memory_space<smem>>, %arg2: memref<16x16xf32, #tpu.memory_space<vmem>>, %arg3: memref<8x2x16xf32, #tpu.memory_space<vmem>>, %arg4: memref<8x2x16xf32, #tpu.memory_space<vmem>>, %arg5: memref<2x16xf32, #tpu.memory_space<vmem>>, %arg6: memref<8x2x16xf32, #tpu.memory_space<vmem>>, %arg7: memref<8x2x16xf32, #tpu.memory_space<vmem>>) attributes {dimension_semantics = [#tpu.dimension_semantics<parallel>], iteration_bounds = array<i64: 1>, scalar_prefetch = 0 : i64, scratch_operands = 0 : i64, tpu.core_type = #tpu.core_type<tc>, window_params = [{transform_indices = @transform_0, window_bounds = array<i64: 8>}, {pipeline_mode = #tpu.pipeline_mode<synchronous>, transform_indices = @transform_1, window_bounds = array<i64: 16, 16>}, {transform_indices = @transform_2, window_bounds = array<i64: 8, 2, 16>}, {transform_indices = @transform_3, window_bounds = array<i64: 8, 2, 16>}, {transform_indices = @transform_4, window_bounds = array<i64: 2, 16>}, {transform_indices = @transform_5, window_bounds = array<i64: 8, 2, 16>}, {transform_indices = @transform_6, window_bounds = array<i64: 8, 2, 16>}]} {
    %c0 = arith.constant 0 : index
    %c0_0 = arith.constant 0 : index
    %0 = vector.load %arg2[%c0, %c0_0] : memref<16x16xf32, #tpu.memory_space<vmem>>, vector<16x16xf32>
    %c0_1 = arith.constant 0 : index
    %c0_2 = arith.constant 0 : index
    %c0_3 = arith.constant 0 : index
    %1 = vector.load %arg3[%c0_1, %c0_2, %c0_3] : memref<8x2x16xf32, #tpu.memory_space<vmem>>, vector<1x2x16xf32>
    %2 = vector.shape_cast %1 : vector<1x2x16xf32> to vector<2x16xf32>
    %c0_4 = arith.constant 0 : index
    %c0_5 = arith.constant 0 : index
    %c0_6 = arith.constant 0 : index
    %3 = vector.load %arg4[%c0_4, %c0_5, %c0_6] : memref<8x2x16xf32, #tpu.memory_space<vmem>>, vector<1x2x16xf32>
    %4 = vector.shape_cast %3 : vector<1x2x16xf32> to vector<2x16xf32>
    %cst = arith.constant dense<0.000000e+00> : vector<2x16xf32>
    %5 = tpu.matmul %2, %0, %cst {dimension_numbers = #tpu.dot_dimension_numbers<[1], [0], [0], [1], [0, 0, 1, 1], [], []>} : vector<2x16xf32>, vector<16x16xf32>, vector<2x16xf32> -> vector<2x16xf32>
    %6 = math.log %4 : vector<2x16xf32>
    %cst_7 = arith.constant 9.99999968E-20 : f32
    %7 = vector.broadcast %cst_7 : f32 to vector<2x16xf32>
    %8 = arith.addf %5, %7 : vector<2x16xf32>
    %9 = math.log %8 : vector<2x16xf32>
    %10 = arith.subf %6, %9 : vector<2x16xf32>
    %cst_8 = arith.constant 0.909090936 : f32
    %11 = vector.broadcast %cst_8 : f32 to vector<2x16xf32>
    %12 = arith.mulf %11, %10 : vector<2x16xf32>
    %13 = math.exp %12 : vector<2x16xf32>
    %c0_9 = arith.constant 0 : index
    %c0_10 = arith.constant 0 : index
    %c0_11 = arith.constant 0 : index
    %14 = vector.load %arg6[%c0_9, %c0_10, %c0_11] : memref<8x2x16xf32, #tpu.memory_space<vmem>>, vector<1x2x16xf32>
    %15 = vector.shape_cast %14 : vector<1x2x16xf32> to vector<2x16xf32>
    %16 = vector.shape_cast %13 : vector<2x16xf32> to vector<1x2x16xf32>
    tpu.vector_store %arg6[%c0_9, %c0_10, %c0_11], %16 {strides = array<i32>} : memref<8x2x16xf32, #tpu.memory_space<vmem>>, vector<1x2x16xf32>,
    %cst_12 = arith.constant dense<0.000000e+00> : vector<2x16xf32>
    %17 = tpu.matmul %13, %0, %cst_12 {dimension_numbers = #tpu.dot_dimension_numbers<[1], [0], [0], [1], [0, 0, 1, 1], [], []>} : vector<2x16xf32>, vector<16x16xf32>, vector<2x16xf32> -> vector<2x16xf32>
    %cst_13 = arith.constant 9.99999968E-20 : f32
    %18 = vector.broadcast %cst_13 : f32 to vector<2x16xf32>
    %19 = arith.addf %17, %18 : vector<2x16xf32>
    %20 = math.log %19 : vector<2x16xf32>
    %c0_14 = arith.constant 0 : index
    %21 = memref.load %arg1[%c0_14] : memref<8xf32, #tpu.memory_space<smem>>
    %22 = math.log %2 : vector<2x16xf32>
    %23 = arith.addf %22, %20 : vector<2x16xf32>
    %cst_15 = arith.constant 0.0909090936 : f32
    %24 = vector.broadcast %cst_15 : f32 to vector<2x16xf32>
    %25 = arith.mulf %24, %23 : vector<2x16xf32>
    %26 = math.exp %25 : vector<2x16xf32>
    %27 = vector.broadcast %21 : f32 to vector<2x16xf32>
    %28 = arith.mulf %27, %26 : vector<2x16xf32>
    %cst_16 = arith.constant -0.909090936 : f32
    %29 = vector.broadcast %cst_16 : f32 to vector<2x16xf32>
    %30 = arith.mulf %29, %20 : vector<2x16xf32>
    %31 = math.exp %30 : vector<2x16xf32>
    %c0_17 = arith.constant 0 : index
    %c0_18 = arith.constant 0 : index
    %c0_19 = arith.constant 0 : index
    %32 = vector.load %arg7[%c0_17, %c0_18, %c0_19] : memref<8x2x16xf32, #tpu.memory_space<vmem>>, vector<1x2x16xf32>
    %33 = vector.shape_cast %32 : vector<1x2x16xf32> to vector<2x16xf32>
    %34 = vector.shape_cast %31 : vector<2x16xf32> to vector<1x2x16xf32>
    tpu.vector_store %arg7[%c0_17, %c0_18, %c0_19], %34 {strides = array<i32>} : memref<8x2x16xf32, #tpu.memory_space<vmem>>, vector<1x2x16xf32>,
    %c1 = arith.constant 1 : index
    %c0_20 = arith.constant 0 : index
    %c0_21 = arith.constant 0 : index
    %35 = vector.load %arg3[%c1, %c0_20, %c0_21] : memref<8x2x16xf32, #tpu.memory_space<vmem>>, vector<1x2x16xf32>
    %36 = vector.shape_cast %35 : vector<1x2x16xf32> to vector<2x16xf32>
    %c1_22 = arith.constant 1 : index
    %c0_23 = arith.constant 0 : index
    %c0_24 = arith.constant 0 : index
    %37 = vector.load %arg4[%c1_22, %c0_23, %c0_24] : memref<8x2x16xf32, #tpu.memory_space<vmem>>, vector<1x2x16xf32>
    %38 = vector.shape_cast %37 : vector<1x2x16xf32> to vector<2x16xf32>
    %cst_25 = arith.constant dense<0.000000e+00> : vector<2x16xf32>
    %39 = tpu.matmul %36, %0, %cst_25 {dimension_numbers = #tpu.dot_dimension_numbers<[1], [0], [0], [1], [0, 0, 1, 1], [], []>} : vector<2x16xf32>, vector<16x16xf32>, vector<2x16xf32> -> vector<2x16xf32>
    %40 = math.log %38 : vector<2x16xf32>
    %cst_26 = arith.constant 9.99999968E-20 : f32
    %41 = vector.broadcast %cst_26 : f32 to vector<2x16xf32>
    %42 = arith.addf %39, %41 : vector<2x16xf32>
    %43 = math.log %42 : vector<2x16xf32>
    %44 = arith.subf %40, %43 : vector<2x16xf32>
    %cst_27 = arith.constant 0.909090936 : f32
    %45 = vector.broadcast %cst_27 : f32 to vector<2x16xf32>
    %46 = arith.mulf %45, %44 : vector<2x16xf32>
    %47 = math.exp %46 : vector<2x16xf32>
    %c1_28 = arith.constant 1 : index
    %c0_29 = arith.constant 0 : index
    %c0_30 = arith.constant 0 : index
    %48 = vector.load %arg6[%c1_28, %c0_29, %c0_30] : memref<8x2x16xf32, #tpu.memory_space<vmem>>, vector<1x2x16xf32>
    %49 = vector.shape_cast %48 : vector<1x2x16xf32> to vector<2x16xf32>
    %50 = vector.shape_cast %47 : vector<2x16xf32> to vector<1x2x16xf32>
    tpu.vector_store %arg6[%c1_28, %c0_29, %c0_30], %50 {strides = array<i32>} : memref<8x2x16xf32, #tpu.memory_space<vmem>>, vector<1x2x16xf32>,
    %cst_31 = arith.constant dense<0.000000e+00> : vector<2x16xf32>
    %51 = tpu.matmul %47, %0, %cst_31 {dimension_numbers = #tpu.dot_dimension_numbers<[1], [0], [0], [1], [0, 0, 1, 1], [], []>} : vector<2x16xf32>, vector<16x16xf32>, vector<2x16xf32> -> vector<2x16xf32>
    %cst_32 = arith.constant 9.99999968E-20 : f32
    %52 = vector.broadcast %cst_32 : f32 to vector<2x16xf32>
    %53 = arith.addf %51, %52 : vector<2x16xf32>
    %54 = math.log %53 : vector<2x16xf32>
    %c1_33 = arith.constant 1 : index
    %55 = memref.load %arg1[%c1_33] : memref<8xf32, #tpu.memory_space<smem>>
    %56 = math.log %36 : vector<2x16xf32>
    %57 = arith.addf %56, %54 : vector<2x16xf32>
    %cst_34 = arith.constant 0.0909090936 : f32
    %58 = vector.broadcast %cst_34 : f32 to vector<2x16xf32>
    %59 = arith.mulf %58, %57 : vector<2x16xf32>
    %60 = math.exp %59 : vector<2x16xf32>
    %61 = vector.broadcast %55 : f32 to vector<2x16xf32>
    %62 = arith.mulf %61, %60 : vector<2x16xf32>
    %63 = arith.addf %28, %62 : vector<2x16xf32>
    %cst_35 = arith.constant -0.909090936 : f32
    %64 = vector.broadcast %cst_35 : f32 to vector<2x16xf32>
    %65 = arith.mulf %64, %54 : vector<2x16xf32>
    %66 = math.exp %65 : vector<2x16xf32>
    %c1_36 = arith.constant 1 : index
    %c0_37 = arith.constant 0 : index
    %c0_38 = arith.constant 0 : index
    %67 = vector.load %arg7[%c1_36, %c0_37, %c0_38] : memref<8x2x16xf32, #tpu.memory_space<vmem>>, vector<1x2x16xf32>
    %68 = vector.shape_cast %67 : vector<1x2x16xf32> to vector<2x16xf32>
    %69 = vector.shape_cast %66 : vector<2x16xf32> to vector<1x2x16xf32>
    tpu.vector_store %arg7[%c1_36, %c0_37, %c0_38], %69 {strides = array<i32>} : memref<8x2x16xf32, #tpu.memory_space<vmem>>, vector<1x2x16xf32>,
    %c2 = arith.constant 2 : index
    %c0_39 = arith.constant 0 : index
    %c0_40 = arith.constant 0 : index
    %70 = vector.load %arg3[%c2, %c0_39, %c0_40] : memref<8x2x16xf32, #tpu.memory_space<vmem>>, vector<1x2x16xf32>
    %71 = vector.shape_cast %70 : vector<1x2x16xf32> to vector<2x16xf32>
    %c2_41 = arith.constant 2 : index
    %c0_42 = arith.constant 0 : index
    %c0_43 = arith.constant 0 : index
    %72 = vector.load %arg4[%c2_41, %c0_42, %c0_43] : memref<8x2x16xf32, #tpu.memory_space<vmem>>, vector<1x2x16xf32>
    %73 = vector.shape_cast %72 : vector<1x2x16xf32> to vector<2x16xf32>
    %cst_44 = arith.constant dense<0.000000e+00> : vector<2x16xf32>
    %74 = tpu.matmul %71, %0, %cst_44 {dimension_numbers = #tpu.dot_dimension_numbers<[1], [0], [0], [1], [0, 0, 1, 1], [], []>} : vector<2x16xf32>, vector<16x16xf32>, vector<2x16xf32> -> vector<2x16xf32>
    %75 = math.log %73 : vector<2x16xf32>
    %cst_45 = arith.constant 9.99999968E-20 : f32
    %76 = vector.broadcast %cst_45 : f32 to vector<2x16xf32>
    %77 = arith.addf %74, %76 : vector<2x16xf32>
    %78 = math.log %77 : vector<2x16xf32>
    %79 = arith.subf %75, %78 : vector<2x16xf32>
    %cst_46 = arith.constant 0.909090936 : f32
    %80 = vector.broadcast %cst_46 : f32 to vector<2x16xf32>
    %81 = arith.mulf %80, %79 : vector<2x16xf32>
    %82 = math.exp %81 : vector<2x16xf32>
    %c2_47 = arith.constant 2 : index
    %c0_48 = arith.constant 0 : index
    %c0_49 = arith.constant 0 : index
    %83 = vector.load %arg6[%c2_47, %c0_48, %c0_49] : memref<8x2x16xf32, #tpu.memory_space<vmem>>, vector<1x2x16xf32>
    %84 = vector.shape_cast %83 : vector<1x2x16xf32> to vector<2x16xf32>
    %85 = vector.shape_cast %82 : vector<2x16xf32> to vector<1x2x16xf32>
    tpu.vector_store %arg6[%c2_47, %c0_48, %c0_49], %85 {strides = array<i32>} : memref<8x2x16xf32, #tpu.memory_space<vmem>>, vector<1x2x16xf32>,
    %cst_50 = arith.constant dense<0.000000e+00> : vector<2x16xf32>
    %86 = tpu.matmul %82, %0, %cst_50 {dimension_numbers = #tpu.dot_dimension_numbers<[1], [0], [0], [1], [0, 0, 1, 1], [], []>} : vector<2x16xf32>, vector<16x16xf32>, vector<2x16xf32> -> vector<2x16xf32>
    %cst_51 = arith.constant 9.99999968E-20 : f32
    %87 = vector.broadcast %cst_51 : f32 to vector<2x16xf32>
    %88 = arith.addf %86, %87 : vector<2x16xf32>
    %89 = math.log %88 : vector<2x16xf32>
    %c2_52 = arith.constant 2 : index
    %90 = memref.load %arg1[%c2_52] : memref<8xf32, #tpu.memory_space<smem>>
    %91 = math.log %71 : vector<2x16xf32>
    %92 = arith.addf %91, %89 : vector<2x16xf32>
    %cst_53 = arith.constant 0.0909090936 : f32
    %93 = vector.broadcast %cst_53 : f32 to vector<2x16xf32>
    %94 = arith.mulf %93, %92 : vector<2x16xf32>
    %95 = math.exp %94 : vector<2x16xf32>
    %96 = vector.broadcast %90 : f32 to vector<2x16xf32>
    %97 = arith.mulf %96, %95 : vector<2x16xf32>
    %98 = arith.addf %63, %97 : vector<2x16xf32>
    %cst_54 = arith.constant -0.909090936 : f32
    %99 = vector.broadcast %cst_54 : f32 to vector<2x16xf32>
    %100 = arith.mulf %99, %89 : vector<2x16xf32>
    %101 = math.exp %100 : vector<2x16xf32>
    %c2_55 = arith.constant 2 : index
    %c0_56 = arith.constant 0 : index
    %c0_57 = arith.constant 0 : index
    %102 = vector.load %arg7[%c2_55, %c0_56, %c0_57] : memref<8x2x16xf32, #tpu.memory_space<vmem>>, vector<1x2x16xf32>
    %103 = vector.shape_cast %102 : vector<1x2x16xf32> to vector<2x16xf32>
    %104 = vector.shape_cast %101 : vector<2x16xf32> to vector<1x2x16xf32>
    tpu.vector_store %arg7[%c2_55, %c0_56, %c0_57], %104 {strides = array<i32>} : memref<8x2x16xf32, #tpu.memory_space<vmem>>, vector<1x2x16xf32>,
    %c3 = arith.constant 3 : index
    %c0_58 = arith.constant 0 : index
    %c0_59 = arith.constant 0 : index
    %105 = vector.load %arg3[%c3, %c0_58, %c0_59] : memref<8x2x16xf32, #tpu.memory_space<vmem>>, vector<1x2x16xf32>
    %106 = vector.shape_cast %105 : vector<1x2x16xf32> to vector<2x16xf32>
    %c3_60 = arith.constant 3 : index
    %c0_61 = arith.constant 0 : index
    %c0_62 = arith.constant 0 : index
    %107 = vector.load %arg4[%c3_60, %c0_61, %c0_62] : memref<8x2x16xf32, #tpu.memory_space<vmem>>, vector<1x2x16xf32>
    %108 = vector.shape_cast %107 : vector<1x2x16xf32> to vector<2x16xf32>
    %cst_63 = arith.constant dense<0.000000e+00> : vector<2x16xf32>
    %109 = tpu.matmul %106, %0, %cst_63 {dimension_numbers = #tpu.dot_dimension_numbers<[1], [0], [0], [1], [0, 0, 1, 1], [], []>} : vector<2x16xf32>, vector<16x16xf32>, vector<2x16xf32> -> vector<2x16xf32>
    %110 = math.log %108 : vector<2x16xf32>
    %cst_64 = arith.constant 9.99999968E-20 : f32
    %111 = vector.broadcast %cst_64 : f32 to vector<2x16xf32>
    %112 = arith.addf %109, %111 : vector<2x16xf32>
    %113 = math.log %112 : vector<2x16xf32>
    %114 = arith.subf %110, %113 : vector<2x16xf32>
    %cst_65 = arith.constant 0.909090936 : f32
    %115 = vector.broadcast %cst_65 : f32 to vector<2x16xf32>
    %116 = arith.mulf %115, %114 : vector<2x16xf32>
    %117 = math.exp %116 : vector<2x16xf32>
    %c3_66 = arith.constant 3 : index
    %c0_67 = arith.constant 0 : index
    %c0_68 = arith.constant 0 : index
    %118 = vector.load %arg6[%c3_66, %c0_67, %c0_68] : memref<8x2x16xf32, #tpu.memory_space<vmem>>, vector<1x2x16xf32>
    %119 = vector.shape_cast %118 : vector<1x2x16xf32> to vector<2x16xf32>
    %120 = vector.shape_cast %117 : vector<2x16xf32> to vector<1x2x16xf32>
    tpu.vector_store %arg6[%c3_66, %c0_67, %c0_68], %120 {strides = array<i32>} : memref<8x2x16xf32, #tpu.memory_space<vmem>>, vector<1x2x16xf32>,
    %cst_69 = arith.constant dense<0.000000e+00> : vector<2x16xf32>
    %121 = tpu.matmul %117, %0, %cst_69 {dimension_numbers = #tpu.dot_dimension_numbers<[1], [0], [0], [1], [0, 0, 1, 1], [], []>} : vector<2x16xf32>, vector<16x16xf32>, vector<2x16xf32> -> vector<2x16xf32>
    %cst_70 = arith.constant 9.99999968E-20 : f32
    %122 = vector.broadcast %cst_70 : f32 to vector<2x16xf32>
    %123 = arith.addf %121, %122 : vector<2x16xf32>
    %124 = math.log %123 : vector<2x16xf32>
    %c3_71 = arith.constant 3 : index
    %125 = memref.load %arg1[%c3_71] : memref<8xf32, #tpu.memory_space<smem>>
    %126 = math.log %106 : vector<2x16xf32>
    %127 = arith.addf %126, %124 : vector<2x16xf32>
    %cst_72 = arith.constant 0.0909090936 : f32
    %128 = vector.broadcast %cst_72 : f32 to vector<2x16xf32>
    %129 = arith.mulf %128, %127 : vector<2x16xf32>
    %130 = math.exp %129 : vector<2x16xf32>
    %131 = vector.broadcast %125 : f32 to vector<2x16xf32>
    %132 = arith.mulf %131, %130 : vector<2x16xf32>
    %133 = arith.addf %98, %132 : vector<2x16xf32>
    %cst_73 = arith.constant -0.909090936 : f32
    %134 = vector.broadcast %cst_73 : f32 to vector<2x16xf32>
    %135 = arith.mulf %134, %124 : vector<2x16xf32>
    %136 = math.exp %135 : vector<2x16xf32>
    %c3_74 = arith.constant 3 : index
    %c0_75 = arith.constant 0 : index
    %c0_76 = arith.constant 0 : index
    %137 = vector.load %arg7[%c3_74, %c0_75, %c0_76] : memref<8x2x16xf32, #tpu.memory_space<vmem>>, vector<1x2x16xf32>
    %138 = vector.shape_cast %137 : vector<1x2x16xf32> to vector<2x16xf32>
    %139 = vector.shape_cast %136 : vector<2x16xf32> to vector<1x2x16xf32>
    tpu.vector_store %arg7[%c3_74, %c0_75, %c0_76], %139 {strides = array<i32>} : memref<8x2x16xf32, #tpu.memory_space<vmem>>, vector<1x2x16xf32>,
    %c4 = arith.constant 4 : index
    %c0_77 = arith.constant 0 : index
    %c0_78 = arith.constant 0 : index
    %140 = vector.load %arg3[%c4, %c0_77, %c0_78] : memref<8x2x16xf32, #tpu.memory_space<vmem>>, vector<1x2x16xf32>
    %141 = vector.shape_cast %140 : vector<1x2x16xf32> to vector<2x16xf32>
    %c4_79 = arith.constant 4 : index
    %c0_80 = arith.constant 0 : index
    %c0_81 = arith.constant 0 : index
    %142 = vector.load %arg4[%c4_79, %c0_80, %c0_81] : memref<8x2x16xf32, #tpu.memory_space<vmem>>, vector<1x2x16xf32>
    %143 = vector.shape_cast %142 : vector<1x2x16xf32> to vector<2x16xf32>
    %cst_82 = arith.constant dense<0.000000e+00> : vector<2x16xf32>
    %144 = tpu.matmul %141, %0, %cst_82 {dimension_numbers = #tpu.dot_dimension_numbers<[1], [0], [0], [1], [0, 0, 1, 1], [], []>} : vector<2x16xf32>, vector<16x16xf32>, vector<2x16xf32> -> vector<2x16xf32>
    %145 = math.log %143 : vector<2x16xf32>
    %cst_83 = arith.constant 9.99999968E-20 : f32
    %146 = vector.broadcast %cst_83 : f32 to vector<2x16xf32>
    %147 = arith.addf %144, %146 : vector<2x16xf32>
    %148 = math.log %147 : vector<2x16xf32>
    %149 = arith.subf %145, %148 : vector<2x16xf32>
    %cst_84 = arith.constant 0.909090936 : f32
    %150 = vector.broadcast %cst_84 : f32 to vector<2x16xf32>
    %151 = arith.mulf %150, %149 : vector<2x16xf32>
    %152 = math.exp %151 : vector<2x16xf32>
    %c4_85 = arith.constant 4 : index
    %c0_86 = arith.constant 0 : index
    %c0_87 = arith.constant 0 : index
    %153 = vector.load %arg6[%c4_85, %c0_86, %c0_87] : memref<8x2x16xf32, #tpu.memory_space<vmem>>, vector<1x2x16xf32>
    %154 = vector.shape_cast %153 : vector<1x2x16xf32> to vector<2x16xf32>
    %155 = vector.shape_cast %152 : vector<2x16xf32> to vector<1x2x16xf32>
    tpu.vector_store %arg6[%c4_85, %c0_86, %c0_87], %155 {strides = array<i32>} : memref<8x2x16xf32, #tpu.memory_space<vmem>>, vector<1x2x16xf32>,
    %cst_88 = arith.constant dense<0.000000e+00> : vector<2x16xf32>
    %156 = tpu.matmul %152, %0, %cst_88 {dimension_numbers = #tpu.dot_dimension_numbers<[1], [0], [0], [1], [0, 0, 1, 1], [], []>} : vector<2x16xf32>, vector<16x16xf32>, vector<2x16xf32> -> vector<2x16xf32>
    %cst_89 = arith.constant 9.99999968E-20 : f32
    %157 = vector.broadcast %cst_89 : f32 to vector<2x16xf32>
    %158 = arith.addf %156, %157 : vector<2x16xf32>
    %159 = math.log %158 : vector<2x16xf32>
    %c4_90 = arith.constant 4 : index
    %160 = memref.load %arg1[%c4_90] : memref<8xf32, #tpu.memory_space<smem>>
    %161 = math.log %141 : vector<2x16xf32>
    %162 = arith.addf %161, %159 : vector<2x16xf32>
    %cst_91 = arith.constant 0.0909090936 : f32
    %163 = vector.broadcast %cst_91 : f32 to vector<2x16xf32>
    %164 = arith.mulf %163, %162 : vector<2x16xf32>
    %165 = math.exp %164 : vector<2x16xf32>
    %166 = vector.broadcast %160 : f32 to vector<2x16xf32>
    %167 = arith.mulf %166, %165 : vector<2x16xf32>
    %168 = arith.addf %133, %167 : vector<2x16xf32>
    %cst_92 = arith.constant -0.909090936 : f32
    %169 = vector.broadcast %cst_92 : f32 to vector<2x16xf32>
    %170 = arith.mulf %169, %159 : vector<2x16xf32>
    %171 = math.exp %170 : vector<2x16xf32>
    %c4_93 = arith.constant 4 : index
    %c0_94 = arith.constant 0 : index
    %c0_95 = arith.constant 0 : index
    %172 = vector.load %arg7[%c4_93, %c0_94, %c0_95] : memref<8x2x16xf32, #tpu.memory_space<vmem>>, vector<1x2x16xf32>
    %173 = vector.shape_cast %172 : vector<1x2x16xf32> to vector<2x16xf32>
    %174 = vector.shape_cast %171 : vector<2x16xf32> to vector<1x2x16xf32>
    tpu.vector_store %arg7[%c4_93, %c0_94, %c0_95], %174 {strides = array<i32>} : memref<8x2x16xf32, #tpu.memory_space<vmem>>, vector<1x2x16xf32>,
    %c5 = arith.constant 5 : index
    %c0_96 = arith.constant 0 : index
    %c0_97 = arith.constant 0 : index
    %175 = vector.load %arg3[%c5, %c0_96, %c0_97] : memref<8x2x16xf32, #tpu.memory_space<vmem>>, vector<1x2x16xf32>
    %176 = vector.shape_cast %175 : vector<1x2x16xf32> to vector<2x16xf32>
    %c5_98 = arith.constant 5 : index
    %c0_99 = arith.constant 0 : index
    %c0_100 = arith.constant 0 : index
    %177 = vector.load %arg4[%c5_98, %c0_99, %c0_100] : memref<8x2x16xf32, #tpu.memory_space<vmem>>, vector<1x2x16xf32>
    %178 = vector.shape_cast %177 : vector<1x2x16xf32> to vector<2x16xf32>
    %cst_101 = arith.constant dense<0.000000e+00> : vector<2x16xf32>
    %179 = tpu.matmul %176, %0, %cst_101 {dimension_numbers = #tpu.dot_dimension_numbers<[1], [0], [0], [1], [0, 0, 1, 1], [], []>} : vector<2x16xf32>, vector<16x16xf32>, vector<2x16xf32> -> vector<2x16xf32>
    %180 = math.log %178 : vector<2x16xf32>
    %cst_102 = arith.constant 9.99999968E-20 : f32
    %181 = vector.broadcast %cst_102 : f32 to vector<2x16xf32>
    %182 = arith.addf %179, %181 : vector<2x16xf32>
    %183 = math.log %182 : vector<2x16xf32>
    %184 = arith.subf %180, %183 : vector<2x16xf32>
    %cst_103 = arith.constant 0.909090936 : f32
    %185 = vector.broadcast %cst_103 : f32 to vector<2x16xf32>
    %186 = arith.mulf %185, %184 : vector<2x16xf32>
    %187 = math.exp %186 : vector<2x16xf32>
    %c5_104 = arith.constant 5 : index
    %c0_105 = arith.constant 0 : index
    %c0_106 = arith.constant 0 : index
    %188 = vector.load %arg6[%c5_104, %c0_105, %c0_106] : memref<8x2x16xf32, #tpu.memory_space<vmem>>, vector<1x2x16xf32>
    %189 = vector.shape_cast %188 : vector<1x2x16xf32> to vector<2x16xf32>
    %190 = vector.shape_cast %187 : vector<2x16xf32> to vector<1x2x16xf32>
    tpu.vector_store %arg6[%c5_104, %c0_105, %c0_106], %190 {strides = array<i32>} : memref<8x2x16xf32, #tpu.memory_space<vmem>>, vector<1x2x16xf32>,
    %cst_107 = arith.constant dense<0.000000e+00> : vector<2x16xf32>
    %191 = tpu.matmul %187, %0, %cst_107 {dimension_numbers = #tpu.dot_dimension_numbers<[1], [0], [0], [1], [0, 0, 1, 1], [], []>} : vector<2x16xf32>, vector<16x16xf32>, vector<2x16xf32> -> vector<2x16xf32>
    %cst_108 = arith.constant 9.99999968E-20 : f32
    %192 = vector.broadcast %cst_108 : f32 to vector<2x16xf32>
    %193 = arith.addf %191, %192 : vector<2x16xf32>
    %194 = math.log %193 : vector<2x16xf32>
    %c5_109 = arith.constant 5 : index
    %195 = memref.load %arg1[%c5_109] : memref<8xf32, #tpu.memory_space<smem>>
    %196 = math.log %176 : vector<2x16xf32>
    %197 = arith.addf %196, %194 : vector<2x16xf32>
    %cst_110 = arith.constant 0.0909090936 : f32
    %198 = vector.broadcast %cst_110 : f32 to vector<2x16xf32>
    %199 = arith.mulf %198, %197 : vector<2x16xf32>
    %200 = math.exp %199 : vector<2x16xf32>
    %201 = vector.broadcast %195 : f32 to vector<2x16xf32>
    %202 = arith.mulf %201, %200 : vector<2x16xf32>
    %203 = arith.addf %168, %202 : vector<2x16xf32>
    %cst_111 = arith.constant -0.909090936 : f32
    %204 = vector.broadcast %cst_111 : f32 to vector<2x16xf32>
    %205 = arith.mulf %204, %194 : vector<2x16xf32>
    %206 = math.exp %205 : vector<2x16xf32>
    %c5_112 = arith.constant 5 : index
    %c0_113 = arith.constant 0 : index
    %c0_114 = arith.constant 0 : index
    %207 = vector.load %arg7[%c5_112, %c0_113, %c0_114] : memref<8x2x16xf32, #tpu.memory_space<vmem>>, vector<1x2x16xf32>
    %208 = vector.shape_cast %207 : vector<1x2x16xf32> to vector<2x16xf32>
    %209 = vector.shape_cast %206 : vector<2x16xf32> to vector<1x2x16xf32>
    tpu.vector_store %arg7[%c5_112, %c0_113, %c0_114], %209 {strides = array<i32>} : memref<8x2x16xf32, #tpu.memory_space<vmem>>, vector<1x2x16xf32>,
    %c6 = arith.constant 6 : index
    %c0_115 = arith.constant 0 : index
    %c0_116 = arith.constant 0 : index
    %210 = vector.load %arg3[%c6, %c0_115, %c0_116] : memref<8x2x16xf32, #tpu.memory_space<vmem>>, vector<1x2x16xf32>
    %211 = vector.shape_cast %210 : vector<1x2x16xf32> to vector<2x16xf32>
    %c6_117 = arith.constant 6 : index
    %c0_118 = arith.constant 0 : index
    %c0_119 = arith.constant 0 : index
    %212 = vector.load %arg4[%c6_117, %c0_118, %c0_119] : memref<8x2x16xf32, #tpu.memory_space<vmem>>, vector<1x2x16xf32>
    %213 = vector.shape_cast %212 : vector<1x2x16xf32> to vector<2x16xf32>
    %cst_120 = arith.constant dense<0.000000e+00> : vector<2x16xf32>
    %214 = tpu.matmul %211, %0, %cst_120 {dimension_numbers = #tpu.dot_dimension_numbers<[1], [0], [0], [1], [0, 0, 1, 1], [], []>} : vector<2x16xf32>, vector<16x16xf32>, vector<2x16xf32> -> vector<2x16xf32>
    %215 = math.log %213 : vector<2x16xf32>
    %cst_121 = arith.constant 9.99999968E-20 : f32
    %216 = vector.broadcast %cst_121 : f32 to vector<2x16xf32>
    %217 = arith.addf %214, %216 : vector<2x16xf32>
    %218 = math.log %217 : vector<2x16xf32>
    %219 = arith.subf %215, %218 : vector<2x16xf32>
    %cst_122 = arith.constant 0.909090936 : f32
    %220 = vector.broadcast %cst_122 : f32 to vector<2x16xf32>
    %221 = arith.mulf %220, %219 : vector<2x16xf32>
    %222 = math.exp %221 : vector<2x16xf32>
    %c6_123 = arith.constant 6 : index
    %c0_124 = arith.constant 0 : index
    %c0_125 = arith.constant 0 : index
    %223 = vector.load %arg6[%c6_123, %c0_124, %c0_125] : memref<8x2x16xf32, #tpu.memory_space<vmem>>, vector<1x2x16xf32>
    %224 = vector.shape_cast %223 : vector<1x2x16xf32> to vector<2x16xf32>
    %225 = vector.shape_cast %222 : vector<2x16xf32> to vector<1x2x16xf32>
    tpu.vector_store %arg6[%c6_123, %c0_124, %c0_125], %225 {strides = array<i32>} : memref<8x2x16xf32, #tpu.memory_space<vmem>>, vector<1x2x16xf32>,
    %cst_126 = arith.constant dense<0.000000e+00> : vector<2x16xf32>
    %226 = tpu.matmul %222, %0, %cst_126 {dimension_numbers = #tpu.dot_dimension_numbers<[1], [0], [0], [1], [0, 0, 1, 1], [], []>} : vector<2x16xf32>, vector<16x16xf32>, vector<2x16xf32> -> vector<2x16xf32>
    %cst_127 = arith.constant 9.99999968E-20 : f32
    %227 = vector.broadcast %cst_127 : f32 to vector<2x16xf32>
    %228 = arith.addf %226, %227 : vector<2x16xf32>
    %229 = math.log %228 : vector<2x16xf32>
    %c6_128 = arith.constant 6 : index
    %230 = memref.load %arg1[%c6_128] : memref<8xf32, #tpu.memory_space<smem>>
    %231 = math.log %211 : vector<2x16xf32>
    %232 = arith.addf %231, %229 : vector<2x16xf32>
    %cst_129 = arith.constant 0.0909090936 : f32
    %233 = vector.broadcast %cst_129 : f32 to vector<2x16xf32>
    %234 = arith.mulf %233, %232 : vector<2x16xf32>
    %235 = math.exp %234 : vector<2x16xf32>
    %236 = vector.broadcast %230 : f32 to vector<2x16xf32>
    %237 = arith.mulf %236, %235 : vector<2x16xf32>
    %238 = arith.addf %203, %237 : vector<2x16xf32>
    %cst_130 = arith.constant -0.909090936 : f32
    %239 = vector.broadcast %cst_130 : f32 to vector<2x16xf32>
    %240 = arith.mulf %239, %229 : vector<2x16xf32>
    %241 = math.exp %240 : vector<2x16xf32>
    %c6_131 = arith.constant 6 : index
    %c0_132 = arith.constant 0 : index
    %c0_133 = arith.constant 0 : index
    %242 = vector.load %arg7[%c6_131, %c0_132, %c0_133] : memref<8x2x16xf32, #tpu.memory_space<vmem>>, vector<1x2x16xf32>
    %243 = vector.shape_cast %242 : vector<1x2x16xf32> to vector<2x16xf32>
    %244 = vector.shape_cast %241 : vector<2x16xf32> to vector<1x2x16xf32>
    tpu.vector_store %arg7[%c6_131, %c0_132, %c0_133], %244 {strides = array<i32>} : memref<8x2x16xf32, #tpu.memory_space<vmem>>, vector<1x2x16xf32>,
    %c7 = arith.constant 7 : index
    %c0_134 = arith.constant 0 : index
    %c0_135 = arith.constant 0 : index
    %245 = vector.load %arg3[%c7, %c0_134, %c0_135] : memref<8x2x16xf32, #tpu.memory_space<vmem>>, vector<1x2x16xf32>
    %246 = vector.shape_cast %245 : vector<1x2x16xf32> to vector<2x16xf32>
    %c7_136 = arith.constant 7 : index
    %c0_137 = arith.constant 0 : index
    %c0_138 = arith.constant 0 : index
    %247 = vector.load %arg4[%c7_136, %c0_137, %c0_138] : memref<8x2x16xf32, #tpu.memory_space<vmem>>, vector<1x2x16xf32>
    %248 = vector.shape_cast %247 : vector<1x2x16xf32> to vector<2x16xf32>
    %cst_139 = arith.constant dense<0.000000e+00> : vector<2x16xf32>
    %249 = tpu.matmul %246, %0, %cst_139 {dimension_numbers = #tpu.dot_dimension_numbers<[1], [0], [0], [1], [0, 0, 1, 1], [], []>} : vector<2x16xf32>, vector<16x16xf32>, vector<2x16xf32> -> vector<2x16xf32>
    %250 = math.log %248 : vector<2x16xf32>
    %cst_140 = arith.constant 9.99999968E-20 : f32
    %251 = vector.broadcast %cst_140 : f32 to vector<2x16xf32>
    %252 = arith.addf %249, %251 : vector<2x16xf32>
    %253 = math.log %252 : vector<2x16xf32>
    %254 = arith.subf %250, %253 : vector<2x16xf32>
    %cst_141 = arith.constant 0.909090936 : f32
    %255 = vector.broadcast %cst_141 : f32 to vector<2x16xf32>
    %256 = arith.mulf %255, %254 : vector<2x16xf32>
    %257 = math.exp %256 : vector<2x16xf32>
    %c7_142 = arith.constant 7 : index
    %c0_143 = arith.constant 0 : index
    %c0_144 = arith.constant 0 : index
    %258 = vector.load %arg6[%c7_142, %c0_143, %c0_144] : memref<8x2x16xf32, #tpu.memory_space<vmem>>, vector<1x2x16xf32>
    %259 = vector.shape_cast %258 : vector<1x2x16xf32> to vector<2x16xf32>
    %260 = vector.shape_cast %257 : vector<2x16xf32> to vector<1x2x16xf32>
    tpu.vector_store %arg6[%c7_142, %c0_143, %c0_144], %260 {strides = array<i32>} : memref<8x2x16xf32, #tpu.memory_space<vmem>>, vector<1x2x16xf32>,
    %cst_145 = arith.constant dense<0.000000e+00> : vector<2x16xf32>
    %261 = tpu.matmul %257, %0, %cst_145 {dimension_numbers = #tpu.dot_dimension_numbers<[1], [0], [0], [1], [0, 0, 1, 1], [], []>} : vector<2x16xf32>, vector<16x16xf32>, vector<2x16xf32> -> vector<2x16xf32>
    %cst_146 = arith.constant 9.99999968E-20 : f32
    %262 = vector.broadcast %cst_146 : f32 to vector<2x16xf32>
    %263 = arith.addf %261, %262 : vector<2x16xf32>
    %264 = math.log %263 : vector<2x16xf32>
    %c7_147 = arith.constant 7 : index
    %265 = memref.load %arg1[%c7_147] : memref<8xf32, #tpu.memory_space<smem>>
    %266 = math.log %246 : vector<2x16xf32>
    %267 = arith.addf %266, %264 : vector<2x16xf32>
    %cst_148 = arith.constant 0.0909090936 : f32
    %268 = vector.broadcast %cst_148 : f32 to vector<2x16xf32>
    %269 = arith.mulf %268, %267 : vector<2x16xf32>
    %270 = math.exp %269 : vector<2x16xf32>
    %271 = vector.broadcast %265 : f32 to vector<2x16xf32>
    %272 = arith.mulf %271, %270 : vector<2x16xf32>
    %273 = arith.addf %238, %272 : vector<2x16xf32>
    %cst_149 = arith.constant -0.909090936 : f32
    %274 = vector.broadcast %cst_149 : f32 to vector<2x16xf32>
    %275 = arith.mulf %274, %264 : vector<2x16xf32>
    %276 = math.exp %275 : vector<2x16xf32>
    %c7_150 = arith.constant 7 : index
    %c0_151 = arith.constant 0 : index
    %c0_152 = arith.constant 0 : index
    %277 = vector.load %arg7[%c7_150, %c0_151, %c0_152] : memref<8x2x16xf32, #tpu.memory_space<vmem>>, vector<1x2x16xf32>
    %278 = vector.shape_cast %277 : vector<1x2x16xf32> to vector<2x16xf32>
    %279 = vector.shape_cast %276 : vector<2x16xf32> to vector<1x2x16xf32>
    tpu.vector_store %arg7[%c7_150, %c0_151, %c0_152], %279 {strides = array<i32>} : memref<8x2x16xf32, #tpu.memory_space<vmem>>, vector<1x2x16xf32>,
    %280 = math.log %273 : vector<2x16xf32>
    %cst_153 = arith.constant 1.100000e+01 : f32
    %281 = vector.broadcast %cst_153 : f32 to vector<2x16xf32>
    %282 = arith.mulf %280, %281 : vector<2x16xf32>
    %283 = math.exp %282 : vector<2x16xf32>
    %c0_154 = arith.constant 0 : index
    %c0_155 = arith.constant 0 : index
    %284 = vector.load %arg5[%c0_154, %c0_155] : memref<2x16xf32, #tpu.memory_space<vmem>>, vector<2x16xf32>
    tpu.vector_store %arg5[%c0_154, %c0_155], %283 {strides = array<i32>} : memref<2x16xf32, #tpu.memory_space<vmem>>, vector<2x16xf32>,
    %cst_156 = arith.constant 0.909090936 : f32
    %285 = vector.broadcast %cst_156 : f32 to vector<2x16xf32>
    %286 = arith.mulf %285, %282 : vector<2x16xf32>
    %287 = math.exp %286 : vector<2x16xf32>
    %c0_157 = arith.constant 0 : index
    %c0_158 = arith.constant 0 : index
    %c0_159 = arith.constant 0 : index
    %288 = vector.load %arg7[%c0_157, %c0_158, %c0_159] : memref<8x2x16xf32, #tpu.memory_space<vmem>>, vector<1x2x16xf32>
    %289 = vector.shape_cast %288 : vector<1x2x16xf32> to vector<2x16xf32>
    %290 = arith.mulf %287, %289 : vector<2x16xf32>
    %c0_160 = arith.constant 0 : index
    %c0_161 = arith.constant 0 : index
    %c0_162 = arith.constant 0 : index
    %291 = vector.load %arg7[%c0_160, %c0_161, %c0_162] : memref<8x2x16xf32, #tpu.memory_space<vmem>>, vector<1x2x16xf32>
    %292 = vector.shape_cast %291 : vector<1x2x16xf32> to vector<2x16xf32>
    %293 = vector.shape_cast %290 : vector<2x16xf32> to vector<1x2x16xf32>
    tpu.vector_store %arg7[%c0_160, %c0_161, %c0_162], %293 {strides = array<i32>} : memref<8x2x16xf32, #tpu.memory_space<vmem>>, vector<1x2x16xf32>,
    %c1_163 = arith.constant 1 : index
    %c0_164 = arith.constant 0 : index
    %c0_165 = arith.constant 0 : index
    %294 = vector.load %arg7[%c1_163, %c0_164, %c0_165] : memref<8x2x16xf32, #tpu.memory_space<vmem>>, vector<1x2x16xf32>
    %295 = vector.shape_cast %294 : vector<1x2x16xf32> to vector<2x16xf32>
    %296 = arith.mulf %287, %295 : vector<2x16xf32>
    %c1_166 = arith.constant 1 : index
    %c0_167 = arith.constant 0 : index
    %c0_168 = arith.constant 0 : index
    %297 = vector.load %arg7[%c1_166, %c0_167, %c0_168] : memref<8x2x16xf32, #tpu.memory_space<vmem>>, vector<1x2x16xf32>
    %298 = vector.shape_cast %297 : vector<1x2x16xf32> to vector<2x16xf32>
    %299 = vector.shape_cast %296 : vector<2x16xf32> to vector<1x2x16xf32>
    tpu.vector_store %arg7[%c1_166, %c0_167, %c0_168], %299 {strides = array<i32>} : memref<8x2x16xf32, #tpu.memory_space<vmem>>, vector<1x2x16xf32>,
    %c2_169 = arith.constant 2 : index
    %c0_170 = arith.constant 0 : index
    %c0_171 = arith.constant 0 : index
    %300 = vector.load %arg7[%c2_169, %c0_170, %c0_171] : memref<8x2x16xf32, #tpu.memory_space<vmem>>, vector<1x2x16xf32>
    %301 = vector.shape_cast %300 : vector<1x2x16xf32> to vector<2x16xf32>
    %302 = arith.mulf %287, %301 : vector<2x16xf32>
    %c2_172 = arith.constant 2 : index
    %c0_173 = arith.constant 0 : index
    %c0_174 = arith.constant 0 : index
    %303 = vector.load %arg7[%c2_172, %c0_173, %c0_174] : memref<8x2x16xf32, #tpu.memory_space<vmem>>, vector<1x2x16xf32>
    %304 = vector.shape_cast %303 : vector<1x2x16xf32> to vector<2x16xf32>
    %305 = vector.shape_cast %302 : vector<2x16xf32> to vector<1x2x16xf32>
    tpu.vector_store %arg7[%c2_172, %c0_173, %c0_174], %305 {strides = array<i32>} : memref<8x2x16xf32, #tpu.memory_space<vmem>>, vector<1x2x16xf32>,
    %c3_175 = arith.constant 3 : index
    %c0_176 = arith.constant 0 : index
    %c0_177 = arith.constant 0 : index
    %306 = vector.load %arg7[%c3_175, %c0_176, %c0_177] : memref<8x2x16xf32, #tpu.memory_space<vmem>>, vector<1x2x16xf32>
    %307 = vector.shape_cast %306 : vector<1x2x16xf32> to vector<2x16xf32>
    %308 = arith.mulf %287, %307 : vector<2x16xf32>
    %c3_178 = arith.constant 3 : index
    %c0_179 = arith.constant 0 : index
    %c0_180 = arith.constant 0 : index
    %309 = vector.load %arg7[%c3_178, %c0_179, %c0_180] : memref<8x2x16xf32, #tpu.memory_space<vmem>>, vector<1x2x16xf32>
    %310 = vector.shape_cast %309 : vector<1x2x16xf32> to vector<2x16xf32>
    %311 = vector.shape_cast %308 : vector<2x16xf32> to vector<1x2x16xf32>
    tpu.vector_store %arg7[%c3_178, %c0_179, %c0_180], %311 {strides = array<i32>} : memref<8x2x16xf32, #tpu.memory_space<vmem>>, vector<1x2x16xf32>,
    %c4_181 = arith.constant 4 : index
    %c0_182 = arith.constant 0 : index
    %c0_183 = arith.constant 0 : index
    %312 = vector.load %arg7[%c4_181, %c0_182, %c0_183] : memref<8x2x16xf32, #tpu.memory_space<vmem>>, vector<1x2x16xf32>
    %313 = vector.shape_cast %312 : vector<1x2x16xf32> to vector<2x16xf32>
    %314 = arith.mulf %287, %313 : vector<2x16xf32>
    %c4_184 = arith.constant 4 : index
    %c0_185 = arith.constant 0 : index
    %c0_186 = arith.constant 0 : index
    %315 = vector.load %arg7[%c4_184, %c0_185, %c0_186] : memref<8x2x16xf32, #tpu.memory_space<vmem>>, vector<1x2x16xf32>
    %316 = vector.shape_cast %315 : vector<1x2x16xf32> to vector<2x16xf32>
    %317 = vector.shape_cast %314 : vector<2x16xf32> to vector<1x2x16xf32>
    tpu.vector_store %arg7[%c4_184, %c0_185, %c0_186], %317 {strides = array<i32>} : memref<8x2x16xf32, #tpu.memory_space<vmem>>, vector<1x2x16xf32>,
    %c5_187 = arith.constant 5 : index
    %c0_188 = arith.constant 0 : index
    %c0_189 = arith.constant 0 : index
    %318 = vector.load %arg7[%c5_187, %c0_188, %c0_189] : memref<8x2x16xf32, #tpu.memory_space<vmem>>, vector<1x2x16xf32>
    %319 = vector.shape_cast %318 : vector<1x2x16xf32> to vector<2x16xf32>
    %320 = arith.mulf %287, %319 : vector<2x16xf32>
    %c5_190 = arith.constant 5 : index
    %c0_191 = arith.constant 0 : index
    %c0_192 = arith.constant 0 : index
    %321 = vector.load %arg7[%c5_190, %c0_191, %c0_192] : memref<8x2x16xf32, #tpu.memory_space<vmem>>, vector<1x2x16xf32>
    %322 = vector.shape_cast %321 : vector<1x2x16xf32> to vector<2x16xf32>
    %323 = vector.shape_cast %320 : vector<2x16xf32> to vector<1x2x16xf32>
    tpu.vector_store %arg7[%c5_190, %c0_191, %c0_192], %323 {strides = array<i32>} : memref<8x2x16xf32, #tpu.memory_space<vmem>>, vector<1x2x16xf32>,
    %c6_193 = arith.constant 6 : index
    %c0_194 = arith.constant 0 : index
    %c0_195 = arith.constant 0 : index
    %324 = vector.load %arg7[%c6_193, %c0_194, %c0_195] : memref<8x2x16xf32, #tpu.memory_space<vmem>>, vector<1x2x16xf32>
    %325 = vector.shape_cast %324 : vector<1x2x16xf32> to vector<2x16xf32>
    %326 = arith.mulf %287, %325 : vector<2x16xf32>
    %c6_196 = arith.constant 6 : index
    %c0_197 = arith.constant 0 : index
    %c0_198 = arith.constant 0 : index
    %327 = vector.load %arg7[%c6_196, %c0_197, %c0_198] : memref<8x2x16xf32, #tpu.memory_space<vmem>>, vector<1x2x16xf32>
    %328 = vector.shape_cast %327 : vector<1x2x16xf32> to vector<2x16xf32>
    %329 = vector.shape_cast %326 : vector<2x16xf32> to vector<1x2x16xf32>
    tpu.vector_store %arg7[%c6_196, %c0_197, %c0_198], %329 {strides = array<i32>} : memref<8x2x16xf32, #tpu.memory_space<vmem>>, vector<1x2x16xf32>,
    %c7_199 = arith.constant 7 : index
    %c0_200 = arith.constant 0 : index
    %c0_201 = arith.constant 0 : index
    %330 = vector.load %arg7[%c7_199, %c0_200, %c0_201] : memref<8x2x16xf32, #tpu.memory_space<vmem>>, vector<1x2x16xf32>
    %331 = vector.shape_cast %330 : vector<1x2x16xf32> to vector<2x16xf32>
    %332 = arith.mulf %287, %331 : vector<2x16xf32>
    %c7_202 = arith.constant 7 : index
    %c0_203 = arith.constant 0 : index
    %c0_204 = arith.constant 0 : index
    %333 = vector.load %arg7[%c7_202, %c0_203, %c0_204] : memref<8x2x16xf32, #tpu.memory_space<vmem>>, vector<1x2x16xf32>
    %334 = vector.shape_cast %333 : vector<1x2x16xf32> to vector<2x16xf32>
    %335 = vector.shape_cast %332 : vector<2x16xf32> to vector<1x2x16xf32>
    tpu.vector_store %arg7[%c7_202, %c0_203, %c0_204], %335 {strides = array<i32>} : memref<8x2x16xf32, #tpu.memory_space<vmem>>, vector<1x2x16xf32>,
    return
  }
  func.func @transform_0(%arg0: i32) -> i32 {
    %c0_i32 = arith.constant 0 : i32
    %c0_i32_0 = arith.constant 0 : i32
    return %c0_i32 : i32
  }
  func.func @transform_1(%arg0: i32) -> (i32, i32) {
    %c0_i32 = arith.constant 0 : i32
    %c0_i32_0 = arith.constant 0 : i32
    %c0_i32_1 = arith.constant 0 : i32
    return %c0_i32, %c0_i32_0 : i32, i32
  }
  func.func @transform_2(%arg0: i32) -> (i32, i32, i32) {
    %c0_i32 = arith.constant 0 : i32
    %c0_i32_0 = arith.constant 0 : i32
    %c0_i32_1 = arith.constant 0 : i32
    return %c0_i32, %arg0, %c0_i32_0 : i32, i32, i32
  }
  func.func @transform_3(%arg0: i32) -> (i32, i32, i32) {
    %c0_i32 = arith.constant 0 : i32
    %c0_i32_0 = arith.constant 0 : i32
    %c0_i32_1 = arith.constant 0 : i32
    return %c0_i32, %arg0, %c0_i32_0 : i32, i32, i32
  }
  func.func @transform_4(%arg0: i32) -> (i32, i32) {
    %c0_i32 = arith.constant 0 : i32
    %c0_i32_0 = arith.constant 0 : i32
    return %arg0, %c0_i32 : i32, i32
  }
  func.func @transform_5(%arg0: i32) -> (i32, i32, i32) {
    %c0_i32 = arith.constant 0 : i32
    %c0_i32_0 = arith.constant 0 : i32
    %c0_i32_1 = arith.constant 0 : i32
    return %c0_i32, %arg0, %c0_i32_0 : i32, i32, i32
  }
  func.func @transform_6(%arg0: i32) -> (i32, i32, i32) {
    %c0_i32 = arith.constant 0 : i32
    %c0_i32_0 = arith.constant 0 : i32
    %c0_i32_1 = arith.constant 0 : i32
    return %c0_i32, %arg0, %c0_i32_0 : i32, i32, i32
  }
}

</mosaic_0001>

<bundles_post_ra>
// kernel: tpu_custom_call.1
= control target key start
LH: loop header
LB: loop body
LE: loop exit
PB: predicated region body
PF: predicated region fallthrough
CT: control target
= control target key end

     0   :  { %12 = vsyncpa [#allocation5], 0  ;;  %s2390_s0 = inlined_call_operand.hbm [shape: f32[8], index: 0, kind: input, shape index: {}]   ;;  %s2391_s1 = inlined_call_operand.hbm [shape: f32[16,16], index: 1, kind: input, shape index: {}]   ;;  %s2392_s2 = inlined_call_operand.hbm [shape: f32[8,2,16], index: 2, kind: input, shape index: {}]   ;;  %s2393_s3 = inlined_call_operand.hbm [shape: f32[8,2,16], index: 3, kind: input, shape index: {}]   ;;  %s2394_s4 = inlined_call_operand.hbm [shape: f32[2,16], index: 4, kind: output, shape index: {0}]   ;;  %s2395_s5 = inlined_call_operand.hbm [shape: f32[8,2,16], index: 5, kind: output, shape index: {1}]   ;;  %s2396_s6 = inlined_call_operand.hbm [shape: f32[8,2,16], index: 6, kind: output, shape index: {2}]  }
   0x1   :  { %13 = vsyncpa [#allocation3], 0 }
   0x2   :  { %14 = vsyncpa [#allocation8], 0 }
   0x3   :  { %15 = vsyncpa [#allocation4], 0 }
   0x4   :  { %16 = vsyncpa [#allocation12], 0  ;;  %s2085_s21 = smov [#allocation7]   ;;  %s1933_s25 = scalar_lea.hbm %s2392_s2, 256 }
   0x5   :  { %s42_s22 = sshll.u32 %s2085_s21, 4  ;;  %p1934_p0 = scmp.ne.s32.totalorder %s2392_s2, %s1933_s25  ;;  %s43_s22 = int_to_ptr.vmem [resolvable:$true] %s42_s22 }
   0x6   :  { %p1937_p1 = scmp.lt.u32.totalorder %s1933_s25, %s2392_s2 }
   0x8   :  { %p1939_p2 = pnand %p1937_p1, %p1934_p0 }
   0xa   :  { %1942 = shalt.err (!%p1939_p2)
}
   0xb   :  { %s1943_s30 = scalar_lea.vmem %s43_s22, 256  ;;  %p1948_p4 = scmp.lt.s32.totalorder %s43_s22, %s43_s22 }
   0xc   :  { %p1944_p3 = scmp.ne.s32.totalorder %s43_s22, %s1943_s30  ;;  %p1949_p5 = scmp.lt.s32.totalorder %s1943_s30, %s1943_s30 }
   0xe   :  { %p1950_p6 = por %p1949_p5, %p1948_p4 }
  0x10   :  { %p1951_p7 = pnand %p1950_p6, %p1944_p3 }
  0x12   :  { %1954 = shalt.err (!%p1951_p7)
}
  0x13   :  { %s2086_s7 = smov 32   ;;  %s2087_s8 = smov 2  }
  0x14   :  { %48 = dma.hbm_to_vmem [thread:$0]  %s2392_s2, 256, %s43_s22, [#allocation8], %s2086_s7, %s2086_s7, %s2087_s8  }
  0x15   :  { %s1955_s13 = scalar_lea.hbm %s2390_s0, 16 }
  0x16   :  { %p1956_p8 = scmp.ne.s32.totalorder %s2390_s0, %s1955_s13  ;;  %p1959_p9 = scmp.lt.u32.totalorder %s1955_s13, %s2390_s0 }
  0x18   :  { %p1961_p10 = pnand %p1959_p9, %p1956_p8 }
  0x1a   :  { %1964 = shalt.err (!%p1961_p10)
}
  0x1b   :  { %s2088_s18 = smov [#allocation2]   ;;  %s2089_s2 = smov [#allocation6]  }
  0x1c   :  { %24 = dma.hbm_to_smem %s2390_s0, 16, %s2088_s18, [#allocation5]  }
  0x1d   :  { %s30_s21 = sshll.u32 %s2089_s2, 4  ;;  %s1965_s24 = scalar_lea.hbm %s2391_s1, 256  ;;  %s31_s21 = int_to_ptr.vmem [resolvable:$true] %s30_s21 }
  0x1e   :  { %p1966_p11 = scmp.ne.s32.totalorder %s2391_s1, %s1965_s24  ;;  %p1969_p12 = scmp.lt.u32.totalorder %s1965_s24, %s2391_s1 }
  0x20   :  { %p1971_p13 = pnand %p1969_p12, %p1966_p11 }
  0x22   :  { %1974 = shalt.err (!%p1971_p13)
}
  0x23   :  { %s1975_s29 = scalar_lea.vmem %s31_s21, 256  ;;  %p1980_p1 = scmp.lt.s32.totalorder %s31_s21, %s31_s21 }
  0x24   :  { %p1976_p0 = scmp.ne.s32.totalorder %s31_s21, %s1975_s29  ;;  %p1981_p2 = scmp.lt.s32.totalorder %s1975_s29, %s1975_s29 }
  0x26   :  { %p1982_p3 = por %p1981_p2, %p1980_p1 }
  0x28   :  { %p1983_p4 = pnand %p1982_p3, %p1976_p0 }
  0x2a   :  { %1986 = shalt.err (!%p1983_p4)
}
  0x2b   :  { %s2090_s0 = smov 128   ;;  %s2091_s30 = smov 8  }
  0x2c   :  { %36 = dma.hbm_to_vmem [thread:$0]  %s2391_s1, 256, %s31_s21, [#allocation3], %s2090_s0, %s2090_s0, %s2091_s30  }
  0x2d   :  { %s2092_s11 = smov [#allocation9]   ;;  %s1987_s15 = scalar_lea.hbm %s2393_s3, 256 }
  0x2e   :  { %s54_s12 = sshll.u32 %s2092_s11, 4  ;;  %p1988_p5 = scmp.ne.s32.totalorder %s2393_s3, %s1987_s15  ;;  %s55_s12 = int_to_ptr.vmem [resolvable:$true] %s54_s12 }
  0x2f   :  { %p1991_p6 = scmp.lt.u32.totalorder %s1987_s15, %s2393_s3 }
  0x31   :  { %p1993_p7 = pnand %p1991_p6, %p1988_p5 }
  0x33   :  { %1996 = shalt.err (!%p1993_p7)
}
  0x34   :  { %s1997_s20 = scalar_lea.vmem %s55_s12, 256  ;;  %p2002_p9 = scmp.lt.s32.totalorder %s55_s12, %s55_s12 }
  0x35   :  { %p1998_p8 = scmp.ne.s32.totalorder %s55_s12, %s1997_s20  ;;  %p2003_p10 = scmp.lt.s32.totalorder %s1997_s20, %s1997_s20 }
  0x37   :  { %p2004_p11 = por %p2003_p10, %p2002_p9 }
  0x39   :  { %p2005_p12 = pnand %p2004_p11, %p1998_p8 }
  0x3b   :  { %2008 = shalt.err (!%p2005_p12)
}
  0x3c   :  { %60 = dma.hbm_to_vmem [thread:$0]  %s2393_s3, 256, %s55_s12, [#allocation8], %s2086_s7, %s2086_s7, %s2087_s8  }
  0x3d   :  { %2075 = dma.done.wait [#allocation5], 16  }
  0x3e   :  { %2076 = vsyncadd [#allocation5], 4294967280 }
  0x3f   :  { %2077 = dma.done.wait [#allocation3], 256  }
  0x40   :  { %2078 = vsyncadd [#allocation3], 4294967040 }
  0x41   :  { %2079 = dma.done.wait [#allocation8], 512  }
  0x42   :  { %2080 = vsyncadd [#allocation8], 4294966784 }
  0x43   :  { %73 = sfence }
  0x44   :  { %v74_v0 = vld [vmem:[#allocation6] sm:$0xff]  ;;  %v75_v1 = vld [vmem:[#allocation6 + $0x8] sm:$0xff]  ;;  %v2093_v2 = vmov 0.0|0.0   ;;  %vm2094_vm0 = vmmov 0   ;;  %v2095_v4 = vmov 0.0   ;;  %vm80_vm1 = vcmask 130048  }
  0x45   :  { %1753 = vmatprep.subr.bf16.mxu0 %v2093_v2  ;;  %v2189_v3 = vpack.c.bf16 %v75_v1, %v74_v0  ;;  %1645 = vmatprep.mubr.msk.f32.mxu0 %vm2094_vm0, %v2095_v4  ;;  %v2197_v5 = vld [vmem:[#allocation7] sm:$0x3]  ;;  %v2207_v6 = vld [vmem:[#allocation7 + $0x2] sm:$0x3]  ;;  %v2215_v7 = vld [vmem:[#allocation7 + $0x4] sm:$0x3] }
  0x46   :  { %1756 = vmatprep.subr.bf16.mxu1 %v2093_v2  ;;  %1652 = vmatprep.mubr.msk.f32.mxu1 %vm2094_vm0, %v2095_v4  ;;  %v2223_v8 = vld [vmem:[#allocation7 + $0x6] sm:$0x3]  ;;  %v2231_v9 = vld [vmem:[#allocation7 + $0x8] sm:$0x3]  ;;  %v2239_v10 = vld [vmem:[#allocation7 + $0xa] sm:$0x3] }
  0x47   :  { %1755 = vmatpush3.bf16.msra.mxu0 %v2189_v3  ;;  %1758 = vmatpush3.bf16.msra.mxu1 %v2189_v3  ;;  %v2247_v11 = vld [vmem:[#allocation7 + $0xc] sm:$0x3]  ;;  %v2255_v12 = vld [vmem:[#allocation7 + $0xe] sm:$0x3]  ;;  %v77_v13 = vld [vmem:[#allocation9] sm:$0x3] }
  0x48   :  { %1759 = vmatprep.subr.bf16.mxu0 %v2093_v2  ;;  %1762 = vmatprep.subr.bf16.mxu1 %v2093_v2  ;;  %1815 = vlog2.f32 %v77_v13  ;;  %v253_v14 = vld [vmem:[#allocation9 + $0x2] sm:$0x3]  ;;  %v430_v18 = vld [vmem:[#allocation9 + $0x4] sm:$0x3]  ;;  %v607_v22 = vld [vmem:[#allocation9 + $0x6] sm:$0x3] }
  0x49   :  { %1817 = vlog2.f32 %v253_v14  ;;  %v784_v27 = vld [vmem:[#allocation9 + $0x8] sm:$0x3]  ;;  %v961_v35 = vld [vmem:[#allocation9 + $0xa] sm:$0x3]  ;;  %v1138_v45 = vld [vmem:[#allocation9 + $0xc] sm:$0x3] }
  0x4a   :  { %1646 = vmatmul.mubr.msk.f32.vlgmr.msra.gmra.mrb[0].mxu0 %vm80_vm1, %v2197_v5  ;;  %v1315_v56 = vld [vmem:[#allocation9 + $0xe] sm:$0x3]  ;;  %vm160_vm2 = vcmask 123904   ;;  %s2096_s3 = smov [#allocation11]  }
  0x4b   :  { %1761 = vmatpush3.bf16.msra.mxu0 %v2189_v3  ;;  %1659 = vmatprep.mubr.msk.f32.mxu0 %vm2094_vm0, %v2095_v4  ;;  %s1537_s21 = sshll.u32 %s2096_s3, 4  ;;  %s1538_s21 = int_to_ptr.vmem [resolvable:$true] %s1537_s21 }
  0x4c   :  { %1765 = vmatprep.subr.bf16.mxu0 %v2093_v2  ;;  %s2009_s22 = scalar_lea.vmem %s1538_s21, 256  ;;  %p2014_p0 = scmp.lt.s32.totalorder %s1538_s21, %s1538_s21 }
  0x4d   :  { %p2010_p13 = scmp.ne.s32.totalorder %s1538_s21, %s2009_s22  ;;  %p2015_p1 = scmp.lt.s32.totalorder %s2009_s22, %s2009_s22 }
  0x4e   :  { %1660 = vmatmul.mubr.msk.f32.vlgmr.msra.gmra.mrb[2].mxu0 %vm80_vm1, %v2207_v6 }
  0x4f   :  { %1767 = vmatpush3.bf16.msra.mxu0 %v2189_v3  ;;  %1673 = vmatprep.mubr.msk.f32.mxu0 %vm2094_vm0, %v2095_v4  ;;  %p2016_p2 = por %p2015_p1, %p2014_p0 }
  0x50   :  { %1771 = vmatprep.subr.bf16.mxu0 %v2093_v2 }
  0x51   :  { %p2017_p3 = pnand %p2016_p2, %p2010_p13 }
  0x52   :  { %1674 = vmatmul.mubr.msk.f32.vlgmr.msra.gmra.mrb[4].mxu0 %vm80_vm1, %v2215_v7  ;;  %v1816_v24 = vpop.eup %1815 }
  0x53   :  { %1773 = vmatpush3.bf16.msra.mxu0 %v2189_v3  ;;  %1687 = vmatprep.mubr.msk.f32.mxu0 %vm2094_vm0, %v2095_v4  ;;  %v1818_v28 = vpop.eup %1817  ;;  %v79_v29 = vmul.f32 0.6931472, %v1816_v24 }
  0x54   :  { %1777 = vmatprep.subr.bf16.mxu0 %v2093_v2  ;;  %v255_v38 = vmul.f32 0.6931472, %v1818_v28 }
  0x56   :  { %1688 = vmatmul.mubr.msk.f32.vlgmr.msra.gmra.mrb[6].mxu0 %vm80_vm1, %v2223_v8 }
  0x57   :  { %1779 = vmatpush3.bf16.msra.mxu0 %v2189_v3  ;;  %1701 = vmatprep.mubr.msk.f32.mxu0 %vm2094_vm0, %v2095_v4 }
  0x58   :  { %1783 = vmatprep.subr.bf16.mxu0 %v2093_v2 }
  0x5a   :  { %1702 = vmatmul.mubr.msk.f32.vlgmr.msra.gmra.mrb[8].mxu0 %vm80_vm1, %v2231_v9 }
  0x5b   :  { %1785 = vmatpush3.bf16.msra.mxu0 %v2189_v3  ;;  %1715 = vmatprep.mubr.msk.f32.mxu0 %vm2094_vm0, %v2095_v4 }
  0x5c   :  { %1789 = vmatprep.subr.bf16.mxu0 %v2093_v2 }
  0x5e   :  { %1716 = vmatmul.mubr.msk.f32.vlgmr.msra.gmra.mrb[10].mxu0 %vm80_vm1, %v2239_v10 }
  0x5f   :  { %1791 = vmatpush3.bf16.msra.mxu0 %v2189_v3  ;;  %1729 = vmatprep.mubr.msk.f32.mxu0 %vm2094_vm0, %v2095_v4 }
  0x60   :  { %1795 = vmatprep.subr.bf16.mxu0 %v2093_v2 }
  0x62   :  { %1730 = vmatmul.mubr.msk.f32.vlgmr.msra.gmra.mrb[12].mxu0 %vm80_vm1, %v2247_v11 }
  0x63   :  { %1797 = vmatpush3.bf16.msra.mxu0 %v2189_v3  ;;  %1743 = vmatprep.mubr.msk.f32.mxu0 %vm2094_vm0, %v2095_v4 }
  0x66   :  { %1744 = vmatmul.mubr.msk.f32.vlgmr.msra.gmra.mrb[14].mxu0 %vm80_vm1, %v2255_v12 }
 0x11d   :  { %v150_v15 = vpop.f32.mrb[0].mxu0 }
 0x11e   :  { %v151_v16 = vadd.f32 1e-19, %v150_v15  ;;  %v1647_v17 = vpop.f32.mrb[1].mxu0 }
 0x120   :  { %1819 = vlog2.f32 %v151_v16 }
 0x121   :  { %v325_v19 = vpop.f32.mrb[2].mxu0  ;;  %1821 = vlog2.f32 %v430_v18 }
 0x122   :  { %v326_v20 = vadd.f32 1e-19, %v325_v19  ;;  %v1661_v21 = vpop.f32.mrb[3].mxu0 }
 0x124   :  { %1823 = vlog2.f32 %v326_v20 }
 0x125   :  { %v502_v23 = vpop.f32.mrb[4].mxu0  ;;  %1825 = vlog2.f32 %v607_v22 }
 0x126   :  { %v503_v25 = vadd.f32 1e-19, %v502_v23  ;;  %v1675_v26 = vpop.f32.mrb[5].mxu0 }
 0x128   :  { %1827 = vlog2.f32 %v503_v25 }
 0x129   :  { %v679_v30 = vpop.f32.mrb[6].mxu0  ;;  %1829 = vlog2.f32 %v784_v27 }
 0x12a   :  { %v1820_v31 = vpop.eup %1819  ;;  %v680_v32 = vadd.f32 1e-19, %v679_v30  ;;  %v1689_v33 = vpop.f32.mrb[7].mxu0 }
 0x12b   :  { %v155_v34 = vmul.f32 0.6931472, %v1820_v31  ;;  %v1822_v36 = vpop.eup %1821 }
 0x12c   :  { %1831 = vlog2.f32 %v680_v32  ;;  %v432_v49 = vmul.f32 0.6931472, %v1822_v36 }
 0x12d   :  { %v156_v37 = vsub.f32 %v79_v29, %v155_v34  ;;  %v856_v39 = vpop.f32.mrb[8].mxu0  ;;  %1833 = vlog2.f32 %v961_v35 }
 0x12e   :  { %v1824_v40 = vpop.eup %1823  ;;  %v857_v41 = vadd.f32 1e-19, %v856_v39  ;;  %v1703_v42 = vpop.f32.mrb[9].mxu0 }
 0x12f   :  { %v157_v43 = vmul.f32 0.90909094, %v156_v37  ;;  %v330_v44 = vmul.f32 0.6931472, %v1824_v40  ;;  %v1826_v46 = vpop.eup %1825 }
 0x130   :  { %1835 = vlog2.f32 %v857_v41  ;;  %v609_v60 = vmul.f32 0.6931472, %v1826_v46 }
 0x131   :  { %v158_v47 = vmul.f32 1.442695, %v157_v43  ;;  %v331_v48 = vsub.f32 %v255_v38, %v330_v44  ;;  %v1033_v50 = vpop.f32.mrb[10].mxu0  ;;  %1837 = vlog2.f32 %v1138_v45 }
 0x132   :  { %v1828_v51 = vpop.eup %1827  ;;  %v1034_v52 = vadd.f32 1e-19, %v1033_v50  ;;  %v1717_v53 = vpop.f32.mrb[11].mxu0 }
 0x133   :  { %1839 = vpow2.f32 %v158_v47  ;;  %v332_v54 = vmul.f32 0.90909094, %v331_v48  ;;  %v507_v55 = vmul.f32 0.6931472, %v1828_v51  ;;  %v1830_v57 = vpop.eup %1829 }
 0x134   :  { %1841 = vlog2.f32 %v1034_v52  ;;  %v786_v17 = vmul.f32 0.6931472, %v1830_v57 }
 0x135   :  { %v333_v58 = vmul.f32 1.442695, %v332_v54  ;;  %v508_v59 = vsub.f32 %v432_v49, %v507_v55  ;;  %v1210_v61 = vpop.f32.mrb[12].mxu0  ;;  %1843 = vlog2.f32 %v1315_v56 }
 0x136   :  { %v1832_v62 = vpop.eup %1831  ;;  %v1211_v63 = vadd.f32 1e-19, %v1210_v61  ;;  %v1731_v0 = vpop.f32.mrb[13].mxu0 }
 0x137   :  { %1845 = vpow2.f32 %v333_v58  ;;  %v509_v1 = vmul.f32 0.90909094, %v508_v59  ;;  %v684_v13 = vmul.f32 0.6931472, %v1832_v62  ;;  %v1834_v14 = vpop.eup %1833 }
 0x138   :  { %1847 = vlog2.f32 %v1211_v63  ;;  %v963_v28 = vmul.f32 0.6931472, %v1834_v14 }
 0x139   :  { %v510_v15 = vmul.f32 1.442695, %v509_v1  ;;  %v685_v16 = vsub.f32 %v609_v60, %v684_v13  ;;  %v1387_v18 = vpop.f32.mrb[14].mxu0 }
 0x13a   :  { %v1836_v19 = vpop.eup %1835  ;;  %v1388_v20 = vadd.f32 1e-19, %v1387_v18  ;;  %v1745_v21 = vpop.f32.mrb[15].mxu0 }
 0x13b   :  { %1849 = vpow2.f32 %v510_v15  ;;  %v686_v22 = vmul.f32 0.90909094, %v685_v16  ;;  %v861_v23 = vmul.f32 0.6931472, %v1836_v19  ;;  %v1838_v24 = vpop.eup %1837 }
 0x13c   :  { %1851 = vlog2.f32 %v1388_v20  ;;  %v1140_v36 = vmul.f32 0.6931472, %v1838_v24 }
 0x13d   :  { %v1840_v25 = vpop.eup %1839  ;;  %v687_v26 = vmul.f32 1.442695, %v686_v22  ;;  %v862_v27 = vsub.f32 %v786_v17, %v861_v23 }
 0x13e   :  { %v1842_v29 = vpop.eup %1841  ;;  %161 = vst.msk [vmem:[#allocation11] sm:$0x3] %vm160_vm2, %v1840_v25  ;;  %1653 = vmatmul.mubr.msk.f32.vlgmr.msra.gmra.mrb[0].mxu1 %vm80_vm1, %v1840_v25 }
 0x13f   :  { %1853 = vpow2.f32 %v687_v26  ;;  %v863_v30 = vmul.f32 0.90909094, %v862_v27  ;;  %v1038_v31 = vmul.f32 0.6931472, %v1842_v29  ;;  %1764 = vmatpush3.bf16.msra.mxu1 %v2189_v3  ;;  %1666 = vmatprep.mubr.msk.f32.mxu1 %vm2094_vm0, %v2095_v4  ;;  %v1844_v32 = vpop.eup %1843 }
 0x140   :  { %1768 = vmatprep.subr.bf16.mxu1 %v2093_v2  ;;  %v1317_v43 = vmul.f32 0.6931472, %v1844_v32 }
 0x141   :  { %v1846_v33 = vpop.eup %1845  ;;  %v864_v34 = vmul.f32 1.442695, %v863_v30  ;;  %v1039_v35 = vsub.f32 %v963_v28, %v1038_v31 }
 0x142   :  { %v1848_v37 = vpop.eup %1847  ;;  %336 = vst.msk [vmem:[#allocation11 + $0x2] sm:$0x3] %vm160_vm2, %v1846_v33  ;;  %1667 = vmatmul.mubr.msk.f32.vlgmr.msra.gmra.mrb[2].mxu1 %vm80_vm1, %v1846_v33 }
 0x143   :  { %1855 = vpow2.f32 %v864_v34  ;;  %v1040_v38 = vmul.f32 0.90909094, %v1039_v35  ;;  %v1215_v39 = vmul.f32 0.6931472, %v1848_v37  ;;  %1770 = vmatpush3.bf16.msra.mxu1 %v2189_v3  ;;  %1680 = vmatprep.mubr.msk.f32.mxu1 %vm2094_vm0, %v2095_v4 }
 0x144   :  { %1774 = vmatprep.subr.bf16.mxu1 %v2093_v2 }
 0x145   :  { %v1850_v40 = vpop.eup %1849  ;;  %v1041_v41 = vmul.f32 1.442695, %v1040_v38  ;;  %v1216_v42 = vsub.f32 %v1140_v36, %v1215_v39 }
 0x146   :  { %v1852_v44 = vpop.eup %1851  ;;  %513 = vst.msk [vmem:[#allocation11 + $0x4] sm:$0x3] %vm160_vm2, %v1850_v40  ;;  %1681 = vmatmul.mubr.msk.f32.vlgmr.msra.gmra.mrb[4].mxu1 %vm80_vm1, %v1850_v40 }
 0x147   :  { %1857 = vpow2.f32 %v1041_v41  ;;  %v1217_v45 = vmul.f32 0.90909094, %v1216_v42  ;;  %v1392_v46 = vmul.f32 0.6931472, %v1852_v44  ;;  %1776 = vmatpush3.bf16.msra.mxu1 %v2189_v3  ;;  %1694 = vmatprep.mubr.msk.f32.mxu1 %vm2094_vm0, %v2095_v4 }
 0x148   :  { %1780 = vmatprep.subr.bf16.mxu1 %v2093_v2 }
 0x149   :  { %v1854_v47 = vpop.eup %1853  ;;  %v1218_v48 = vmul.f32 1.442695, %v1217_v45  ;;  %v1393_v49 = vsub.f32 %v1317_v43, %v1392_v46 }
 0x14a   :  { %690 = vst.msk [vmem:[#allocation11 + $0x6] sm:$0x3] %vm160_vm2, %v1854_v47  ;;  %1695 = vmatmul.mubr.msk.f32.vlgmr.msra.gmra.mrb[6].mxu1 %vm80_vm1, %v1854_v47 }
 0x14b   :  { %1859 = vpow2.f32 %v1218_v48  ;;  %v1394_v50 = vmul.f32 0.90909094, %v1393_v49  ;;  %1782 = vmatpush3.bf16.msra.mxu1 %v2189_v3  ;;  %1708 = vmatprep.mubr.msk.f32.mxu1 %vm2094_vm0, %v2095_v4 }
 0x14c   :  { %1786 = vmatprep.subr.bf16.mxu1 %v2093_v2 }
 0x14d   :  { %v1856_v51 = vpop.eup %1855  ;;  %v1395_v52 = vmul.f32 1.442695, %v1394_v50 }
 0x14e   :  { %867 = vst.msk [vmem:[#allocation11 + $0x8] sm:$0x3] %vm160_vm2, %v1856_v51  ;;  %1709 = vmatmul.mubr.msk.f32.vlgmr.msra.gmra.mrb[8].mxu1 %vm80_vm1, %v1856_v51 }
 0x14f   :  { %1861 = vpow2.f32 %v1395_v52  ;;  %1788 = vmatpush3.bf16.msra.mxu1 %v2189_v3  ;;  %1722 = vmatprep.mubr.msk.f32.mxu1 %vm2094_vm0, %v2095_v4 }
 0x150   :  { %1792 = vmatprep.subr.bf16.mxu1 %v2093_v2 }
 0x151   :  { %v1858_v53 = vpop.eup %1857 }
 0x152   :  { %1044 = vst.msk [vmem:[#allocation11 + $0xa] sm:$0x3] %vm160_vm2, %v1858_v53  ;;  %1723 = vmatmul.mubr.msk.f32.vlgmr.msra.gmra.mrb[10].mxu1 %vm80_vm1, %v1858_v53 }
 0x153   :  { %1794 = vmatpush3.bf16.msra.mxu1 %v2189_v3  ;;  %1736 = vmatprep.mubr.msk.f32.mxu1 %vm2094_vm0, %v2095_v4 }
 0x154   :  { %1798 = vmatprep.subr.bf16.mxu1 %v2093_v2 }
 0x155   :  { %v1860_v54 = vpop.eup %1859 }
 0x156   :  { %1221 = vst.msk [vmem:[#allocation11 + $0xc] sm:$0x3] %vm160_vm2, %v1860_v54  ;;  %1737 = vmatmul.mubr.msk.f32.vlgmr.msra.gmra.mrb[12].mxu1 %vm80_vm1, %v1860_v54 }
 0x157   :  { %1800 = vmatpush3.bf16.msra.mxu1 %v2189_v3  ;;  %1750 = vmatprep.mubr.msk.f32.mxu1 %vm2094_vm0, %v2095_v4 }
 0x159   :  { %v1862_v55 = vpop.eup %1861 }
 0x15a   :  { %1398 = vst.msk [vmem:[#allocation11 + $0xe] sm:$0x3] %vm160_vm2, %v1862_v55  ;;  %1751 = vmatmul.mubr.msk.f32.vlgmr.msra.gmra.mrb[14].mxu1 %vm80_vm1, %v1862_v55 }
 0x15b   :  { %2020 = shalt.err (!%p2017_p3)
}
 0x15c   :  { %s2021_s25 = scalar_lea.hbm %s2395_s5, 256 }
 0x15d   :  { %p2022_p4 = scmp.ne.s32.totalorder %s2395_s5, %s2021_s25  ;;  %p2025_p5 = scmp.lt.u32.totalorder %s2021_s25, %s2395_s5 }
 0x15f   :  { %p2027_p6 = pnand %p2025_p5, %p2022_p4 }
 0x161   :  { %2030 = shalt.err (!%p2027_p6)
}
 0x162   :  { %1543 = dma.vmem_to_hbm [thread:$0]  %s1538_s21, 256, %s2395_s5, [#allocation12], %s2086_s7, %s2086_s7, %s2087_s8   ;;  %1863 = vlog2.f32 %v2197_v5 }
 0x163   :  { %1865 = vlog2.f32 %v2207_v6  ;;  %s2324_s5 = sld [smem:[#allocation2]]  ;;  %s2327_s9 = sld [smem:[#allocation2 + $0x1]] }
 0x164   :  { %s2329_s10 = sld [smem:[#allocation2 + $0x2]]  ;;  %s2334_s11 = sld [smem:[#allocation2 + $0x3]] }
 0x165   :  { %s2338_s12 = sld [smem:[#allocation2 + $0x4]]  ;;  %s2342_s13 = sld [smem:[#allocation2 + $0x5]] }
 0x166   :  { %s1589_s14 = sld [smem:[#allocation2 + $0x6]]  ;;  %s1592_s15 = sld [smem:[#allocation2 + $0x7]] }
 0x167   :  { %s2097_s16 = smov [#allocation10]   ;;  %s2098_s18 = smov [#allocation13]  }
 0x168   :  { %s1528_s17 = sshll.u32 %s2097_s16, 4  ;;  %s2351_s19 = sshll.u32 %s2098_s18, 4  ;;  %s1529_s17 = int_to_ptr.vmem [resolvable:$true] %s1528_s17  ;;  %s1550_s19 = int_to_ptr.vmem [resolvable:$true] %s2351_s19 }
 0x169   :  { %s2031_s20 = scalar_lea.vmem %s1529_s17, 32  ;;  %p2036_p8 = scmp.lt.s32.totalorder %s1529_s17, %s1529_s17 }
 0x16a   :  { %p2032_p7 = scmp.ne.s32.totalorder %s1529_s17, %s2031_s20  ;;  %p2037_p9 = scmp.lt.s32.totalorder %s2031_s20, %s2031_s20 }
 0x16c   :  { %v1864_v60 = vpop.eup %1863  ;;  %p2038_p10 = por %p2037_p9, %p2036_p8 }
 0x16d   :  { %v1866_v5 = vpop.eup %1865  ;;  %v239_v63 = vmul.f32 0.6931472, %v1864_v60 }
 0x16e   :  { %v414_v17 = vmul.f32 0.6931472, %v1866_v5  ;;  %p2039_p11 = pnand %p2038_p10, %p2032_p7 }
 0x211   :  { %v231_v2 = vpop.f32.mrb[0].mxu1 }
 0x212   :  { %v232_v3 = vadd.f32 1e-19, %v231_v2  ;;  %v1654_v4 = vpop.f32.mrb[1].mxu1 }
 0x214   :  { %1867 = vlog2.f32 %v232_v3 }
 0x215   :  { %v406_v56 = vpop.f32.mrb[2].mxu1  ;;  %1869 = vlog2.f32 %v2215_v7 }
 0x216   :  { %v407_v57 = vadd.f32 1e-19, %v406_v56  ;;  %v1668_v58 = vpop.f32.mrb[3].mxu1 }
 0x218   :  { %1871 = vlog2.f32 %v407_v57 }
 0x219   :  { %v583_v59 = vpop.f32.mrb[4].mxu1  ;;  %1873 = vlog2.f32 %v2223_v8 }
 0x21a   :  { %v584_v61 = vadd.f32 1e-19, %v583_v59  ;;  %v1682_v62 = vpop.f32.mrb[5].mxu1 }
 0x21b   :  { %v419_v62 = vstv %s2327_s9 }
 0x21c   :  { %1875 = vlog2.f32 %v584_v61  ;;  %v244_v61 = vstv %s2324_s5 }
 0x21d   :  { %v760_v0 = vpop.f32.mrb[6].mxu1  ;;  %1877 = vlog2.f32 %v2231_v9 }
 0x21e   :  { %v1868_v1 = vpop.eup %1867  ;;  %v761_v13 = vadd.f32 1e-19, %v760_v0  ;;  %v1696_v6 = vpop.f32.mrb[7].mxu1 }
 0x21f   :  { %v236_v14 = vmul.f32 0.6931472, %v1868_v1  ;;  %v1870_v15 = vpop.eup %1869 }
 0x220   :  { %1879 = vlog2.f32 %v761_v13  ;;  %v591_v24 = vmul.f32 0.6931472, %v1870_v15 }
 0x221   :  { %v240_v7 = vadd.f32 %v239_v63, %v236_v14  ;;  %v246_v16 = vmul.f32 -0.90909094, %v236_v14  ;;  %v937_v18 = vpop.f32.mrb[8].mxu1  ;;  %1881 = vlog2.f32 %v2239_v10 }
 0x222   :  { %v1872_v19 = vpop.eup %1871  ;;  %v938_v20 = vadd.f32 1e-19, %v937_v18  ;;  %v1710_v21 = vpop.f32.mrb[9].mxu1 }
 0x223   :  { %v241_v8 = vmul.f32 0.09090909, %v240_v7  ;;  %v247_v22 = vmul.f32 1.442695, %v246_v16  ;;  %v411_v23 = vmul.f32 0.6931472, %v1872_v19  ;;  %v1874_v25 = vpop.eup %1873 }
 0x224   :  { %1883 = vlog2.f32 %v938_v20  ;;  %v768_v34 = vmul.f32 0.6931472, %v1874_v25  ;;  %v596_v20 = vstv %s2329_s10 }
 0x225   :  { %v242_v26 = vmul.f32 1.442695, %v241_v8  ;;  %1885 = vpow2.f32 %v247_v22  ;;  %v415_v9 = vadd.f32 %v414_v17, %v411_v23  ;;  %v422_v27 = vmul.f32 -0.90909094, %v411_v23  ;;  %v1114_v28 = vpop.f32.mrb[10].mxu1 }
 0x226   :  { %v1876_v29 = vpop.eup %1875  ;;  %1887 = vlog2.f32 %v2247_v11  ;;  %v1115_v30 = vadd.f32 1e-19, %v1114_v28  ;;  %v1724_v31 = vpop.f32.mrb[11].mxu1 }
 0x227   :  { %1889 = vpow2.f32 %v242_v26  ;;  %v416_v32 = vmul.f32 0.09090909, %v415_v9  ;;  %v423_v33 = vmul.f32 1.442695, %v422_v27  ;;  %v588_v10 = vmul.f32 0.6931472, %v1876_v29  ;;  %v1878_v35 = vpop.eup %1877 }
 0x228   :  { %1891 = vlog2.f32 %v1115_v30  ;;  %v945_v45 = vmul.f32 0.6931472, %v1878_v35  ;;  %v773_v31 = vstv %s2334_s11 }
 0x229   :  { %v417_v36 = vmul.f32 1.442695, %v416_v32  ;;  %1893 = vpow2.f32 %v423_v33  ;;  %v592_v37 = vadd.f32 %v591_v24, %v588_v10  ;;  %v599_v38 = vmul.f32 -0.90909094, %v588_v10  ;;  %v1291_v39 = vpop.f32.mrb[12].mxu1 }
 0x22a   :  { %v1880_v40 = vpop.eup %1879  ;;  %1895 = vlog2.f32 %v2255_v12  ;;  %v1292_v11 = vadd.f32 1e-19, %v1291_v39  ;;  %v1738_v41 = vpop.f32.mrb[13].mxu1 }
 0x22b   :  { %1897 = vpow2.f32 %v417_v36  ;;  %v593_v42 = vmul.f32 0.09090909, %v592_v37  ;;  %v600_v43 = vmul.f32 1.442695, %v599_v38  ;;  %v765_v44 = vmul.f32 0.6931472, %v1880_v40  ;;  %v1882_v46 = vpop.eup %1881 }
 0x22c   :  { %1899 = vlog2.f32 %v1292_v11  ;;  %v1122_v4 = vmul.f32 0.6931472, %v1882_v46  ;;  %v950_v41 = vstv %s2338_s12 }
 0x22d   :  { %v594_v47 = vmul.f32 1.442695, %v593_v42  ;;  %1901 = vpow2.f32 %v600_v43  ;;  %v769_v48 = vadd.f32 %v768_v34, %v765_v44  ;;  %v776_v49 = vmul.f32 -0.90909094, %v765_v44  ;;  %v1468_v50 = vpop.f32.mrb[14].mxu1 }
 0x22e   :  { %v1884_v51 = vpop.eup %1883  ;;  %v1469_v12 = vadd.f32 1e-19, %v1468_v50  ;;  %v1752_v52 = vpop.f32.mrb[15].mxu1 }
 0x22f   :  { %v1886_v53 = vpop.eup %1885  ;;  %1903 = vpow2.f32 %v594_v47  ;;  %v770_v54 = vmul.f32 0.09090909, %v769_v48  ;;  %v777_v55 = vmul.f32 1.442695, %v776_v49  ;;  %v942_v2 = vmul.f32 0.6931472, %v1884_v51 }
 0x230   :  { %v1888_v3 = vpop.eup %1887  ;;  %249 = vst.msk [vmem:[#allocation13] sm:$0x3] %vm160_vm2, %v1886_v53  ;;  %1905 = vlog2.f32 %v1469_v12  ;;  %v1127_v49 = vstv %s2342_s13  ;;  %v1304_v53 = vstv %s1589_s14 }
 0x231   :  { %v1890_v56 = vpop.eup %1889  ;;  %v771_v57 = vmul.f32 1.442695, %v770_v54  ;;  %1907 = vpow2.f32 %v777_v55  ;;  %v946_v58 = vadd.f32 %v945_v45, %v942_v2  ;;  %v953_v59 = vmul.f32 -0.90909094, %v942_v2 }
 0x232   :  { %v1892_v60 = vpop.eup %1891  ;;  %v1299_v6 = vmul.f32 0.6931472, %v1888_v3  ;;  %v245_v18 = vmul.f32 %v1890_v56, %v244_v61 }
 0x233   :  { %v1894_v5 = vpop.eup %1893  ;;  %1909 = vpow2.f32 %v771_v57  ;;  %v947_v63 = vmul.f32 0.09090909, %v946_v58  ;;  %v954_v0 = vmul.f32 1.442695, %v953_v59  ;;  %v1119_v1 = vmul.f32 0.6931472, %v1892_v60 }
 0x234   :  { %v1896_v13 = vpop.eup %1895  ;;  %426 = vst.msk [vmem:[#allocation13 + $0x2] sm:$0x3] %vm160_vm2, %v1894_v5 }
 0x235   :  { %v1898_v14 = vpop.eup %1897  ;;  %v948_v15 = vmul.f32 1.442695, %v947_v63  ;;  %1911 = vpow2.f32 %v954_v0  ;;  %v1123_v7 = vadd.f32 %v1122_v4, %v1119_v1  ;;  %v1130_v16 = vmul.f32 -0.90909094, %v1119_v1 }
 0x236   :  { %v1900_v17 = vpop.eup %1899  ;;  %v420_v19 = vmul.f32 %v1898_v14, %v419_v62  ;;  %v1476_v25 = vmul.f32 0.6931472, %v1896_v13  ;;  %v1481_v4 = vstv %s1592_s15 }
 0x237   :  { %v1902_v21 = vpop.eup %1901  ;;  %1913 = vpow2.f32 %v948_v15  ;;  %v1124_v8 = vmul.f32 0.09090909, %v1123_v7  ;;  %v1131_v22 = vmul.f32 1.442695, %v1130_v16  ;;  %v1296_v23 = vmul.f32 0.6931472, %v1900_v17 }
 0x238   :  { %v421_v24 = vadd.f32 %v420_v19, %v245_v18  ;;  %603 = vst.msk [vmem:[#allocation13 + $0x4] sm:$0x3] %vm160_vm2, %v1902_v21  ;;  %v1498_v13 = vld [vmem:[#allocation13] sm:$0x3] }
 0x239   :  { %v1904_v26 = vpop.eup %1903  ;;  %v1125_v9 = vmul.f32 1.442695, %v1124_v8  ;;  %1915 = vpow2.f32 %v1131_v22  ;;  %v1300_v27 = vadd.f32 %v1299_v6, %v1296_v23  ;;  %v1307_v28 = vmul.f32 -0.90909094, %v1296_v23 }
 0x23a   :  { %v1906_v29 = vpop.eup %1905  ;;  %v597_v30 = vmul.f32 %v1904_v26, %v596_v20 }
 0x23b   :  { %v1908_v32 = vpop.eup %1907  ;;  %1917 = vpow2.f32 %v1125_v9  ;;  %v1301_v33 = vmul.f32 0.09090909, %v1300_v27  ;;  %v1308_v10 = vmul.f32 1.442695, %v1307_v28  ;;  %v1473_v34 = vmul.f32 0.6931472, %v1906_v29 }
 0x23c   :  { %v598_v35 = vadd.f32 %v597_v30, %v421_v24  ;;  %780 = vst.msk [vmem:[#allocation13 + $0x6] sm:$0x3] %vm160_vm2, %v1908_v32  ;;  %v1501_v6 = vld [vmem:[#allocation13 + $0x2] sm:$0x3] }
 0x23d   :  { %v1910_v36 = vpop.eup %1909  ;;  %v1302_v37 = vmul.f32 1.442695, %v1301_v33  ;;  %1919 = vpow2.f32 %v1308_v10  ;;  %v1477_v38 = vadd.f32 %v1476_v25, %v1473_v34  ;;  %v1484_v39 = vmul.f32 -0.90909094, %v1473_v34 }
 0x23e   :  { %v774_v40 = vmul.f32 %v1910_v36, %v773_v31 }
 0x23f   :  { %v1912_v11 = vpop.eup %1911  ;;  %1921 = vpow2.f32 %v1302_v37  ;;  %v1478_v42 = vmul.f32 0.09090909, %v1477_v38  ;;  %v1485_v43 = vmul.f32 1.442695, %v1484_v39  ;;  %v1504_v14 = vld [vmem:[#allocation13 + $0x4] sm:$0x3] }
 0x240   :  { %v775_v44 = vadd.f32 %v774_v40, %v598_v35  ;;  %957 = vst.msk [vmem:[#allocation13 + $0x8] sm:$0x3] %vm160_vm2, %v1912_v11 }
 0x241   :  { %v1914_v45 = vpop.eup %1913  ;;  %v1479_v46 = vmul.f32 1.442695, %v1478_v42  ;;  %1923 = vpow2.f32 %v1485_v43 }
 0x242   :  { %v951_v47 = vmul.f32 %v1914_v45, %v950_v41 }
 0x243   :  { %v1916_v48 = vpop.eup %1915  ;;  %1925 = vpow2.f32 %v1479_v46 }
 0x244   :  { %v952_v50 = vadd.f32 %v951_v47, %v775_v44  ;;  %1134 = vst.msk [vmem:[#allocation13 + $0xa] sm:$0x3] %vm160_vm2, %v1916_v48 }
 0x245   :  { %v1918_v51 = vpop.eup %1917 }
 0x246   :  { %v1128_v12 = vmul.f32 %v1918_v51, %v1127_v49 }
 0x247   :  { %v1920_v52 = vpop.eup %1919 }
 0x248   :  { %v1129_v54 = vadd.f32 %v1128_v12, %v952_v50  ;;  %1311 = vst.msk [vmem:[#allocation13 + $0xc] sm:$0x3] %vm160_vm2, %v1920_v52 }
 0x249   :  { %v1922_v55 = vpop.eup %1921 }
 0x24a   :  { %v1305_v2 = vmul.f32 %v1922_v55, %v1304_v53 }
 0x24b   :  { %v1924_v3 = vpop.eup %1923 }
 0x24c   :  { %1488 = vst.msk [vmem:[#allocation13 + $0xe] sm:$0x3] %vm160_vm2, %v1924_v3  ;;  %v1306_v56 = vadd.f32 %v1305_v2, %v1129_v54 }
 0x24d   :  { %v1926_v57 = vpop.eup %1925 }
 0x24e   :  { %v1482_v58 = vmul.f32 %v1926_v57, %v1481_v4 }
 0x250   :  { %v1483_v59 = vadd.f32 %v1482_v58, %v1306_v56 }
 0x252   :  { %1927 = vlog2.f32 %v1483_v59 }
 0x25c   :  { %v1928_v60 = vpop.eup %1927 }
 0x25d   :  { %v1490_v61 = vmul.f32 0.6931472, %v1928_v60 }
 0x25f   :  { %v1491_v62 = vmul.f32 11.0, %v1490_v61 }
 0x261   :  { %v1492_v5 = vmul.f32 1.442695, %v1491_v62  ;;  %v1495_v63 = vmul.f32 0.90909094, %v1491_v62 }
 0x263   :  { %1929 = vpow2.f32 %v1492_v5  ;;  %v1496_v0 = vmul.f32 1.442695, %v1495_v63 }
 0x265   :  { %1931 = vpow2.f32 %v1496_v0 }
 0x26d   :  { %v1930_v1 = vpop.eup %1929 }
 0x26e   :  { %1494 = vst.msk [vmem:[#allocation10] sm:$0x3] %vm160_vm2, %v1930_v1 }
 0x26f   :  { %v1932_v15 = vpop.eup %1931 }
 0x270   :  { %2042 = shalt.err (!%p2039_p11)
}
 0x271   :  { %s2043_s3 = scalar_lea.hbm %s2394_s4, 32 }
 0x272   :  { %p2044_p12 = scmp.ne.s32.totalorder %s2394_s4, %s2043_s3  ;;  %p2047_p13 = scmp.lt.u32.totalorder %s2043_s3, %s2394_s4 }
 0x274   :  { %p2049_p0 = pnand %p2047_p13, %p2044_p12 }
 0x276   :  { %2052 = shalt.err (!%p2049_p0)
}
 0x277   :  { %1531 = dma.vmem_to_hbm [thread:$0]  %s1529_s17, 32, %s2394_s4, [#allocation4]   ;;  %v1507_v7 = vld [vmem:[#allocation13 + $0x6] sm:$0x3]  ;;  %v1510_v16 = vld [vmem:[#allocation13 + $0x8] sm:$0x3]  ;;  %v1499_v17 = vmul.f32 %v1932_v15, %v1498_v13  ;;  %v1502_v18 = vmul.f32 %v1932_v15, %v1501_v6  ;;  %v1505_v19 = vmul.f32 %v1932_v15, %v1504_v14 }
 0x278   :  { %v1508_v20 = vmul.f32 %v1932_v15, %v1507_v7  ;;  %v1513_v21 = vld [vmem:[#allocation13 + $0xa] sm:$0x3]  ;;  %v1516_v8 = vld [vmem:[#allocation13 + $0xc] sm:$0x3]  ;;  %v1519_v22 = vld [vmem:[#allocation13 + $0xe] sm:$0x3]  ;;  %v1511_v23 = vmul.f32 %v1932_v15, %v1510_v16  ;;  %p2058_p2 = scmp.lt.s32.totalorder %s1550_s19, %s1550_s19 }
 0x279   :  { %v1514_v24 = vmul.f32 %v1932_v15, %v1513_v21  ;;  %v1517_v25 = vmul.f32 %v1932_v15, %v1516_v8  ;;  %v1520_v26 = vmul.f32 %v1932_v15, %v1519_v22  ;;  %1500 = vst.msk [vmem:[#allocation13] sm:$0x3] %vm160_vm2, %v1499_v17  ;;  %1503 = vst.msk [vmem:[#allocation13 + $0x2] sm:$0x3] %vm160_vm2, %v1502_v18  ;;  %s2053_s4 = scalar_lea.vmem %s1550_s19, 256 }
 0x27a   :  { %1506 = vst.msk [vmem:[#allocation13 + $0x4] sm:$0x3] %vm160_vm2, %v1505_v19  ;;  %1509 = vst.msk [vmem:[#allocation13 + $0x6] sm:$0x3] %vm160_vm2, %v1508_v20  ;;  %p2054_p1 = scmp.ne.s32.totalorder %s1550_s19, %s2053_s4  ;;  %p2059_p3 = scmp.lt.s32.totalorder %s2053_s4, %s2053_s4 }
 0x27b   :  { %1512 = vst.msk [vmem:[#allocation13 + $0x8] sm:$0x3] %vm160_vm2, %v1511_v23  ;;  %1515 = vst.msk [vmem:[#allocation13 + $0xa] sm:$0x3] %vm160_vm2, %v1514_v24 }
 0x27c   :  { %1518 = vst.msk [vmem:[#allocation13 + $0xc] sm:$0x3] %vm160_vm2, %v1517_v25  ;;  %1521 = vst.msk [vmem:[#allocation13 + $0xe] sm:$0x3] %vm160_vm2, %v1520_v26  ;;  %p2060_p4 = por %p2059_p3, %p2058_p2 }
 0x27e   :  { %p2061_p5 = pnand %p2060_p4, %p2054_p1 }
 0x280   :  { %2064 = shalt.err (!%p2061_p5)
}
 0x281   :  { %s2065_s29 = scalar_lea.hbm %s2396_s6, 256 }
 0x282   :  { %p2066_p6 = scmp.ne.s32.totalorder %s2396_s6, %s2065_s29  ;;  %p2069_p7 = scmp.lt.u32.totalorder %s2065_s29, %s2396_s6 }
 0x284   :  { %p2071_p8 = pnand %p2069_p7, %p2066_p6 }
 0x286   :  { %2074 = shalt.err (!%p2071_p8)
}
 0x287   :  { %1555 = dma.vmem_to_hbm [thread:$0]  %s1550_s19, 256, %s2396_s6, [#allocation12], %s2086_s7, %s2086_s7, %s2087_s8  }
 0x288   :  { %2081 = dma.done.wait [#allocation4], 32  }
 0x289   :  { %2082 = vsyncadd [#allocation4], 4294967264 }
 0x28a   :  { %2083 = dma.done.wait [#allocation12], 512  }
 0x28b   :  { %2084 = vsyncadd [#allocation12], 4294966784 }
 0x28c   :  { %1565 = vsyncpa [#allocation3], 1 }
 0x28d   :  { %1566 = vsyncpa [#allocation8], 1 }
 0x28e   :  { %1567 = vsyncpa [#allocation4], 1 }
 0x28f   :  { %1568 = vsyncpa [#allocation12], 1 }
 0x290   :  { %1569 = vsyncpa [#allocation5], 1 }

// kernel: tpu_custom_call.1
= control target key start
LH: loop header
LB: loop body
LE: loop exit
PB: predicated region body
PF: predicated region fallthrough
CT: control target
= control target key end

     0   :  { %12 = vsyncpa [#allocation5], 0  ;;  %s2390_s0 = inlined_call_operand.hbm [shape: f32[8], index: 0, kind: input, shape index: {}]   ;;  %s2391_s1 = inlined_call_operand.hbm [shape: f32[16,16], index: 1, kind: input, shape index: {}]   ;;  %s2392_s2 = inlined_call_operand.hbm [shape: f32[8,2,16], index: 2, kind: input, shape index: {}]   ;;  %s2393_s3 = inlined_call_operand.hbm [shape: f32[8,2,16], index: 3, kind: input, shape index: {}]   ;;  %s2394_s4 = inlined_call_operand.hbm [shape: f32[2,16], index: 4, kind: output, shape index: {0}]   ;;  %s2395_s5 = inlined_call_operand.hbm [shape: f32[8,2,16], index: 5, kind: output, shape index: {1}]   ;;  %s2396_s6 = inlined_call_operand.hbm [shape: f32[8,2,16], index: 6, kind: output, shape index: {2}]  }
   0x1   :  { %13 = vsyncpa [#allocation3], 0 }
   0x2   :  { %14 = vsyncpa [#allocation8], 0 }
   0x3   :  { %15 = vsyncpa [#allocation4], 0 }
   0x4   :  { %16 = vsyncpa [#allocation12], 0  ;;  %s2085_s21 = smov [#allocation7]   ;;  %s1933_s25 = scalar_lea.hbm %s2392_s2, 256 }
   0x5   :  { %s42_s22 = sshll.u32 %s2085_s21, 4  ;;  %p1934_p0 = scmp.ne.s32.totalorder %s2392_s2, %s1933_s25  ;;  %s43_s22 = int_to_ptr.vmem [resolvable:$true] %s42_s22 }
   0x6   :  { %p1937_p1 = scmp.lt.u32.totalorder %s1933_s25, %s2392_s2 }
   0x8   :  { %p1939_p2 = pnand %p1937_p1, %p1934_p0 }
   0xa   :  { %1942 = shalt.err (!%p1939_p2)
}
   0xb   :  { %s1943_s30 = scalar_lea.vmem %s43_s22, 256  ;;  %p1948_p4 = scmp.lt.s32.totalorder %s43_s22, %s43_s22 }
   0xc   :  { %p1944_p3 = scmp.ne.s32.totalorder %s43_s22, %s1943_s30  ;;  %p1949_p5 = scmp.lt.s32.totalorder %s1943_s30, %s1943_s30 }
   0xe   :  { %p1950_p6 = por %p1949_p5, %p1948_p4 }
  0x10   :  { %p1951_p7 = pnand %p1950_p6, %p1944_p3 }
  0x12   :  { %1954 = shalt.err (!%p1951_p7)
}
  0x13   :  { %s2086_s7 = smov 32   ;;  %s2087_s8 = smov 2  }
  0x14   :  { %48 = dma.hbm_to_vmem [thread:$0]  %s2392_s2, 256, %s43_s22, [#allocation8], %s2086_s7, %s2086_s7, %s2087_s8  }
  0x15   :  { %s1955_s13 = scalar_lea.hbm %s2390_s0, 16 }
  0x16   :  { %p1956_p8 = scmp.ne.s32.totalorder %s2390_s0, %s1955_s13  ;;  %p1959_p9 = scmp.lt.u32.totalorder %s1955_s13, %s2390_s0 }
  0x18   :  { %p1961_p10 = pnand %p1959_p9, %p1956_p8 }
  0x1a   :  { %1964 = shalt.err (!%p1961_p10)
}
  0x1b   :  { %s2088_s18 = smov [#allocation2]   ;;  %s2089_s2 = smov [#allocation6]  }
  0x1c   :  { %24 = dma.hbm_to_smem %s2390_s0, 16, %s2088_s18, [#allocation5]  }
  0x1d   :  { %s30_s21 = sshll.u32 %s2089_s2, 4  ;;  %s1965_s24 = scalar_lea.hbm %s2391_s1, 256  ;;  %s31_s21 = int_to_ptr.vmem [resolvable:$true] %s30_s21 }
  0x1e   :  { %p1966_p11 = scmp.ne.s32.totalorder %s2391_s1, %s1965_s24  ;;  %p1969_p12 = scmp.lt.u32.totalorder %s1965_s24, %s2391_s1 }
  0x20   :  { %p1971_p13 = pnand %p1969_p12, %p1966_p11 }
  0x22   :  { %1974 = shalt.err (!%p1971_p13)
}
  0x23   :  { %s1975_s29 = scalar_lea.vmem %s31_s21, 256  ;;  %p1980_p1 = scmp.lt.s32.totalorder %s31_s21, %s31_s21 }
  0x24   :  { %p1976_p0 = scmp.ne.s32.totalorder %s31_s21, %s1975_s29  ;;  %p1981_p2 = scmp.lt.s32.totalorder %s1975_s29, %s1975_s29 }
  0x26   :  { %p1982_p3 = por %p1981_p2, %p1980_p1 }
  0x28   :  { %p1983_p4 = pnand %p1982_p3, %p1976_p0 }
  0x2a   :  { %1986 = shalt.err (!%p1983_p4)
}
  0x2b   :  { %s2090_s0 = smov 128   ;;  %s2091_s30 = smov 8  }
  0x2c   :  { %36 = dma.hbm_to_vmem [thread:$0]  %s2391_s1, 256, %s31_s21, [#allocation3], %s2090_s0, %s2090_s0, %s2091_s30  }
  0x2d   :  { %s2092_s11 = smov [#allocation9]   ;;  %s1987_s15 = scalar_lea.hbm %s2393_s3, 256 }
  0x2e   :  { %s54_s12 = sshll.u32 %s2092_s11, 4  ;;  %p1988_p5 = scmp.ne.s32.totalorder %s2393_s3, %s1987_s15  ;;  %s55_s12 = int_to_ptr.vmem [resolvable:$true] %s54_s12 }
  0x2f   :  { %p1991_p6 = scmp.lt.u32.totalorder %s1987_s15, %s2393_s3 }
  0x31   :  { %p1993_p7 = pnand %p1991_p6, %p1988_p5 }
  0x33   :  { %1996 = shalt.err (!%p1993_p7)
}
  0x34   :  { %s1997_s20 = scalar_lea.vmem %s55_s12, 256  ;;  %p2002_p9 = scmp.lt.s32.totalorder %s55_s12, %s55_s12 }
  0x35   :  { %p1998_p8 = scmp.ne.s32.totalorder %s55_s12, %s1997_s20  ;;  %p2003_p10 = scmp.lt.s32.totalorder %s1997_s20, %s1997_s20 }
  0x37   :  { %p2004_p11 = por %p2003_p10, %p2002_p9 }
  0x39   :  { %p2005_p12 = pnand %p2004_p11, %p1998_p8 }
  0x3b   :  { %2008 = shalt.err (!%p2005_p12)
}
  0x3c   :  { %60 = dma.hbm_to_vmem [thread:$0]  %s2393_s3, 256, %s55_s12, [#allocation8], %s2086_s7, %s2086_s7, %s2087_s8  }
  0x3d   :  { %2075 = dma.done.wait [#allocation5], 16  }
  0x3e   :  { %2076 = vsyncadd [#allocation5], 4294967280 }
  0x3f   :  { %2077 = dma.done.wait [#allocation3], 256  }
  0x40   :  { %2078 = vsyncadd [#allocation3], 4294967040 }
  0x41   :  { %2079 = dma.done.wait [#allocation8], 512  }
  0x42   :  { %2080 = vsyncadd [#allocation8], 4294966784 }
  0x43   :  { %73 = sfence }
  0x44   :  { %v74_v0 = vld [vmem:[#allocation6] sm:$0xff]  ;;  %v75_v1 = vld [vmem:[#allocation6 + $0x8] sm:$0xff]  ;;  %v2093_v2 = vmov 0.0|0.0   ;;  %vm2094_vm0 = vmmov 0   ;;  %v2095_v4 = vmov 0.0   ;;  %vm80_vm1 = vcmask 130048  }
  0x45   :  { %1753 = vmatprep.subr.bf16.mxu0 %v2093_v2  ;;  %v2189_v3 = vpack.c.bf16 %v75_v1, %v74_v0  ;;  %1645 = vmatprep.mubr.msk.f32.mxu0 %vm2094_vm0, %v2095_v4  ;;  %v2197_v5 = vld [vmem:[#allocation7] sm:$0x3]  ;;  %v2207_v6 = vld [vmem:[#allocation7 + $0x2] sm:$0x3]  ;;  %v2215_v7 = vld [vmem:[#allocation7 + $0x4] sm:$0x3] }
  0x46   :  { %1756 = vmatprep.subr.bf16.mxu1 %v2093_v2  ;;  %1652 = vmatprep.mubr.msk.f32.mxu1 %vm2094_vm0, %v2095_v4  ;;  %v2223_v8 = vld [vmem:[#allocation7 + $0x6] sm:$0x3]  ;;  %v2231_v9 = vld [vmem:[#allocation7 + $0x8] sm:$0x3]  ;;  %v2239_v10 = vld [vmem:[#allocation7 + $0xa] sm:$0x3] }
  0x47   :  { %1755 = vmatpush3.bf16.msra.mxu0 %v2189_v3  ;;  %1758 = vmatpush3.bf16.msra.mxu1 %v2189_v3  ;;  %v2247_v11 = vld [vmem:[#allocation7 + $0xc] sm:$0x3]  ;;  %v2255_v12 = vld [vmem:[#allocation7 + $0xe] sm:$0x3]  ;;  %v77_v13 = vld [vmem:[#allocation9] sm:$0x3] }
  0x48   :  { %1759 = vmatprep.subr.bf16.mxu0 %v2093_v2  ;;  %1762 = vmatprep.subr.bf16.mxu1 %v2093_v2  ;;  %1815 = vlog2.f32 %v77_v13  ;;  %v253_v14 = vld [vmem:[#allocation9 + $0x2] sm:$0x3]  ;;  %v430_v18 = vld [vmem:[#allocation9 + $0x4] sm:$0x3]  ;;  %v607_v22 = vld [vmem:[#allocation9 + $0x6] sm:$0x3] }
  0x49   :  { %1817 = vlog2.f32 %v253_v14  ;;  %v784_v27 = vld [vmem:[#allocation9 + $0x8] sm:$0x3]  ;;  %v961_v35 = vld [vmem:[#allocation9 + $0xa] sm:$0x3]  ;;  %v1138_v45 = vld [vmem:[#allocation9 + $0xc] sm:$0x3] }
  0x4a   :  { %1646 = vmatmul.mubr.msk.f32.vlgmr.msra.gmra.mrb[0].mxu0 %vm80_vm1, %v2197_v5  ;;  %v1315_v56 = vld [vmem:[#allocation9 + $0xe] sm:$0x3]  ;;  %vm160_vm2 = vcmask 123904   ;;  %s2096_s3 = smov [#allocation11]  }
  0x4b   :  { %1761 = vmatpush3.bf16.msra.mxu0 %v2189_v3  ;;  %1659 = vmatprep.mubr.msk.f32.mxu0 %vm2094_vm0, %v2095_v4  ;;  %s1537_s21 = sshll.u32 %s2096_s3, 4  ;;  %s1538_s21 = int_to_ptr.vmem [resolvable:$true] %s1537_s21 }
  0x4c   :  { %1765 = vmatprep.subr.bf16.mxu0 %v2093_v2  ;;  %s2009_s22 = scalar_lea.vmem %s1538_s21, 256  ;;  %p2014_p0 = scmp.lt.s32.totalorder %s1538_s21, %s1538_s21 }
  0x4d   :  { %p2010_p13 = scmp.ne.s32.totalorder %s1538_s21, %s2009_s22  ;;  %p2015_p1 = scmp.lt.s32.totalorder %s2009_s22, %s2009_s22 }
  0x4e   :  { %1660 = vmatmul.mubr.msk.f32.vlgmr.msra.gmra.mrb[2].mxu0 %vm80_vm1, %v2207_v6 }
  0x4f   :  { %1767 = vmatpush3.bf16.msra.mxu0 %v2189_v3  ;;  %1673 = vmatprep.mubr.msk.f32.mxu0 %vm2094_vm0, %v2095_v4  ;;  %p2016_p2 = por %p2015_p1, %p2014_p0 }
  0x50   :  { %1771 = vmatprep.subr.bf16.mxu0 %v2093_v2 }
  0x51   :  { %p2017_p3 = pnand %p2016_p2, %p2010_p13 }
  0x52   :  { %1674 = vmatmul.mubr.msk.f32.vlgmr.msra.gmra.mrb[4].mxu0 %vm80_vm1, %v2215_v7  ;;  %v1816_v24 = vpop.eup %1815 }
  0x53   :  { %1773 = vmatpush3.bf16.msra.mxu0 %v2189_v3  ;;  %1687 = vmatprep.mubr.msk.f32.mxu0 %vm2094_vm0, %v2095_v4  ;;  %v1818_v28 = vpop.eup %1817  ;;  %v79_v29 = vmul.f32 0.6931472, %v1816_v24 }
  0x54   :  { %1777 = vmatprep.subr.bf16.mxu0 %v2093_v2  ;;  %v255_v38 = vmul.f32 0.6931472, %v1818_v28 }
  0x56   :  { %1688 = vmatmul.mubr.msk.f32.vlgmr.msra.gmra.mrb[6].mxu0 %vm80_vm1, %v2223_v8 }
  0x57   :  { %1779 = vmatpush3.bf16.msra.mxu0 %v2189_v3  ;;  %1701 = vmatprep.mubr.msk.f32.mxu0 %vm2094_vm0, %v2095_v4 }
  0x58   :  { %1783 = vmatprep.subr.bf16.mxu0 %v2093_v2 }
  0x5a   :  { %1702 = vmatmul.mubr.msk.f32.vlgmr.msra.gmra.mrb[8].mxu0 %vm80_vm1, %v2231_v9 }
  0x5b   :  { %1785 = vmatpush3.bf16.msra.mxu0 %v2189_v3  ;;  %1715 = vmatprep.mubr.msk.f32.mxu0 %vm2094_vm0, %v2095_v4 }
  0x5c   :  { %1789 = vmatprep.subr.bf16.mxu0 %v2093_v2 }
  0x5e   :  { %1716 = vmatmul.mubr.msk.f32.vlgmr.msra.gmra.mrb[10].mxu0 %vm80_vm1, %v2239_v10 }
  0x5f   :  { %1791 = vmatpush3.bf16.msra.mxu0 %v2189_v3  ;;  %1729 = vmatprep.mubr.msk.f32.mxu0 %vm2094_vm0, %v2095_v4 }
  0x60   :  { %1795 = vmatprep.subr.bf16.mxu0 %v2093_v2 }
  0x62   :  { %1730 = vmatmul.mubr.msk.f32.vlgmr.msra.gmra.mrb[12].mxu0 %vm80_vm1, %v2247_v11 }
  0x63   :  { %1797 = vmatpush3.bf16.msra.mxu0 %v2189_v3  ;;  %1743 = vmatprep.mubr.msk.f32.mxu0 %vm2094_vm0, %v2095_v4 }
  0x66   :  { %1744 = vmatmul.mubr.msk.f32.vlgmr.msra.gmra.mrb[14].mxu0 %vm80_vm1, %v2255_v12 }
 0x11d   :  { %v150_v15 = vpop.f32.mrb[0].mxu0 }
 0x11e   :  { %v151_v16 = vadd.f32 1e-19, %v150_v15  ;;  %v1647_v17 = vpop.f32.mrb[1].mxu0 }
 0x120   :  { %1819 = vlog2.f32 %v151_v16 }
 0x121   :  { %v325_v19 = vpop.f32.mrb[2].mxu0  ;;  %1821 = vlog2.f32 %v430_v18 }
 0x122   :  { %v326_v20 = vadd.f32 1e-19, %v325_v19  ;;  %v1661_v21 = vpop.f32.mrb[3].mxu0 }
 0x124   :  { %1823 = vlog2.f32 %v326_v20 }
 0x125   :  { %v502_v23 = vpop.f32.mrb[4].mxu0  ;;  %1825 = vlog2.f32 %v607_v22 }
 0x126   :  { %v503_v25 = vadd.f32 1e-19, %v502_v23  ;;  %v1675_v26 = vpop.f32.mrb[5].mxu0 }
 0x128   :  { %1827 = vlog2.f32 %v503_v25 }
 0x129   :  { %v679_v30 = vpop.f32.mrb[6].mxu0  ;;  %1829 = vlog2.f32 %v784_v27 }
 0x12a   :  { %v1820_v31 = vpop.eup %1819  ;;  %v680_v32 = vadd.f32 1e-19, %v679_v30  ;;  %v1689_v33 = vpop.f32.mrb[7].mxu0 }
 0x12b   :  { %v155_v34 = vmul.f32 0.6931472, %v1820_v31  ;;  %v1822_v36 = vpop.eup %1821 }
 0x12c   :  { %1831 = vlog2.f32 %v680_v32  ;;  %v432_v49 = vmul.f32 0.6931472, %v1822_v36 }
 0x12d   :  { %v156_v37 = vsub.f32 %v79_v29, %v155_v34  ;;  %v856_v39 = vpop.f32.mrb[8].mxu0  ;;  %1833 = vlog2.f32 %v961_v35 }
 0x12e   :  { %v1824_v40 = vpop.eup %1823  ;;  %v857_v41 = vadd.f32 1e-19, %v856_v39  ;;  %v1703_v42 = vpop.f32.mrb[9].mxu0 }
 0x12f   :  { %v157_v43 = vmul.f32 0.90909094, %v156_v37  ;;  %v330_v44 = vmul.f32 0.6931472, %v1824_v40  ;;  %v1826_v46 = vpop.eup %1825 }
 0x130   :  { %1835 = vlog2.f32 %v857_v41  ;;  %v609_v60 = vmul.f32 0.6931472, %v1826_v46 }
 0x131   :  { %v158_v47 = vmul.f32 1.442695, %v157_v43  ;;  %v331_v48 = vsub.f32 %v255_v38, %v330_v44  ;;  %v1033_v50 = vpop.f32.mrb[10].mxu0  ;;  %1837 = vlog2.f32 %v1138_v45 }
 0x132   :  { %v1828_v51 = vpop.eup %1827  ;;  %v1034_v52 = vadd.f32 1e-19, %v1033_v50  ;;  %v1717_v53 = vpop.f32.mrb[11].mxu0 }
 0x133   :  { %1839 = vpow2.f32 %v158_v47  ;;  %v332_v54 = vmul.f32 0.90909094, %v331_v48  ;;  %v507_v55 = vmul.f32 0.6931472, %v1828_v51  ;;  %v1830_v57 = vpop.eup %1829 }
 0x134   :  { %1841 = vlog2.f32 %v1034_v52  ;;  %v786_v17 = vmul.f32 0.6931472, %v1830_v57 }
 0x135   :  { %v333_v58 = vmul.f32 1.442695, %v332_v54  ;;  %v508_v59 = vsub.f32 %v432_v49, %v507_v55  ;;  %v1210_v61 = vpop.f32.mrb[12].mxu0  ;;  %1843 = vlog2.f32 %v1315_v56 }
 0x136   :  { %v1832_v62 = vpop.eup %1831  ;;  %v1211_v63 = vadd.f32 1e-19, %v1210_v61  ;;  %v1731_v0 = vpop.f32.mrb[13].mxu0 }
 0x137   :  { %1845 = vpow2.f32 %v333_v58  ;;  %v509_v1 = vmul.f32 0.90909094, %v508_v59  ;;  %v684_v13 = vmul.f32 0.6931472, %v1832_v62  ;;  %v1834_v14 = vpop.eup %1833 }
 0x138   :  { %1847 = vlog2.f32 %v1211_v63  ;;  %v963_v28 = vmul.f32 0.6931472, %v1834_v14 }
 0x139   :  { %v510_v15 = vmul.f32 1.442695, %v509_v1  ;;  %v685_v16 = vsub.f32 %v609_v60, %v684_v13  ;;  %v1387_v18 = vpop.f32.mrb[14].mxu0 }
 0x13a   :  { %v1836_v19 = vpop.eup %1835  ;;  %v1388_v20 = vadd.f32 1e-19, %v1387_v18  ;;  %v1745_v21 = vpop.f32.mrb[15].mxu0 }
 0x13b   :  { %1849 = vpow2.f32 %v510_v15  ;;  %v686_v22 = vmul.f32 0.90909094, %v685_v16  ;;  %v861_v23 = vmul.f32 0.6931472, %v1836_v19  ;;  %v1838_v24 = vpop.eup %1837 }
 0x13c   :  { %1851 = vlog2.f32 %v1388_v20  ;;  %v1140_v36 = vmul.f32 0.6931472, %v1838_v24 }
 0x13d   :  { %v1840_v25 = vpop.eup %1839  ;;  %v687_v26 = vmul.f32 1.442695, %v686_v22  ;;  %v862_v27 = vsub.f32 %v786_v17, %v861_v23 }
 0x13e   :  { %v1842_v29 = vpop.eup %1841  ;;  %161 = vst.msk [vmem:[#allocation11] sm:$0x3] %vm160_vm2, %v1840_v25  ;;  %1653 = vmatmul.mubr.msk.f32.vlgmr.msra.gmra.mrb[0].mxu1 %vm80_vm1, %v1840_v25 }
 0x13f   :  { %1853 = vpow2.f32 %v687_v26  ;;  %v863_v30 = vmul.f32 0.90909094, %v862_v27  ;;  %v1038_v31 = vmul.f32 0.6931472, %v1842_v29  ;;  %1764 = vmatpush3.bf16.msra.mxu1 %v2189_v3  ;;  %1666 = vmatprep.mubr.msk.f32.mxu1 %vm2094_vm0, %v2095_v4  ;;  %v1844_v32 = vpop.eup %1843 }
 0x140   :  { %1768 = vmatprep.subr.bf16.mxu1 %v2093_v2  ;;  %v1317_v43 = vmul.f32 0.6931472, %v1844_v32 }
 0x141   :  { %v1846_v33 = vpop.eup %1845  ;;  %v864_v34 = vmul.f32 1.442695, %v863_v30  ;;  %v1039_v35 = vsub.f32 %v963_v28, %v1038_v31 }
 0x142   :  { %v1848_v37 = vpop.eup %1847  ;;  %336 = vst.msk [vmem:[#allocation11 + $0x2] sm:$0x3] %vm160_vm2, %v1846_v33  ;;  %1667 = vmatmul.mubr.msk.f32.vlgmr.msra.gmra.mrb[2].mxu1 %vm80_vm1, %v1846_v33 }
 0x143   :  { %1855 = vpow2.f32 %v864_v34  ;;  %v1040_v38 = vmul.f32 0.90909094, %v1039_v35  ;;  %v1215_v39 = vmul.f32 0.6931472, %v1848_v37  ;;  %1770 = vmatpush3.bf16.msra.mxu1 %v2189_v3  ;;  %1680 = vmatprep.mubr.msk.f32.mxu1 %vm2094_vm0, %v2095_v4 }
 0x144   :  { %1774 = vmatprep.subr.bf16.mxu1 %v2093_v2 }
 0x145   :  { %v1850_v40 = vpop.eup %1849  ;;  %v1041_v41 = vmul.f32 1.442695, %v1040_v38  ;;  %v1216_v42 = vsub.f32 %v1140_v36, %v1215_v39 }
 0x146   :  { %v1852_v44 = vpop.eup %1851  ;;  %513 = vst.msk [vmem:[#allocation11 + $0x4] sm:$0x3] %vm160_vm2, %v1850_v40  ;;  %1681 = vmatmul.mubr.msk.f32.vlgmr.msra.gmra.mrb[4].mxu1 %vm80_vm1, %v1850_v40 }
 0x147   :  { %1857 = vpow2.f32 %v1041_v41  ;;  %v1217_v45 = vmul.f32 0.90909094, %v1216_v42  ;;  %v1392_v46 = vmul.f32 0.6931472, %v1852_v44  ;;  %1776 = vmatpush3.bf16.msra.mxu1 %v2189_v3  ;;  %1694 = vmatprep.mubr.msk.f32.mxu1 %vm2094_vm0, %v2095_v4 }
 0x148   :  { %1780 = vmatprep.subr.bf16.mxu1 %v2093_v2 }
 0x149   :  { %v1854_v47 = vpop.eup %1853  ;;  %v1218_v48 = vmul.f32 1.442695, %v1217_v45  ;;  %v1393_v49 = vsub.f32 %v1317_v43, %v1392_v46 }
 0x14a   :  { %690 = vst.msk [vmem:[#allocation11 + $0x6] sm:$0x3] %vm160_vm2, %v1854_v47  ;;  %1695 = vmatmul.mubr.msk.f32.vlgmr.msra.gmra.mrb[6].mxu1 %vm80_vm1, %v1854_v47 }
 0x14b   :  { %1859 = vpow2.f32 %v1218_v48  ;;  %v1394_v50 = vmul.f32 0.90909094, %v1393_v49  ;;  %1782 = vmatpush3.bf16.msra.mxu1 %v2189_v3  ;;  %1708 = vmatprep.mubr.msk.f32.mxu1 %vm2094_vm0, %v2095_v4 }
 0x14c   :  { %1786 = vmatprep.subr.bf16.mxu1 %v2093_v2 }
 0x14d   :  { %v1856_v51 = vpop.eup %1855  ;;  %v1395_v52 = vmul.f32 1.442695, %v1394_v50 }
 0x14e   :  { %867 = vst.msk [vmem:[#allocation11 + $0x8] sm:$0x3] %vm160_vm2, %v1856_v51  ;;  %1709 = vmatmul.mubr.msk.f32.vlgmr.msra.gmra.mrb[8].mxu1 %vm80_vm1, %v1856_v51 }
 0x14f   :  { %1861 = vpow2.f32 %v1395_v52  ;;  %1788 = vmatpush3.bf16.msra.mxu1 %v2189_v3  ;;  %1722 = vmatprep.mubr.msk.f32.mxu1 %vm2094_vm0, %v2095_v4 }
 0x150   :  { %1792 = vmatprep.subr.bf16.mxu1 %v2093_v2 }
 0x151   :  { %v1858_v53 = vpop.eup %1857 }
 0x152   :  { %1044 = vst.msk [vmem:[#allocation11 + $0xa] sm:$0x3] %vm160_vm2, %v1858_v53  ;;  %1723 = vmatmul.mubr.msk.f32.vlgmr.msra.gmra.mrb[10].mxu1 %vm80_vm1, %v1858_v53 }
 0x153   :  { %1794 = vmatpush3.bf16.msra.mxu1 %v2189_v3  ;;  %1736 = vmatprep.mubr.msk.f32.mxu1 %vm2094_vm0, %v2095_v4 }
 0x154   :  { %1798 = vmatprep.subr.bf16.mxu1 %v2093_v2 }
 0x155   :  { %v1860_v54 = vpop.eup %1859 }
 0x156   :  { %1221 = vst.msk [vmem:[#allocation11 + $0xc] sm:$0x3] %vm160_vm2, %v1860_v54  ;;  %1737 = vmatmul.mubr.msk.f32.vlgmr.msra.gmra.mrb[12].mxu1 %vm80_vm1, %v1860_v54 }
 0x157   :  { %1800 = vmatpush3.bf16.msra.mxu1 %v2189_v3  ;;  %1750 = vmatprep.mubr.msk.f32.mxu1 %vm2094_vm0, %v2095_v4 }
 0x159   :  { %v1862_v55 = vpop.eup %1861 }
 0x15a   :  { %1398 = vst.msk [vmem:[#allocation11 + $0xe] sm:$0x3] %vm160_vm2, %v1862_v55  ;;  %1751 = vmatmul.mubr.msk.f32.vlgmr.msra.gmra.mrb[14].mxu1 %vm80_vm1, %v1862_v55 }
 0x15b   :  { %2020 = shalt.err (!%p2017_p3)
}
 0x15c   :  { %s2021_s25 = scalar_lea.hbm %s2395_s5, 256 }
 0x15d   :  { %p2022_p4 = scmp.ne.s32.totalorder %s2395_s5, %s2021_s25  ;;  %p2025_p5 = scmp.lt.u32.totalorder %s2021_s25, %s2395_s5 }
 0x15f   :  { %p2027_p6 = pnand %p2025_p5, %p2022_p4 }
 0x161   :  { %2030 = shalt.err (!%p2027_p6)
}
 0x162   :  { %1543 = dma.vmem_to_hbm [thread:$0]  %s1538_s21, 256, %s2395_s5, [#allocation12], %s2086_s7, %s2086_s7, %s2087_s8   ;;  %1863 = vlog2.f32 %v2197_v5 }
 0x163   :  { %1865 = vlog2.f32 %v2207_v6  ;;  %s2324_s5 = sld [smem:[#allocation2]]  ;;  %s2327_s9 = sld [smem:[#allocation2 + $0x1]] }
 0x164   :  { %s2329_s10 = sld [smem:[#allocation2 + $0x2]]  ;;  %s2334_s11 = sld [smem:[#allocation2 + $0x3]] }
 0x165   :  { %s2338_s12 = sld [smem:[#allocation2 + $0x4]]  ;;  %s2342_s13 = sld [smem:[#allocation2 + $0x5]] }
 0x166   :  { %s1589_s14 = sld [smem:[#allocation2 + $0x6]]  ;;  %s1592_s15 = sld [smem:[#allocation2 + $0x7]] }
 0x167   :  { %s2097_s16 = smov [#allocation10]   ;;  %s2098_s18 = smov [#allocation13]  }
 0x168   :  { %s1528_s17 = sshll.u32 %s2097_s16, 4  ;;  %s2351_s19 = sshll.u32 %s2098_s18, 4  ;;  %s1529_s17 = int_to_ptr.vmem [resolvable:$true] %s1528_s17  ;;  %s1550_s19 = int_to_ptr.vmem [resolvable:$true] %s2351_s19 }
 0x169   :  { %s2031_s20 = scalar_lea.vmem %s1529_s17, 32  ;;  %p2036_p8 = scmp.lt.s32.totalorder %s1529_s17, %s1529_s17 }
 0x16a   :  { %p2032_p7 = scmp.ne.s32.totalorder %s1529_s17, %s2031_s20  ;;  %p2037_p9 = scmp.lt.s32.totalorder %s2031_s20, %s2031_s20 }
 0x16c   :  { %v1864_v60 = vpop.eup %1863  ;;  %p2038_p10 = por %p2037_p9, %p2036_p8 }
 0x16d   :  { %v1866_v5 = vpop.eup %1865  ;;  %v239_v63 = vmul.f32 0.6931472, %v1864_v60 }
 0x16e   :  { %v414_v17 = vmul.f32 0.6931472, %v1866_v5  ;;  %p2039_p11 = pnand %p2038_p10, %p2032_p7 }
 0x211   :  { %v231_v2 = vpop.f32.mrb[0].mxu1 }
 0x212   :  { %v232_v3 = vadd.f32 1e-19, %v231_v2  ;;  %v1654_v4 = vpop.f32.mrb[1].mxu1 }
 0x214   :  { %1867 = vlog2.f32 %v232_v3 }
 0x215   :  { %v406_v56 = vpop.f32.mrb[2].mxu1  ;;  %1869 = vlog2.f32 %v2215_v7 }
 0x216   :  { %v407_v57 = vadd.f32 1e-19, %v406_v56  ;;  %v1668_v58 = vpop.f32.mrb[3].mxu1 }
 0x218   :  { %1871 = vlog2.f32 %v407_v57 }
 0x219   :  { %v583_v59 = vpop.f32.mrb[4].mxu1  ;;  %1873 = vlog2.f32 %v2223_v8 }
 0x21a   :  { %v584_v61 = vadd.f32 1e-19, %v583_v59  ;;  %v1682_v62 = vpop.f32.mrb[5].mxu1 }
 0x21b   :  { %v419_v62 = vstv %s2327_s9 }
 0x21c   :  { %1875 = vlog2.f32 %v584_v61  ;;  %v244_v61 = vstv %s2324_s5 }
 0x21d   :  { %v760_v0 = vpop.f32.mrb[6].mxu1  ;;  %1877 = vlog2.f32 %v2231_v9 }
 0x21e   :  { %v1868_v1 = vpop.eup %1867  ;;  %v761_v13 = vadd.f32 1e-19, %v760_v0  ;;  %v1696_v6 = vpop.f32.mrb[7].mxu1 }
 0x21f   :  { %v236_v14 = vmul.f32 0.6931472, %v1868_v1  ;;  %v1870_v15 = vpop.eup %1869 }
 0x220   :  { %1879 = vlog2.f32 %v761_v13  ;;  %v591_v24 = vmul.f32 0.6931472, %v1870_v15 }
 0x221   :  { %v240_v7 = vadd.f32 %v239_v63, %v236_v14  ;;  %v246_v16 = vmul.f32 -0.90909094, %v236_v14  ;;  %v937_v18 = vpop.f32.mrb[8].mxu1  ;;  %1881 = vlog2.f32 %v2239_v10 }
 0x222   :  { %v1872_v19 = vpop.eup %1871  ;;  %v938_v20 = vadd.f32 1e-19, %v937_v18  ;;  %v1710_v21 = vpop.f32.mrb[9].mxu1 }
 0x223   :  { %v241_v8 = vmul.f32 0.09090909, %v240_v7  ;;  %v247_v22 = vmul.f32 1.442695, %v246_v16  ;;  %v411_v23 = vmul.f32 0.6931472, %v1872_v19  ;;  %v1874_v25 = vpop.eup %1873 }
 0x224   :  { %1883 = vlog2.f32 %v938_v20  ;;  %v768_v34 = vmul.f32 0.6931472, %v1874_v25  ;;  %v596_v20 = vstv %s2329_s10 }
 0x225   :  { %v242_v26 = vmul.f32 1.442695, %v241_v8  ;;  %1885 = vpow2.f32 %v247_v22  ;;  %v415_v9 = vadd.f32 %v414_v17, %v411_v23  ;;  %v422_v27 = vmul.f32 -0.90909094, %v411_v23  ;;  %v1114_v28 = vpop.f32.mrb[10].mxu1 }
 0x226   :  { %v1876_v29 = vpop.eup %1875  ;;  %1887 = vlog2.f32 %v2247_v11  ;;  %v1115_v30 = vadd.f32 1e-19, %v1114_v28  ;;  %v1724_v31 = vpop.f32.mrb[11].mxu1 }
 0x227   :  { %1889 = vpow2.f32 %v242_v26  ;;  %v416_v32 = vmul.f32 0.09090909, %v415_v9  ;;  %v423_v33 = vmul.f32 1.442695, %v422_v27  ;;  %v588_v10 = vmul.f32 0.6931472, %v1876_v29  ;;  %v1878_v35 = vpop.eup %1877 }
 0x228   :  { %1891 = vlog2.f32 %v1115_v30  ;;  %v945_v45 = vmul.f32 0.6931472, %v1878_v35  ;;  %v773_v31 = vstv %s2334_s11 }
 0x229   :  { %v417_v36 = vmul.f32 1.442695, %v416_v32  ;;  %1893 = vpow2.f32 %v423_v33  ;;  %v592_v37 = vadd.f32 %v591_v24, %v588_v10  ;;  %v599_v38 = vmul.f32 -0.90909094, %v588_v10  ;;  %v1291_v39 = vpop.f32.mrb[12].mxu1 }
 0x22a   :  { %v1880_v40 = vpop.eup %1879  ;;  %1895 = vlog2.f32 %v2255_v12  ;;  %v1292_v11 = vadd.f32 1e-19, %v1291_v39  ;;  %v1738_v41 = vpop.f32.mrb[13].mxu1 }
 0x22b   :  { %1897 = vpow2.f32 %v417_v36  ;;  %v593_v42 = vmul.f32 0.09090909, %v592_v37  ;;  %v600_v43 = vmul.f32 1.442695, %v599_v38  ;;  %v765_v44 = vmul.f32 0.6931472, %v1880_v40  ;;  %v1882_v46 = vpop.eup %1881 }
 0x22c   :  { %1899 = vlog2.f32 %v1292_v11  ;;  %v1122_v4 = vmul.f32 0.6931472, %v1882_v46  ;;  %v950_v41 = vstv %s2338_s12 }
 0x22d   :  { %v594_v47 = vmul.f32 1.442695, %v593_v42  ;;  %1901 = vpow2.f32 %v600_v43  ;;  %v769_v48 = vadd.f32 %v768_v34, %v765_v44  ;;  %v776_v49 = vmul.f32 -0.90909094, %v765_v44  ;;  %v1468_v50 = vpop.f32.mrb[14].mxu1 }
 0x22e   :  { %v1884_v51 = vpop.eup %1883  ;;  %v1469_v12 = vadd.f32 1e-19, %v1468_v50  ;;  %v1752_v52 = vpop.f32.mrb[15].mxu1 }
 0x22f   :  { %v1886_v53 = vpop.eup %1885  ;;  %1903 = vpow2.f32 %v594_v47  ;;  %v770_v54 = vmul.f32 0.09090909, %v769_v48  ;;  %v777_v55 = vmul.f32 1.442695, %v776_v49  ;;  %v942_v2 = vmul.f32 0.6931472, %v1884_v51 }
 0x230   :  { %v1888_v3 = vpop.eup %1887  ;;  %249 = vst.msk [vmem:[#allocation13] sm:$0x3] %vm160_vm2, %v1886_v53  ;;  %1905 = vlog2.f32 %v1469_v12  ;;  %v1127_v49 = vstv %s2342_s13  ;;  %v1304_v53 = vstv %s1589_s14 }
 0x231   :  { %v1890_v56 = vpop.eup %1889  ;;  %v771_v57 = vmul.f32 1.442695, %v770_v54  ;;  %1907 = vpow2.f32 %v777_v55  ;;  %v946_v58 = vadd.f32 %v945_v45, %v942_v2  ;;  %v953_v59 = vmul.f32 -0.90909094, %v942_v2 }
 0x232   :  { %v1892_v60 = vpop.eup %1891  ;;  %v1299_v6 = vmul.f32 0.6931472, %v1888_v3  ;;  %v245_v18 = vmul.f32 %v1890_v56, %v244_v61 }
 0x233   :  { %v1894_v5 = vpop.eup %1893  ;;  %1909 = vpow2.f32 %v771_v57  ;;  %v947_v63 = vmul.f32 0.09090909, %v946_v58  ;;  %v954_v0 = vmul.f32 1.442695, %v953_v59  ;;  %v1119_v1 = vmul.f32 0.6931472, %v1892_v60 }
 0x234   :  { %v1896_v13 = vpop.eup %1895  ;;  %426 = vst.msk [vmem:[#allocation13 + $0x2] sm:$0x3] %vm160_vm2, %v1894_v5 }
 0x235   :  { %v1898_v14 = vpop.eup %1897  ;;  %v948_v15 = vmul.f32 1.442695, %v947_v63  ;;  %1911 = vpow2.f32 %v954_v0  ;;  %v1123_v7 = vadd.f32 %v1122_v4, %v1119_v1  ;;  %v1130_v16 = vmul.f32 -0.90909094, %v1119_v1 }
 0x236   :  { %v1900_v17 = vpop.eup %1899  ;;  %v420_v19 = vmul.f32 %v1898_v14, %v419_v62  ;;  %v1476_v25 = vmul.f32 0.6931472, %v1896_v13  ;;  %v1481_v4 = vstv %s1592_s15 }
 0x237   :  { %v1902_v21 = vpop.eup %1901  ;;  %1913 = vpow2.f32 %v948_v15  ;;  %v1124_v8 = vmul.f32 0.09090909, %v1123_v7  ;;  %v1131_v22 = vmul.f32 1.442695, %v1130_v16  ;;  %v1296_v23 = vmul.f32 0.6931472, %v1900_v17 }
 0x238   :  { %v421_v24 = vadd.f32 %v420_v19, %v245_v18  ;;  %603 = vst.msk [vmem:[#allocation13 + $0x4] sm:$0x3] %vm160_vm2, %v1902_v21  ;;  %v1498_v13 = vld [vmem:[#allocation13] sm:$0x3] }
 0x239   :  { %v1904_v26 = vpop.eup %1903  ;;  %v1125_v9 = vmul.f32 1.442695, %v1124_v8  ;;  %1915 = vpow2.f32 %v1131_v22  ;;  %v1300_v27 = vadd.f32 %v1299_v6, %v1296_v23  ;;  %v1307_v28 = vmul.f32 -0.90909094, %v1296_v23 }
 0x23a   :  { %v1906_v29 = vpop.eup %1905  ;;  %v597_v30 = vmul.f32 %v1904_v26, %v596_v20 }
 0x23b   :  { %v1908_v32 = vpop.eup %1907  ;;  %1917 = vpow2.f32 %v1125_v9  ;;  %v1301_v33 = vmul.f32 0.09090909, %v1300_v27  ;;  %v1308_v10 = vmul.f32 1.442695, %v1307_v28  ;;  %v1473_v34 = vmul.f32 0.6931472, %v1906_v29 }
 0x23c   :  { %v598_v35 = vadd.f32 %v597_v30, %v421_v24  ;;  %780 = vst.msk [vmem:[#allocation13 + $0x6] sm:$0x3] %vm160_vm2, %v1908_v32  ;;  %v1501_v6 = vld [vmem:[#allocation13 + $0x2] sm:$0x3] }
 0x23d   :  { %v1910_v36 = vpop.eup %1909  ;;  %v1302_v37 = vmul.f32 1.442695, %v1301_v33  ;;  %1919 = vpow2.f32 %v1308_v10  ;;  %v1477_v38 = vadd.f32 %v1476_v25, %v1473_v34  ;;  %v1484_v39 = vmul.f32 -0.90909094, %v1473_v34 }
 0x23e   :  { %v774_v40 = vmul.f32 %v1910_v36, %v773_v31 }
 0x23f   :  { %v1912_v11 = vpop.eup %1911  ;;  %1921 = vpow2.f32 %v1302_v37  ;;  %v1478_v42 = vmul.f32 0.09090909, %v1477_v38  ;;  %v1485_v43 = vmul.f32 1.442695, %v1484_v39  ;;  %v1504_v14 = vld [vmem:[#allocation13 + $0x4] sm:$0x3] }
 0x240   :  { %v775_v44 = vadd.f32 %v774_v40, %v598_v35  ;;  %957 = vst.msk [vmem:[#allocation13 + $0x8] sm:$0x3] %vm160_vm2, %v1912_v11 }
 0x241   :  { %v1914_v45 = vpop.eup %1913  ;;  %v1479_v46 = vmul.f32 1.442695, %v1478_v42  ;;  %1923 = vpow2.f32 %v1485_v43 }
 0x242   :  { %v951_v47 = vmul.f32 %v1914_v45, %v950_v41 }
 0x243   :  { %v1916_v48 = vpop.eup %1915  ;;  %1925 = vpow2.f32 %v1479_v46 }
 0x244   :  { %v952_v50 = vadd.f32 %v951_v47, %v775_v44  ;;  %1134 = vst.msk [vmem:[#allocation13 + $0xa] sm:$0x3] %vm160_vm2, %v1916_v48 }
 0x245   :  { %v1918_v51 = vpop.eup %1917 }
 0x246   :  { %v1128_v12 = vmul.f32 %v1918_v51, %v1127_v49 }
 0x247   :  { %v1920_v52 = vpop.eup %1919 }
 0x248   :  { %v1129_v54 = vadd.f32 %v1128_v12, %v952_v50  ;;  %1311 = vst.msk [vmem:[#allocation13 + $0xc] sm:$0x3] %vm160_vm2, %v1920_v52 }
 0x249   :  { %v1922_v55 = vpop.eup %1921 }
 0x24a   :  { %v1305_v2 = vmul.f32 %v1922_v55, %v1304_v53 }
 0x24b   :  { %v1924_v3 = vpop.eup %1923 }
 0x24c   :  { %1488 = vst.msk [vmem:[#allocation13 + $0xe] sm:$0x3] %vm160_vm2, %v1924_v3  ;;  %v1306_v56 = vadd.f32 %v1305_v2, %v1129_v54 }
 0x24d   :  { %v1926_v57 = vpop.eup %1925 }
 0x24e   :  { %v1482_v58 = vmul.f32 %v1926_v57, %v1481_v4 }
 0x250   :  { %v1483_v59 = vadd.f32 %v1482_v58, %v1306_v56 }
 0x252   :  { %1927 = vlog2.f32 %v1483_v59 }
 0x25c   :  { %v1928_v60 = vpop.eup %1927 }
 0x25d   :  { %v1490_v61 = vmul.f32 0.6931472, %v1928_v60 }
 0x25f   :  { %v1491_v62 = vmul.f32 11.0, %v1490_v61 }
 0x261   :  { %v1492_v5 = vmul.f32 1.442695, %v1491_v62  ;;  %v1495_v63 = vmul.f32 0.90909094, %v1491_v62 }
 0x263   :  { %1929 = vpow2.f32 %v1492_v5  ;;  %v1496_v0 = vmul.f32 1.442695, %v1495_v63 }
 0x265   :  { %1931 = vpow2.f32 %v1496_v0 }
 0x26d   :  { %v1930_v1 = vpop.eup %1929 }
 0x26e   :  { %1494 = vst.msk [vmem:[#allocation10] sm:$0x3] %vm160_vm2, %v1930_v1 }
 0x26f   :  { %v1932_v15 = vpop.eup %1931 }
 0x270   :  { %2042 = shalt.err (!%p2039_p11)
}
 0x271   :  { %s2043_s3 = scalar_lea.hbm %s2394_s4, 32 }
 0x272   :  { %p2044_p12 = scmp.ne.s32.totalorder %s2394_s4, %s2043_s3  ;;  %p2047_p13 = scmp.lt.u32.totalorder %s2043_s3, %s2394_s4 }
 0x274   :  { %p2049_p0 = pnand %p2047_p13, %p2044_p12 }
 0x276   :  { %2052 = shalt.err (!%p2049_p0)
}
 0x277   :  { %1531 = dma.vmem_to_hbm [thread:$0]  %s1529_s17, 32, %s2394_s4, [#allocation4]   ;;  %v1507_v7 = vld [vmem:[#allocation13 + $0x6] sm:$0x3]  ;;  %v1510_v16 = vld [vmem:[#allocation13 + $0x8] sm:$0x3]  ;;  %v1499_v17 = vmul.f32 %v1932_v15, %v1498_v13  ;;  %v1502_v18 = vmul.f32 %v1932_v15, %v1501_v6  ;;  %v1505_v19 = vmul.f32 %v1932_v15, %v1504_v14 }
 0x278   :  { %v1508_v20 = vmul.f32 %v1932_v15, %v1507_v7  ;;  %v1513_v21 = vld [vmem:[#allocation13 + $0xa] sm:$0x3]  ;;  %v1516_v8 = vld [vmem:[#allocation13 + $0xc] sm:$0x3]  ;;  %v1519_v22 = vld [vmem:[#allocation13 + $0xe] sm:$0x3]  ;;  %v1511_v23 = vmul.f32 %v1932_v15, %v1510_v16  ;;  %p2058_p2 = scmp.lt.s32.totalorder %s1550_s19, %s1550_s19 }
 0x279   :  { %v1514_v24 = vmul.f32 %v1932_v15, %v1513_v21  ;;  %v1517_v25 = vmul.f32 %v1932_v15, %v1516_v8  ;;  %v1520_v26 = vmul.f32 %v1932_v15, %v1519_v22  ;;  %1500 = vst.msk [vmem:[#allocation13] sm:$0x3] %vm160_vm2, %v1499_v17  ;;  %1503 = vst.msk [vmem:[#allocation13 + $0x2] sm:$0x3] %vm160_vm2, %v1502_v18  ;;  %s2053_s4 = scalar_lea.vmem %s1550_s19, 256 }
 0x27a   :  { %1506 = vst.msk [vmem:[#allocation13 + $0x4] sm:$0x3] %vm160_vm2, %v1505_v19  ;;  %1509 = vst.msk [vmem:[#allocation13 + $0x6] sm:$0x3] %vm160_vm2, %v1508_v20  ;;  %p2054_p1 = scmp.ne.s32.totalorder %s1550_s19, %s2053_s4  ;;  %p2059_p3 = scmp.lt.s32.totalorder %s2053_s4, %s2053_s4 }
 0x27b   :  { %1512 = vst.msk [vmem:[#allocation13 + $0x8] sm:$0x3] %vm160_vm2, %v1511_v23  ;;  %1515 = vst.msk [vmem:[#allocation13 + $0xa] sm:$0x3] %vm160_vm2, %v1514_v24 }
 0x27c   :  { %1518 = vst.msk [vmem:[#allocation13 + $0xc] sm:$0x3] %vm160_vm2, %v1517_v25  ;;  %1521 = vst.msk [vmem:[#allocation13 + $0xe] sm:$0x3] %vm160_vm2, %v1520_v26  ;;  %p2060_p4 = por %p2059_p3, %p2058_p2 }
 0x27e   :  { %p2061_p5 = pnand %p2060_p4, %p2054_p1 }
 0x280   :  { %2064 = shalt.err (!%p2061_p5)
}
 0x281   :  { %s2065_s29 = scalar_lea.hbm %s2396_s6, 256 }
 0x282   :  { %p2066_p6 = scmp.ne.s32.totalorder %s2396_s6, %s2065_s29  ;;  %p2069_p7 = scmp.lt.u32.totalorder %s2065_s29, %s2396_s6 }
 0x284   :  { %p2071_p8 = pnand %p2069_p7, %p2066_p6 }
 0x286   :  { %2074 = shalt.err (!%p2071_p8)
}
 0x287   :  { %1555 = dma.vmem_to_hbm [thread:$0]  %s1550_s19, 256, %s2396_s6, [#allocation12], %s2086_s7, %s2086_s7, %s2087_s8  }
 0x288   :  { %2081 = dma.done.wait [#allocation4], 32  }
 0x289   :  { %2082 = vsyncadd [#allocation4], 4294967264 }
 0x28a   :  { %2083 = dma.done.wait [#allocation12], 512  }
 0x28b   :  { %2084 = vsyncadd [#allocation12], 4294966784 }
 0x28c   :  { %1565 = vsyncpa [#allocation3], 1 }
 0x28d   :  { %1566 = vsyncpa [#allocation8], 1 }
 0x28e   :  { %1567 = vsyncpa [#allocation4], 1 }
 0x28f   :  { %1568 = vsyncpa [#allocation12], 1 }
 0x290   :  { %1569 = vsyncpa [#allocation5], 1 }

</bundles_post_ra>
